<compile_context>
chip_gen: v7x
topology: tpu7x:2x2x1
jax: 0.10.0
libtpu: 0.0.40
codegen_flags: <defaults>
</compile_context>

<pallas_src>
import functools

import jax
import jax.numpy as jnp
from jax.experimental import pallas as pl
from jax.experimental.pallas import tpu as pltpu

LEAKY_SLOPE = 0.2
BN_EPS = 1e-5
VMEM_LIMIT = 48 * 1024 * 1024     # <= v7x physical VMEM (64 MiB), fine on v5e/v6e
MAX_FUSED_ROWS = 2048             # full-M fused BN epilogue when Mp <= this
TK_CAP = 4096
TN_CAP = 512


def _round_up(x, m):
    return ((x + m - 1) // m) * m


def _pick_tile(total, cap, gran=128):
    """Largest multiple of `gran` that divides `total` and is <= cap (total % gran == 0)."""
    t = max(gran, min(total, (cap // gran) * gran))
    while total % t:
        t -= gran
    return t


def _tm_for(M):
    # bf16 operand -> native (16, 128) sublane tile; keep tm 16-aligned.
    return min(256, _round_up(M, 16))


# ----------------------------- Pallas kernels ------------------------------

def _gemm_bias_act_kernel(a_ref, w_ref, b_ref, o_ref, acc_ref, *, apply_act, slope):
    """bf16 x bf16 -> f32 acc; bias (+ optional LeakyReLU) epilogue; cast to out dtype."""
    k = pl.program_id(3)

    @pl.when(k == 0)
    def _():
        acc_ref[...] = jnp.zeros_like(acc_ref)

    acc_ref[...] += jnp.dot(a_ref[...], w_ref[...], preferred_element_type=jnp.float32)

    @pl.when(k == pl.num_programs(3) - 1)
    def _():
        y = acc_ref[...] + b_ref[...]
        if apply_act:
            y = jnp.maximum(y, y * slope)
        o_ref[...] = y.astype(o_ref.dtype)


def _gemm_bn_act_kernel(a_ref, w_ref, g_ref, bt_ref, o_ref, acc_ref, *,
                        true_m, slope, eps):
    """GEMM with the whole (padded) M dimension resident in the f32 accumulator.

    At the last-K step the epilogue computes the BatchNorm batch statistics over
    the M axis (zero-padded rows contribute exactly zero; we divide by the true
    row count), applies gamma/beta + LeakyReLU and writes the final activation
    directly -- no separate stats output or affine pass."""
    k = pl.program_id(2)

    @pl.when(k == 0)
    def _():
        acc_ref[...] = jnp.zeros_like(acc_ref)

    acc_ref[...] += jnp.dot(a_ref[...], w_ref[...], preferred_element_type=jnp.float32)

    @pl.when(k == pl.num_programs(2) - 1)
    def _():
        acc = acc_ref[...]
        inv_m = 1.0 / true_m
        mean = jnp.sum(acc, axis=0, keepdims=True) * inv_m
        var = jnp.maximum(jnp.sum(acc * acc, axis=0, keepdims=True) * inv_m
                          - mean * mean, 0.0)            # biased batch variance
        scale = g_ref[...] * jax.lax.rsqrt(var + eps)
        shift = bt_ref[...] - mean * scale
        y = acc * scale + shift
        y = jnp.maximum(y, y * slope)
        o_ref[...] = y.astype(o_ref.dtype)


def _gemm_stats_kernel(a_ref, w_ref, o_ref, s_ref, acc_ref):
    """Fallback (large M): GEMM that also emits per-channel sum / sum-of-squares."""
    k = pl.program_id(3)

    @pl.when(k == 0)
    def _():
        acc_ref[...] = jnp.zeros_like(acc_ref)

    acc_ref[...] += jnp.dot(a_ref[...], w_ref[...], preferred_element_type=jnp.float32)

    @pl.when(k == pl.num_programs(3) - 1)
    def _():
        acc = acc_ref[...]
        o_ref[...] = acc
        s_ref[...] = jnp.concatenate(
            [jnp.sum(acc, axis=0, keepdims=True),
             jnp.sum(acc * acc, axis=0, keepdims=True)], axis=0)


def _scale_shift_leaky_kernel(x_ref, s_ref, t_ref, o_ref, *, slope):
    y = x_ref[...] * s_ref[...] + t_ref[...]
    o_ref[...] = jnp.maximum(y, y * slope).astype(o_ref.dtype)


# ------------------------------ Pallas wrappers -----------------------------

def pallas_conv_gemm(a, w_packed, b_packed, *, tm, apply_act, out_dtype):
    """Head-batched GEMM + bias (+ LeakyReLU).  a: (GA, M, K) bf16 (GA==1 -> shared)."""
    GA, M, K = a.shape
    G, Kp, Np = w_packed.shape
    Mp = _round_up(M, tm)
    tk = _pick_tile(Kp, TK_CAP)
    tn = _pick_tile(Np, TN_CAP)

    a_p = jnp.pad(a.astype(jnp.bfloat16), ((0, 0), (0, Mp - M), (0, Kp - K)))
    grid = (G, Mp // tm, Np // tn, Kp // tk)
    a_map = (lambda g, i, j, k: (0, i, k)) if GA == 1 else (lambda g, i, j, k: (g, i, k))

    return pl.pallas_call(
        functools.partial(_gemm_bias_act_kernel, apply_act=apply_act, slope=LEAKY_SLOPE),
        out_shape=jax.ShapeDtypeStruct((G, Mp, Np), out_dtype),
        grid_spec=pltpu.PrefetchScalarGridSpec(
            num_scalar_prefetch=0, grid=grid,
            in_specs=[pl.BlockSpec((None, tm, tk), a_map),
                      pl.BlockSpec((None, tk, tn), lambda g, i, j, k: (g, k, j)),
                      pl.BlockSpec((None, 1, tn), lambda g, i, j, k: (g, 0, j))],
            out_specs=pl.BlockSpec((None, tm, tn), lambda g, i, j, k: (g, i, j)),
            scratch_shapes=[pltpu.VMEM((tm, tn), jnp.float32)]),
        compiler_params=pltpu.CompilerParams(
            dimension_semantics=("parallel", "parallel", "parallel", "arbitrary"),
            vmem_limit_bytes=VMEM_LIMIT),
    )(a_p, w_packed, b_packed)


def pallas_conv_gemm_bn(a, w_packed, gamma, beta, *, true_m, out_dtype):
    """Head-batched GEMM with fully fused BatchNorm(batch stats) + LeakyReLU epilogue."""
    GA, M, K = a.shape
    G, Kp, Np = w_packed.shape
    Mp = _round_up(M, 16)
    # Keep the double-buffered activation block under ~16 MiB.
    tk_cap = min(TK_CAP, max(128, ((16 * 1024 * 1024) // (4 * Mp)) // 128 * 128))
    tk = _pick_tile(Kp, tk_cap)
    tn = _pick_tile(Np, TN_CAP)

    a_p = jnp.pad(a.astype(jnp.bfloat16), ((0, 0), (0, Mp - M), (0, Kp - K)))
    grid = (G, Np // tn, Kp // tk)
    a_map = (lambda g, j, k: (0, 0, k)) if GA == 1 else (lambda g, j, k: (g, 0, k))

    return pl.pallas_call(
        functools.partial(_gemm_bn_act_kernel, true_m=float(true_m),
                          slope=LEAKY_SLOPE, eps=BN_EPS),
        out_shape=jax.ShapeDtypeStruct((G, Mp, Np), out_dtype),
        grid_spec=pltpu.PrefetchScalarGridSpec(
            num_scalar_prefetch=0, grid=grid,
            in_specs=[pl.BlockSpec((None, Mp, tk), a_map),
                      pl.BlockSpec((None, tk, tn), lambda g, j, k: (g, k, j)),
                      pl.BlockSpec((None, 1, tn), lambda g, j, k: (g, 0, j)),
                      pl.BlockSpec((None, 1, tn), lambda g, j, k: (g, 0, j))],
            out_specs=pl.BlockSpec((None, Mp, tn), lambda g, j, k: (g, 0, j)),
            scratch_shapes=[pltpu.VMEM((Mp, tn), jnp.float32)]),
        compiler_params=pltpu.CompilerParams(
            dimension_semantics=("parallel", "parallel", "arbitrary"),
            vmem_limit_bytes=VMEM_LIMIT),
    )(a_p, w_packed, gamma, beta)


def pallas_conv_gemm_stats(a, w_packed, *, tm):
    """Fallback for very large M: GEMM emitting per-M-block BN partial statistics."""
    GA, M, K = a.shape
    G, Kp, Np = w_packed.shape
    Mp = _round_up(M, tm)
    tk = _pick_tile(Kp, TK_CAP)
    tn = _pick_tile(Np, TN_CAP)

    a_p = jnp.pad(a.astype(jnp.bfloat16), ((0, 0), (0, Mp - M), (0, Kp - K)))
    grid = (G, Mp // tm, Np // tn, Kp // tk)
    a_map = (lambda g, i, j, k: (0, i, k)) if GA == 1 else (lambda g, i, j, k: (g, i, k))

    return pl.pallas_call(
        _gemm_stats_kernel,
        out_shape=(jax.ShapeDtypeStruct((G, Mp, Np), jnp.float32),
                   jax.ShapeDtypeStruct((G, Mp // tm, 2, Np), jnp.float32)),
        grid_spec=pltpu.PrefetchScalarGridSpec(
            num_scalar_prefetch=0, grid=grid,
            in_specs=[pl.BlockSpec((None, tm, tk), a_map),
                      pl.BlockSpec((None, tk, tn), lambda g, i, j, k: (g, k, j))],
            out_specs=[pl.BlockSpec((None, tm, tn), lambda g, i, j, k: (g, i, j)),
                       pl.BlockSpec((None, None, 2, tn), lambda g, i, j, k: (g, i, 0, j))],
            scratch_shapes=[pltpu.VMEM((tm, tn), jnp.float32)]),
        compiler_params=pltpu.CompilerParams(
            dimension_semantics=("parallel", "parallel", "parallel", "arbitrary"),
            vmem_limit_bytes=VMEM_LIMIT),
    )(a_p, w_packed)


def pallas_scale_shift_leaky(y, scale, shift, *, tm, out_dtype):
    """Fallback BN affine + LeakyReLU pass (only used when the full-M fusion is off)."""
    G, Mp, Np = y.shape
    s2 = scale.reshape(G, 1, Np)
    t2 = shift.reshape(G, 1, Np)
    return pl.pallas_call(
        functools.partial(_scale_shift_leaky_kernel, slope=LEAKY_SLOPE),
        out_shape=jax.ShapeDtypeStruct((G, Mp, Np), out_dtype),
        grid_spec=pltpu.PrefetchScalarGridSpec(
            num_scalar_prefetch=0, grid=(G, Mp // tm),
            in_specs=[pl.BlockSpec((None, tm, Np), lambda g, i: (g, i, 0)),
                      pl.BlockSpec((None, 1, Np), lambda g, i: (g, 0, 0)),
                      pl.BlockSpec((None, 1, Np), lambda g, i: (g, 0, 0))],
            out_specs=pl.BlockSpec((None, tm, Np), lambda g, i: (g, i, 0))),
        compiler_params=pltpu.CompilerParams(
            dimension_semantics=("parallel", "parallel"),
            vmem_limit_bytes=VMEM_LIMIT),
    )(y, s2, t2)


# ------------------------------- conv layers -------------------------------

def conv_block_multi(x, layer, *, stride, has_bn, has_act, cout, out_dtype):
    """x: (GA, B, H, W, Cin).  4x4 conv (pad=2), all heads at once.

    Returns (G, B, OH, OW, cout) in out_dtype."""
    GA, B, H, W, Cin = x.shape
    KH = KW = 4
    pad = 2
    OH = (H + 2 * pad - KH) // stride + 1
    OW = (W + 2 * pad - KW) // stride + 1

    # im2col entirely in bf16: the 16x-expanded patches tensor is the dominant
    # XLA-side intermediate, so building it at half width halves its HBM traffic.
    xf = x.reshape(GA * B, H, W, Cin).astype(jnp.bfloat16)
    xp = jnp.pad(xf, ((0, 0), (pad, pad), (pad, pad), (0, 0)))
    cols = []
    for kh in range(KH):
        for kw in range(KW):
            sl = jax.lax.slice(
                xp, (0, kh, kw, 0),
                (GA * B, kh + stride * (OH - 1) + 1, kw + stride * (OW - 1) + 1, Cin),
                (1, stride, stride, 1))
            cols.append(sl)
    # (kh, kw, ci) ordering matches the (KH, KW, Cin, Cout) -> (K, Cout) weight reshape.
    patches = jnp.concatenate(cols, axis=-1)
    M = B * OH * OW
    a = patches.reshape(GA, M, KH * KW * Cin)

    G = layer['w'].shape[0]

    if has_bn:
        if _round_up(M, 16) <= MAX_FUSED_ROWS:
            # Whole M resident in the accumulator -> fully fused BN + LeakyReLU.
            y = pallas_conv_gemm_bn(a, layer['w'], layer['gamma'], layer['beta'],
                                    true_m=M, out_dtype=out_dtype)
        else:
            tm = _tm_for(M)
            y_f32, stats = pallas_conv_gemm_stats(a, layer['w'], tm=tm)
            s = jnp.sum(stats, axis=1)                         # (G, 2, Np)
            mean = s[:, 0, :] / M
            var = jnp.maximum(s[:, 1, :] / M - mean * mean, 0.0)
            g2 = layer['gamma'][:, 0, :]
            b2 = layer['beta'][:, 0, :]
            scale = g2 * jax.lax.rsqrt(var + BN_EPS)
            shift = b2 - mean * scale
            y = pallas_scale_shift_leaky(y_f32, scale, shift, tm=tm, out_dtype=out_dtype)
    else:
        tm = _tm_for(M)
        y = pallas_conv_gemm(a, layer['w'], layer['b'], tm=tm,
                             apply_act=has_act, out_dtype=out_dtype)

    return y[:, :M, :cout].reshape(G, B, OH, OW, cout)


# --------------------- bilinear resize (torch semantics) -------------------

def bilinear_resize_nchw(x, out_h, out_w):
    """F.interpolate(..., mode='bilinear', align_corners=False) equivalent."""
    B, C, H, W = x.shape

    def _coords(out_size, in_size):
        i = jnp.arange(out_size, dtype=jnp.float32)
        c = (i + 0.5) * (in_size / out_size) - 0.5
        c = jnp.maximum(c, 0.0)
        lo = jnp.minimum(jnp.floor(c), in_size - 1).astype(jnp.int32)
        hi = jnp.minimum(lo + 1, in_size - 1)
        wgt = jnp.clip(c - lo.astype(jnp.float32), 0.0, 1.0)
        return lo, hi, wgt

    y0, y1, wy = _coords(out_h, H)
    x0, x1, wx = _coords(out_w, W)
    rows = (x[:, :, y0, :] * (1.0 - wy)[None, None, :, None]
            + x[:, :, y1, :] * wy[None, None, :, None])
    out = (rows[:, :, :, x0] * (1.0 - wx)[None, None, None, :]
           + rows[:, :, :, x1] * wx[None, None, None, :])
    return out


# -------------------------- multiscale discriminator -----------------------

def _channel_plan(input_nc, ndf, n_layers):
    chans = [(input_nc, ndf)]
    bn = [False]
    nf = ndf
    for _ in range(1, n_layers):
        nf_prev, nf = nf, min(nf * 2, 512)
        chans.append((nf_prev, nf)); bn.append(True)
    nf_prev, nf = nf, min(nf * 2, 512)
    chans.append((nf_prev, nf)); bn.append(True)
    chans.append((nf, 1)); bn.append(False)
    return chans, bn


def multiscale_forward(x_nchw, layers, *, input_nc, ndf, n_layers):
    chans, bns = _channel_plan(input_nc, ndf, n_layers)
    num_layers = n_layers + 2
    num_D = layers[0]['w'].shape[0]

    # (1, B, H, W, C) bf16: the undownsampled input is shared by every head.
    x = jnp.transpose(x_nchw, (0, 2, 3, 1)).astype(jnp.bfloat16)[None]
    for li in range(num_layers):
        stride = 2 if li < n_layers else 1
        has_act = li < num_layers - 1
        # Inter-layer activations stay bf16; only the final 1-channel head output is f32.
        out_dtype = jnp.float32 if li == num_layers - 1 else jnp.bfloat16
        x = conv_block_multi(x, layers[li], stride=stride, has_bn=bns[li],
                             has_act=has_act, cout=chans[li][1], out_dtype=out_dtype)

    o = jnp.transpose(x, (0, 1, 4, 2, 3))                # (num_D, B, 1, h, w) f32
    outs = []
    for i in range(num_D):
        # forward() uses layer{num_D-1-i} for the i-th concatenated output.
        outs.append(bilinear_resize_nchw(o[num_D - 1 - i], 11, 11))
    return jnp.concatenate(outs, axis=1)                 # (B, num_D, 11, 11)


# ------------------------------ parameter init ------------------------------

def init_nlayer_params(key, input_nc, ndf, n_layers):
    chans, bns = _channel_plan(input_nc, ndf, n_layers)
    params = {'w': [], 'b': [], 'gamma': [], 'beta': []}
    for (cin, cout), has_bn in zip(chans, bns):
        key, k1, k2, k3, k4 = jax.random.split(key, 5)
        params['w'].append(0.05 * jax.random.normal(k1, (4, 4, cin, cout), jnp.float32))
        params['b'].append(0.05 * jax.random.normal(k2, (cout,), jnp.float32))
        if has_bn:
            params['gamma'].append(1.0 + 0.1 * jax.random.normal(k3, (cout,), jnp.float32))
            params['beta'].append(0.1 * jax.random.normal(k4, (cout,), jnp.float32))
        else:
            params['gamma'].append(None)
            params['beta'].append(None)
    return params


def pack_multiscale_params(ms_raw, input_nc, ndf, n_layers):
    """Reshape/pad/bf16-cast weights once (outside jit) and stack them over heads."""
    chans, bns = _channel_plan(input_nc, ndf, n_layers)
    layers = []
    for li, ((cin, cout), has_bn) in enumerate(zip(chans, bns)):
        K = 16 * cin
        Kp, Np = _round_up(K, 128), _round_up(cout, 128)
        w = jnp.stack([jnp.pad(p['w'][li].reshape(K, cout),
                               ((0, Kp - K), (0, Np - cout))) for p in ms_raw])
        layer = {'w': w.astype(jnp.bfloat16)}
        if has_bn:
            # The conv bias preceding train-mode BatchNorm cancels exactly -> dropped.
            layer['gamma'] = jnp.stack([jnp.pad(p['gamma'][li], (0, Np - cout)).reshape(1, Np)
                                        for p in ms_raw])
            layer['beta'] = jnp.stack([jnp.pad(p['beta'][li], (0, Np - cout)).reshape(1, Np)
                                       for p in ms_raw])
        else:
            layer['b'] = jnp.stack([jnp.pad(p['b'][li], (0, Np - cout)).reshape(1, Np)
                                    for p in ms_raw])
        layers.append(layer)
    return tuple(layers)


# ----------------------------------- main -----------------------------------

if __name__ == "__main__":
    INPUT_NC, NDF, N_LAYERS, NUM_D = 3, 16, 3, 2   # small synthetic config
    key = jax.random.PRNGKey(0)
    key, kx = jax.random.split(key)
    x = jax.random.normal(kx, (2, INPUT_NC, 32, 32), jnp.float32)  # NCHW like PyTorch

    raw_params = []
    for _ in range(NUM_D):
        key, kd = jax.random.split(key)
        raw_params.append(init_nlayer_params(kd, INPUT_NC, NDF, N_LAYERS))
    packed = pack_multiscale_params(raw_params, INPUT_NC, NDF, N_LAYERS)

    fwd = jax.jit(functools.partial(multiscale_forward,
                                    input_nc=INPUT_NC, ndf=NDF, n_layers=N_LAYERS))
    out = jax.block_until_ready(fwd(x, packed))
    assert out.shape == (2, NUM_D, 11, 11), out.shape
    assert out.dtype == jnp.float32
    print("KERNEL_OK")
</pallas_src>

<mosaic_0001>
module attributes {stable_mosaic.version = 11 : i64} {
  func.func @_gemm_bias_act_kernel(%arg0: i32, %arg1: i32, %arg2: i32, %arg3: i32, %arg4: memref<1x256x128xbf16, #tpu.memory_space<vmem>>, %arg5: memref<1x128x128xbf16, #tpu.memory_space<vmem>>, %arg6: memref<1x1x128xf32, #tpu.memory_space<vmem>>, %arg7: memref<1x256x128xbf16, #tpu.memory_space<vmem>>, %arg8: memref<256x128xf32, #tpu.memory_space<vmem>>) attributes {dimension_semantics = [#tpu.dimension_semantics<parallel>, #tpu.dimension_semantics<parallel>, #tpu.dimension_semantics<parallel>, #tpu.dimension_semantics<arbitrary>], iteration_bounds = array<i64: 2, 3, 1, 1>, scalar_prefetch = 0 : i64, scratch_operands = 1 : i64, tpu.core_type = #tpu.core_type<tc>, window_params = [{transform_indices = @transform_0, window_bounds = array<i64: 1, 256, 128>}, {transform_indices = @transform_1, window_bounds = array<i64: 1, 128, 128>}, {transform_indices = @transform_2, window_bounds = array<i64: 1, 1, 128>}, {transform_indices = @transform_3, window_bounds = array<i64: 1, 256, 128>}]} {
    %c0_i32 = arith.constant 0 : i32
    %0 = arith.cmpi eq, %arg3, %c0_i32 : i32
    %1 = arith.extui %0 : i1 to i32
    %c0_i32_0 = arith.constant 0 : i32
    %2 = arith.cmpi ne, %1, %c0_i32_0 : i32
    scf.if %2 {
      %cst_12 = arith.constant 0.000000e+00 : f32
      %14 = vector.broadcast %cst_12 : f32 to vector<256x128xf32>
      %c0_13 = arith.constant 0 : index
      %c0_14 = arith.constant 0 : index
      %15 = vector.load %arg8[%c0_13, %c0_14] : memref<256x128xf32, #tpu.memory_space<vmem>>, vector<256x128xf32>
      tpu.vector_store %arg8[%c0_13, %c0_14], %14 {strides = array<i32>} : memref<256x128xf32, #tpu.memory_space<vmem>>, vector<256x128xf32>,
    } else {
    }
    %c0 = arith.constant 0 : index
    %c0_1 = arith.constant 0 : index
    %3 = vector.load %arg8[%c0, %c0_1] : memref<256x128xf32, #tpu.memory_space<vmem>>, vector<256x128xf32>
    %c0_2 = arith.constant 0 : index
    %c0_3 = arith.constant 0 : index
    %c0_4 = arith.constant 0 : index
    %4 = vector.load %arg4[%c0_2, %c0_3, %c0_4] : memref<1x256x128xbf16, #tpu.memory_space<vmem>>, vector<1x256x128xbf16>
    %5 = vector.shape_cast %4 : vector<1x256x128xbf16> to vector<256x128xbf16>
    %c0_5 = arith.constant 0 : index
    %c0_6 = arith.constant 0 : index
    %c0_7 = arith.constant 0 : index
    %6 = vector.load %arg5[%c0_5, %c0_6, %c0_7] : memref<1x128x128xbf16, #tpu.memory_space<vmem>>, vector<1x128x128xbf16>
    %7 = vector.shape_cast %6 : vector<1x128x128xbf16> to vector<128x128xbf16>
    %cst = arith.constant dense<0.000000e+00> : vector<256x128xf32>
    %8 = tpu.matmul %5, %7, %cst {dimension_numbers = #tpu.dot_dimension_numbers<[1], [0], [0], [1], [0, 0, 1, 1], [], []>} : vector<256x128xbf16>, vector<128x128xbf16>, vector<256x128xf32> -> vector<256x128xf32>
    %9 = arith.addf %3, %8 : vector<256x128xf32>
    %c0_8 = arith.constant 0 : index
    %c0_9 = arith.constant 0 : index
    %10 = vector.load %arg8[%c0_8, %c0_9] : memref<256x128xf32, #tpu.memory_space<vmem>>, vector<256x128xf32>
    tpu.vector_store %arg8[%c0_8, %c0_9], %9 {strides = array<i32>} : memref<256x128xf32, #tpu.memory_space<vmem>>, vector<256x128xf32>,
    %c0_i32_10 = arith.constant 0 : i32
    %11 = arith.cmpi eq, %arg3, %c0_i32_10 : i32
    %12 = arith.extui %11 : i1 to i32
    %c0_i32_11 = arith.constant 0 : i32
    %13 = arith.cmpi ne, %12, %c0_i32_11 : i32
    scf.if %13 {
      %c0_12 = arith.constant 0 : index
      %c0_13 = arith.constant 0 : index
      %14 = vector.load %arg8[%c0_12, %c0_13] : memref<256x128xf32, #tpu.memory_space<vmem>>, vector<256x128xf32>
      %c0_14 = arith.constant 0 : index
      %c0_15 = arith.constant 0 : index
      %c0_16 = arith.constant 0 : index
      %15 = vector.load %arg6[%c0_14, %c0_15, %c0_16] : memref<1x1x128xf32, #tpu.memory_space<vmem>>, vector<1x1x128xf32>
      %16 = vector.shape_cast %15 : vector<1x1x128xf32> to vector<1x128xf32>
      %17 = vector.broadcast %16 : vector<1x128xf32> to vector<256x128xf32>
      %18 = arith.addf %14, %17 : vector<256x128xf32>
      %cst_17 = arith.constant 2.000000e-01 : f32
      %19 = vector.broadcast %cst_17 : f32 to vector<256x128xf32>
      %20 = arith.mulf %18, %19 : vector<256x128xf32>
      %21 = arith.maximumf %18, %20 : vector<256x128xf32>
      %22 = arith.truncf %21 : vector<256x128xf32> to vector<256x128xbf16>
      %c0_18 = arith.constant 0 : index
      %c0_19 = arith.constant 0 : index
      %c0_20 = arith.constant 0 : index
      %23 = vector.load %arg7[%c0_18, %c0_19, %c0_20] : memref<1x256x128xbf16, #tpu.memory_space<vmem>>, vector<1x256x128xbf16>
      %24 = vector.shape_cast %23 : vector<1x256x128xbf16> to vector<256x128xbf16>
      %25 = vector.shape_cast %22 : vector<256x128xbf16> to vector<1x256x128xbf16>
      tpu.vector_store %arg7[%c0_18, %c0_19, %c0_20], %25 {strides = array<i32>} : memref<1x256x128xbf16, #tpu.memory_space<vmem>>, vector<1x256x128xbf16>,
    } else {
    }
    return
  }
  func.func @transform_0(%arg0: i32, %arg1: i32, %arg2: i32, %arg3: i32) -> (i32, i32, i32) {
    %c0_i32 = arith.constant 0 : i32
    %c0_i32_0 = arith.constant 0 : i32
    return %c0_i32, %arg1, %arg3 : i32, i32, i32
  }
  func.func @transform_1(%arg0: i32, %arg1: i32, %arg2: i32, %arg3: i32) -> (i32, i32, i32) {
    %c0_i32 = arith.constant 0 : i32
    return %arg0, %arg3, %arg2 : i32, i32, i32
  }
  func.func @transform_2(%arg0: i32, %arg1: i32, %arg2: i32, %arg3: i32) -> (i32, i32, i32) {
    %c0_i32 = arith.constant 0 : i32
    %c0_i32_0 = arith.constant 0 : i32
    return %arg0, %c0_i32, %arg2 : i32, i32, i32
  }
  func.func @transform_3(%arg0: i32, %arg1: i32, %arg2: i32, %arg3: i32) -> (i32, i32, i32) {
    %c0_i32 = arith.constant 0 : i32
    return %arg0, %arg1, %arg2 : i32, i32, i32
  }
}

module attributes {stable_mosaic.version = 11 : i64} {
  func.func @_gemm_bn_act_kernel(%arg0: i32, %arg1: i32, %arg2: i32, %arg3: memref<1x176x256xbf16, #tpu.memory_space<vmem>>, %arg4: memref<1x256x128xbf16, #tpu.memory_space<vmem>>, %arg5: memref<1x1x128xf32, #tpu.memory_space<vmem>>, %arg6: memref<1x1x128xf32, #tpu.memory_space<vmem>>, %arg7: memref<1x176x128xbf16, #tpu.memory_space<vmem>>, %arg8: memref<176x128xf32, #tpu.memory_space<vmem>>) attributes {dimension_semantics = [#tpu.dimension_semantics<parallel>, #tpu.dimension_semantics<parallel>, #tpu.dimension_semantics<arbitrary>], iteration_bounds = array<i64: 2, 1, 1>, scalar_prefetch = 0 : i64, scratch_operands = 1 : i64, tpu.core_type = #tpu.core_type<tc>, window_params = [{transform_indices = @transform_0, window_bounds = array<i64: 1, 176, 256>}, {transform_indices = @transform_1, window_bounds = array<i64: 1, 256, 128>}, {transform_indices = @transform_2, window_bounds = array<i64: 1, 1, 128>}, {transform_indices = @transform_3, window_bounds = array<i64: 1, 1, 128>}, {transform_indices = @transform_4, window_bounds = array<i64: 1, 176, 128>}]} {
    %c0_i32 = arith.constant 0 : i32
    %0 = arith.cmpi eq, %arg2, %c0_i32 : i32
    %1 = arith.extui %0 : i1 to i32
    %c0_i32_0 = arith.constant 0 : i32
    %2 = arith.cmpi ne, %1, %c0_i32_0 : i32
    scf.if %2 {
      %cst_12 = arith.constant 0.000000e+00 : f32
      %14 = vector.broadcast %cst_12 : f32 to vector<176x128xf32>
      %c0_13 = arith.constant 0 : index
      %c0_14 = arith.constant 0 : index
      %15 = vector.load %arg8[%c0_13, %c0_14] : memref<176x128xf32, #tpu.memory_space<vmem>>, vector<176x128xf32>
      tpu.vector_store %arg8[%c0_13, %c0_14], %14 {strides = array<i32>} : memref<176x128xf32, #tpu.memory_space<vmem>>, vector<176x128xf32>,
    } else {
    }
    %c0 = arith.constant 0 : index
    %c0_1 = arith.constant 0 : index
    %3 = vector.load %arg8[%c0, %c0_1] : memref<176x128xf32, #tpu.memory_space<vmem>>, vector<176x128xf32>
    %c0_2 = arith.constant 0 : index
    %c0_3 = arith.constant 0 : index
    %c0_4 = arith.constant 0 : index
    %4 = vector.load %arg3[%c0_2, %c0_3, %c0_4] : memref<1x176x256xbf16, #tpu.memory_space<vmem>>, vector<1x176x256xbf16>
    %5 = vector.shape_cast %4 : vector<1x176x256xbf16> to vector<176x256xbf16>
    %c0_5 = arith.constant 0 : index
    %c0_6 = arith.constant 0 : index
    %c0_7 = arith.constant 0 : index
    %6 = vector.load %arg4[%c0_5, %c0_6, %c0_7] : memref<1x256x128xbf16, #tpu.memory_space<vmem>>, vector<1x256x128xbf16>
    %7 = vector.shape_cast %6 : vector<1x256x128xbf16> to vector<256x128xbf16>
    %cst = arith.constant dense<0.000000e+00> : vector<176x128xf32>
    %8 = tpu.matmul %5, %7, %cst {dimension_numbers = #tpu.dot_dimension_numbers<[1], [0], [0], [1], [0, 0, 1, 1], [], []>} : vector<176x256xbf16>, vector<256x128xbf16>, vector<176x128xf32> -> vector<176x128xf32>
    %9 = arith.addf %3, %8 : vector<176x128xf32>
    %c0_8 = arith.constant 0 : index
    %c0_9 = arith.constant 0 : index
    %10 = vector.load %arg8[%c0_8, %c0_9] : memref<176x128xf32, #tpu.memory_space<vmem>>, vector<176x128xf32>
    tpu.vector_store %arg8[%c0_8, %c0_9], %9 {strides = array<i32>} : memref<176x128xf32, #tpu.memory_space<vmem>>, vector<176x128xf32>,
    %c0_i32_10 = arith.constant 0 : i32
    %11 = arith.cmpi eq, %arg2, %c0_i32_10 : i32
    %12 = arith.extui %11 : i1 to i32
    %c0_i32_11 = arith.constant 0 : i32
    %13 = arith.cmpi ne, %12, %c0_i32_11 : i32
    scf.if %13 {
      %c0_12 = arith.constant 0 : index
      %c0_13 = arith.constant 0 : index
      %14 = vector.load %arg8[%c0_12, %c0_13] : memref<176x128xf32, #tpu.memory_space<vmem>>, vector<176x128xf32>
      %cst_14 = arith.constant dense<0.000000e+00> : vector<128xf32>
      %15 = vector.multi_reduction <add>, %14, %cst_14 [0] : vector<176x128xf32> to vector<128xf32>
      %16 = vector.shape_cast %15 : vector<128xf32> to vector<1x128xf32>
      %cst_15 = arith.constant 0.00617283955 : f32
      %17 = vector.broadcast %cst_15 : f32 to vector<1x128xf32>
      %18 = arith.mulf %16, %17 : vector<1x128xf32>
      %19 = arith.mulf %14, %14 : vector<176x128xf32>
      %cst_16 = arith.constant dense<0.000000e+00> : vector<128xf32>
      %20 = vector.multi_reduction <add>, %19, %cst_16 [0] : vector<176x128xf32> to vector<128xf32>
      %21 = vector.shape_cast %20 : vector<128xf32> to vector<1x128xf32>
      %cst_17 = arith.constant 0.00617283955 : f32
      %22 = vector.broadcast %cst_17 : f32 to vector<1x128xf32>
      %23 = arith.mulf %21, %22 : vector<1x128xf32>
      %24 = arith.mulf %18, %18 : vector<1x128xf32>
      %25 = arith.subf %23, %24 : vector<1x128xf32>
      %cst_18 = arith.constant 0.000000e+00 : f32
      %26 = vector.broadcast %cst_18 : f32 to vector<1x128xf32>
      %27 = arith.maximumf %25, %26 : vector<1x128xf32>
      %c0_19 = arith.constant 0 : index
      %c0_20 = arith.constant 0 : index
      %c0_21 = arith.constant 0 : index
      %28 = vector.load %arg5[%c0_19, %c0_20, %c0_21] : memref<1x1x128xf32, #tpu.memory_space<vmem>>, vector<1x1x128xf32>
      %29 = vector.shape_cast %28 : vector<1x1x128xf32> to vector<1x128xf32>
      %cst_22 = arith.constant 9.99999974E-6 : f32
      %30 = vector.broadcast %cst_22 : f32 to vector<1x128xf32>
      %31 = arith.addf %27, %30 : vector<1x128xf32>
      %32 = math.rsqrt %31 : vector<1x128xf32>
      %33 = arith.mulf %29, %32 : vector<1x128xf32>
      %c0_23 = arith.constant 0 : index
      %c0_24 = arith.constant 0 : index
      %c0_25 = arith.constant 0 : index
      %34 = vector.load %arg6[%c0_23, %c0_24, %c0_25] : memref<1x1x128xf32, #tpu.memory_space<vmem>>, vector<1x1x128xf32>
      %35 = vector.shape_cast %34 : vector<1x1x128xf32> to vector<1x128xf32>
      %36 = arith.mulf %18, %33 : vector<1x128xf32>
      %37 = arith.subf %35, %36 : vector<1x128xf32>
      %38 = vector.broadcast %33 : vector<1x128xf32> to vector<176x128xf32>
      %39 = arith.mulf %14, %38 : vector<176x128xf32>
      %40 = vector.broadcast %37 : vector<1x128xf32> to vector<176x128xf32>
      %41 = arith.addf %39, %40 : vector<176x128xf32>
      %cst_26 = arith.constant 2.000000e-01 : f32
      %42 = vector.broadcast %cst_26 : f32 to vector<176x128xf32>
      %43 = arith.mulf %41, %42 : vector<176x128xf32>
      %44 = arith.maximumf %41, %43 : vector<176x128xf32>
      %45 = arith.truncf %44 : vector<176x128xf32> to vector<176x128xbf16>
      %c0_27 = arith.constant 0 : index
      %c0_28 = arith.constant 0 : index
      %c0_29 = arith.constant 0 : index
      %46 = vector.load %arg7[%c0_27, %c0_28, %c0_29] : memref<1x176x128xbf16, #tpu.memory_space<vmem>>, vector<1x176x128xbf16>
      %47 = vector.shape_cast %46 : vector<1x176x128xbf16> to vector<176x128xbf16>
      %48 = vector.shape_cast %45 : vector<176x128xbf16> to vector<1x176x128xbf16>
      tpu.vector_store %arg7[%c0_27, %c0_28, %c0_29], %48 {strides = array<i32>} : memref<1x176x128xbf16, #tpu.memory_space<vmem>>, vector<1x176x128xbf16>,
    } else {
    }
    return
  }
  func.func @transform_0(%arg0: i32, %arg1: i32, %arg2: i32) -> (i32, i32, i32) {
    %c0_i32 = arith.constant 0 : i32
    %c0_i32_0 = arith.constant 0 : i32
    return %arg0, %c0_i32, %arg2 : i32, i32, i32
  }
  func.func @transform_1(%arg0: i32, %arg1: i32, %arg2: i32) -> (i32, i32, i32) {
    %c0_i32 = arith.constant 0 : i32
    return %arg0, %arg2, %arg1 : i32, i32, i32
  }
  func.func @transform_2(%arg0: i32, %arg1: i32, %arg2: i32) -> (i32, i32, i32) {
    %c0_i32 = arith.constant 0 : i32
    %c0_i32_0 = arith.constant 0 : i32
    return %arg0, %c0_i32, %arg1 : i32, i32, i32
  }
  func.func @transform_3(%arg0: i32, %arg1: i32, %arg2: i32) -> (i32, i32, i32) {
    %c0_i32 = arith.constant 0 : i32
    %c0_i32_0 = arith.constant 0 : i32
    return %arg0, %c0_i32, %arg1 : i32, i32, i32
  }
  func.func @transform_4(%arg0: i32, %arg1: i32, %arg2: i32) -> (i32, i32, i32) {
    %c0_i32 = arith.constant 0 : i32
    %c0_i32_0 = arith.constant 0 : i32
    return %arg0, %c0_i32, %arg1 : i32, i32, i32
  }
}

module attributes {stable_mosaic.version = 11 : i64} {
  func.func @_gemm_bn_act_kernel(%arg0: i32, %arg1: i32, %arg2: i32, %arg3: memref<1x64x512xbf16, #tpu.memory_space<vmem>>, %arg4: memref<1x512x128xbf16, #tpu.memory_space<vmem>>, %arg5: memref<1x1x128xf32, #tpu.memory_space<vmem>>, %arg6: memref<1x1x128xf32, #tpu.memory_space<vmem>>, %arg7: memref<1x64x128xbf16, #tpu.memory_space<vmem>>, %arg8: memref<64x128xf32, #tpu.memory_space<vmem>>) attributes {dimension_semantics = [#tpu.dimension_semantics<parallel>, #tpu.dimension_semantics<parallel>, #tpu.dimension_semantics<arbitrary>], iteration_bounds = array<i64: 2, 1, 1>, scalar_prefetch = 0 : i64, scratch_operands = 1 : i64, tpu.core_type = #tpu.core_type<tc>, window_params = [{transform_indices = @transform_0, window_bounds = array<i64: 1, 64, 512>}, {transform_indices = @transform_1, window_bounds = array<i64: 1, 512, 128>}, {transform_indices = @transform_2, window_bounds = array<i64: 1, 1, 128>}, {transform_indices = @transform_3, window_bounds = array<i64: 1, 1, 128>}, {transform_indices = @transform_4, window_bounds = array<i64: 1, 64, 128>}]} {
    %c0_i32 = arith.constant 0 : i32
    %0 = arith.cmpi eq, %arg2, %c0_i32 : i32
    %1 = arith.extui %0 : i1 to i32
    %c0_i32_0 = arith.constant 0 : i32
    %2 = arith.cmpi ne, %1, %c0_i32_0 : i32
    scf.if %2 {
      %cst_12 = arith.constant 0.000000e+00 : f32
      %14 = vector.broadcast %cst_12 : f32 to vector<64x128xf32>
      %c0_13 = arith.constant 0 : index
      %c0_14 = arith.constant 0 : index
      %15 = vector.load %arg8[%c0_13, %c0_14] : memref<64x128xf32, #tpu.memory_space<vmem>>, vector<64x128xf32>
      tpu.vector_store %arg8[%c0_13, %c0_14], %14 {strides = array<i32>} : memref<64x128xf32, #tpu.memory_space<vmem>>, vector<64x128xf32>,
    } else {
    }
    %c0 = arith.constant 0 : index
    %c0_1 = arith.constant 0 : index
    %3 = vector.load %arg8[%c0, %c0_1] : memref<64x128xf32, #tpu.memory_space<vmem>>, vector<64x128xf32>
    %c0_2 = arith.constant 0 : index
    %c0_3 = arith.constant 0 : index
    %c0_4 = arith.constant 0 : index
    %4 = vector.load %arg3[%c0_2, %c0_3, %c0_4] : memref<1x64x512xbf16, #tpu.memory_space<vmem>>, vector<1x64x512xbf16>
    %5 = vector.shape_cast %4 : vector<1x64x512xbf16> to vector<64x512xbf16>
    %c0_5 = arith.constant 0 : index
    %c0_6 = arith.constant 0 : index
    %c0_7 = arith.constant 0 : index
    %6 = vector.load %arg4[%c0_5, %c0_6, %c0_7] : memref<1x512x128xbf16, #tpu.memory_space<vmem>>, vector<1x512x128xbf16>
    %7 = vector.shape_cast %6 : vector<1x512x128xbf16> to vector<512x128xbf16>
    %cst = arith.constant dense<0.000000e+00> : vector<64x128xf32>
    %8 = tpu.matmul %5, %7, %cst {dimension_numbers = #tpu.dot_dimension_numbers<[1], [0], [0], [1], [0, 0, 1, 1], [], []>} : vector<64x512xbf16>, vector<512x128xbf16>, vector<64x128xf32> -> vector<64x128xf32>
    %9 = arith.addf %3, %8 : vector<64x128xf32>
    %c0_8 = arith.constant 0 : index
    %c0_9 = arith.constant 0 : index
    %10 = vector.load %arg8[%c0_8, %c0_9] : memref<64x128xf32, #tpu.memory_space<vmem>>, vector<64x128xf32>
    tpu.vector_store %arg8[%c0_8, %c0_9], %9 {strides = array<i32>} : memref<64x128xf32, #tpu.memory_space<vmem>>, vector<64x128xf32>,
    %c0_i32_10 = arith.constant 0 : i32
    %11 = arith.cmpi eq, %arg2, %c0_i32_10 : i32
    %12 = arith.extui %11 : i1 to i32
    %c0_i32_11 = arith.constant 0 : i32
    %13 = arith.cmpi ne, %12, %c0_i32_11 : i32
    scf.if %13 {
      %c0_12 = arith.constant 0 : index
      %c0_13 = arith.constant 0 : index
      %14 = vector.load %arg8[%c0_12, %c0_13] : memref<64x128xf32, #tpu.memory_space<vmem>>, vector<64x128xf32>
      %cst_14 = arith.constant dense<0.000000e+00> : vector<128xf32>
      %15 = vector.multi_reduction <add>, %14, %cst_14 [0] : vector<64x128xf32> to vector<128xf32>
      %16 = vector.shape_cast %15 : vector<128xf32> to vector<1x128xf32>
      %cst_15 = arith.constant 2.000000e-02 : f32
      %17 = vector.broadcast %cst_15 : f32 to vector<1x128xf32>
      %18 = arith.mulf %16, %17 : vector<1x128xf32>
      %19 = arith.mulf %14, %14 : vector<64x128xf32>
      %cst_16 = arith.constant dense<0.000000e+00> : vector<128xf32>
      %20 = vector.multi_reduction <add>, %19, %cst_16 [0] : vector<64x128xf32> to vector<128xf32>
      %21 = vector.shape_cast %20 : vector<128xf32> to vector<1x128xf32>
      %cst_17 = arith.constant 2.000000e-02 : f32
      %22 = vector.broadcast %cst_17 : f32 to vector<1x128xf32>
      %23 = arith.mulf %21, %22 : vector<1x128xf32>
      %24 = arith.mulf %18, %18 : vector<1x128xf32>
      %25 = arith.subf %23, %24 : vector<1x128xf32>
      %cst_18 = arith.constant 0.000000e+00 : f32
      %26 = vector.broadcast %cst_18 : f32 to vector<1x128xf32>
      %27 = arith.maximumf %25, %26 : vector<1x128xf32>
      %c0_19 = arith.constant 0 : index
      %c0_20 = arith.constant 0 : index
      %c0_21 = arith.constant 0 : index
      %28 = vector.load %arg5[%c0_19, %c0_20, %c0_21] : memref<1x1x128xf32, #tpu.memory_space<vmem>>, vector<1x1x128xf32>
      %29 = vector.shape_cast %28 : vector<1x1x128xf32> to vector<1x128xf32>
      %cst_22 = arith.constant 9.99999974E-6 : f32
      %30 = vector.broadcast %cst_22 : f32 to vector<1x128xf32>
      %31 = arith.addf %27, %30 : vector<1x128xf32>
      %32 = math.rsqrt %31 : vector<1x128xf32>
      %33 = arith.mulf %29, %32 : vector<1x128xf32>
      %c0_23 = arith.constant 0 : index
      %c0_24 = arith.constant 0 : index
      %c0_25 = arith.constant 0 : index
      %34 = vector.load %arg6[%c0_23, %c0_24, %c0_25] : memref<1x1x128xf32, #tpu.memory_space<vmem>>, vector<1x1x128xf32>
      %35 = vector.shape_cast %34 : vector<1x1x128xf32> to vector<1x128xf32>
      %36 = arith.mulf %18, %33 : vector<1x128xf32>
      %37 = arith.subf %35, %36 : vector<1x128xf32>
      %38 = vector.broadcast %33 : vector<1x128xf32> to vector<64x128xf32>
      %39 = arith.mulf %14, %38 : vector<64x128xf32>
      %40 = vector.broadcast %37 : vector<1x128xf32> to vector<64x128xf32>
      %41 = arith.addf %39, %40 : vector<64x128xf32>
      %cst_26 = arith.constant 2.000000e-01 : f32
      %42 = vector.broadcast %cst_26 : f32 to vector<64x128xf32>
      %43 = arith.mulf %41, %42 : vector<64x128xf32>
      %44 = arith.maximumf %41, %43 : vector<64x128xf32>
      %45 = arith.truncf %44 : vector<64x128xf32> to vector<64x128xbf16>
      %c0_27 = arith.constant 0 : index
      %c0_28 = arith.constant 0 : index
      %c0_29 = arith.constant 0 : index
      %46 = vector.load %arg7[%c0_27, %c0_28, %c0_29] : memref<1x64x128xbf16, #tpu.memory_space<vmem>>, vector<1x64x128xbf16>
      %47 = vector.shape_cast %46 : vector<1x64x128xbf16> to vector<64x128xbf16>
      %48 = vector.shape_cast %45 : vector<64x128xbf16> to vector<1x64x128xbf16>
      tpu.vector_store %arg7[%c0_27, %c0_28, %c0_29], %48 {strides = array<i32>} : memref<1x64x128xbf16, #tpu.memory_space<vmem>>, vector<1x64x128xbf16>,
    } else {
    }
    return
  }
  func.func @transform_0(%arg0: i32, %arg1: i32, %arg2: i32) -> (i32, i32, i32) {
    %c0_i32 = arith.constant 0 : i32
    %c0_i32_0 = arith.constant 0 : i32
    return %arg0, %c0_i32, %arg2 : i32, i32, i32
  }
  func.func @transform_1(%arg0: i32, %arg1: i32, %arg2: i32) -> (i32, i32, i32) {
    %c0_i32 = arith.constant 0 : i32
    return %arg0, %arg2, %arg1 : i32, i32, i32
  }
  func.func @transform_2(%arg0: i32, %arg1: i32, %arg2: i32) -> (i32, i32, i32) {
    %c0_i32 = arith.constant 0 : i32
    %c0_i32_0 = arith.constant 0 : i32
    return %arg0, %c0_i32, %arg1 : i32, i32, i32
  }
  func.func @transform_3(%arg0: i32, %arg1: i32, %arg2: i32) -> (i32, i32, i32) {
    %c0_i32 = arith.constant 0 : i32
    %c0_i32_0 = arith.constant 0 : i32
    return %arg0, %c0_i32, %arg1 : i32, i32, i32
  }
  func.func @transform_4(%arg0: i32, %arg1: i32, %arg2: i32) -> (i32, i32, i32) {
    %c0_i32 = arith.constant 0 : i32
    %c0_i32_0 = arith.constant 0 : i32
    return %arg0, %c0_i32, %arg1 : i32, i32, i32
  }
}

module attributes {stable_mosaic.version = 11 : i64} {
  func.func @_gemm_bn_act_kernel(%arg0: i32, %arg1: i32, %arg2: i32, %arg3: memref<1x80x1024xbf16, #tpu.memory_space<vmem>>, %arg4: memref<1x1024x128xbf16, #tpu.memory_space<vmem>>, %arg5: memref<1x1x128xf32, #tpu.memory_space<vmem>>, %arg6: memref<1x1x128xf32, #tpu.memory_space<vmem>>, %arg7: memref<1x80x128xbf16, #tpu.memory_space<vmem>>, %arg8: memref<80x128xf32, #tpu.memory_space<vmem>>) attributes {dimension_semantics = [#tpu.dimension_semantics<parallel>, #tpu.dimension_semantics<parallel>, #tpu.dimension_semantics<arbitrary>], iteration_bounds = array<i64: 2, 1, 1>, scalar_prefetch = 0 : i64, scratch_operands = 1 : i64, tpu.core_type = #tpu.core_type<tc>, window_params = [{transform_indices = @transform_0, window_bounds = array<i64: 1, 80, 1024>}, {transform_indices = @transform_1, window_bounds = array<i64: 1, 1024, 128>}, {transform_indices = @transform_2, window_bounds = array<i64: 1, 1, 128>}, {transform_indices = @transform_3, window_bounds = array<i64: 1, 1, 128>}, {transform_indices = @transform_4, window_bounds = array<i64: 1, 80, 128>}]} {
    %c0_i32 = arith.constant 0 : i32
    %0 = arith.cmpi eq, %arg2, %c0_i32 : i32
    %1 = arith.extui %0 : i1 to i32
    %c0_i32_0 = arith.constant 0 : i32
    %2 = arith.cmpi ne, %1, %c0_i32_0 : i32
    scf.if %2 {
      %cst_12 = arith.constant 0.000000e+00 : f32
      %14 = vector.broadcast %cst_12 : f32 to vector<80x128xf32>
      %c0_13 = arith.constant 0 : index
      %c0_14 = arith.constant 0 : index
      %15 = vector.load %arg8[%c0_13, %c0_14] : memref<80x128xf32, #tpu.memory_space<vmem>>, vector<80x128xf32>
      tpu.vector_store %arg8[%c0_13, %c0_14], %14 {strides = array<i32>} : memref<80x128xf32, #tpu.memory_space<vmem>>, vector<80x128xf32>,
    } else {
    }
    %c0 = arith.constant 0 : index
    %c0_1 = arith.constant 0 : index
    %3 = vector.load %arg8[%c0, %c0_1] : memref<80x128xf32, #tpu.memory_space<vmem>>, vector<80x128xf32>
    %c0_2 = arith.constant 0 : index
    %c0_3 = arith.constant 0 : index
    %c0_4 = arith.constant 0 : index
    %4 = vector.load %arg3[%c0_2, %c0_3, %c0_4] : memref<1x80x1024xbf16, #tpu.memory_space<vmem>>, vector<1x80x1024xbf16>
    %5 = vector.shape_cast %4 : vector<1x80x1024xbf16> to vector<80x1024xbf16>
    %c0_5 = arith.constant 0 : index
    %c0_6 = arith.constant 0 : index
    %c0_7 = arith.constant 0 : index
    %6 = vector.load %arg4[%c0_5, %c0_6, %c0_7] : memref<1x1024x128xbf16, #tpu.memory_space<vmem>>, vector<1x1024x128xbf16>
    %7 = vector.shape_cast %6 : vector<1x1024x128xbf16> to vector<1024x128xbf16>
    %cst = arith.constant dense<0.000000e+00> : vector<80x128xf32>
    %8 = tpu.matmul %5, %7, %cst {dimension_numbers = #tpu.dot_dimension_numbers<[1], [0], [0], [1], [0, 0, 1, 1], [], []>} : vector<80x1024xbf16>, vector<1024x128xbf16>, vector<80x128xf32> -> vector<80x128xf32>
    %9 = arith.addf %3, %8 : vector<80x128xf32>
    %c0_8 = arith.constant 0 : index
    %c0_9 = arith.constant 0 : index
    %10 = vector.load %arg8[%c0_8, %c0_9] : memref<80x128xf32, #tpu.memory_space<vmem>>, vector<80x128xf32>
    tpu.vector_store %arg8[%c0_8, %c0_9], %9 {strides = array<i32>} : memref<80x128xf32, #tpu.memory_space<vmem>>, vector<80x128xf32>,
    %c0_i32_10 = arith.constant 0 : i32
    %11 = arith.cmpi eq, %arg2, %c0_i32_10 : i32
    %12 = arith.extui %11 : i1 to i32
    %c0_i32_11 = arith.constant 0 : i32
    %13 = arith.cmpi ne, %12, %c0_i32_11 : i32
    scf.if %13 {
      %c0_12 = arith.constant 0 : index
      %c0_13 = arith.constant 0 : index
      %14 = vector.load %arg8[%c0_12, %c0_13] : memref<80x128xf32, #tpu.memory_space<vmem>>, vector<80x128xf32>
      %cst_14 = arith.constant dense<0.000000e+00> : vector<128xf32>
      %15 = vector.multi_reduction <add>, %14, %cst_14 [0] : vector<80x128xf32> to vector<128xf32>
      %16 = vector.shape_cast %15 : vector<128xf32> to vector<1x128xf32>
      %cst_15 = arith.constant 0.013888889 : f32
      %17 = vector.broadcast %cst_15 : f32 to vector<1x128xf32>
      %18 = arith.mulf %16, %17 : vector<1x128xf32>
      %19 = arith.mulf %14, %14 : vector<80x128xf32>
      %cst_16 = arith.constant dense<0.000000e+00> : vector<128xf32>
      %20 = vector.multi_reduction <add>, %19, %cst_16 [0] : vector<80x128xf32> to vector<128xf32>
      %21 = vector.shape_cast %20 : vector<128xf32> to vector<1x128xf32>
      %cst_17 = arith.constant 0.013888889 : f32
      %22 = vector.broadcast %cst_17 : f32 to vector<1x128xf32>
      %23 = arith.mulf %21, %22 : vector<1x128xf32>
      %24 = arith.mulf %18, %18 : vector<1x128xf32>
      %25 = arith.subf %23, %24 : vector<1x128xf32>
      %cst_18 = arith.constant 0.000000e+00 : f32
      %26 = vector.broadcast %cst_18 : f32 to vector<1x128xf32>
      %27 = arith.maximumf %25, %26 : vector<1x128xf32>
      %c0_19 = arith.constant 0 : index
      %c0_20 = arith.constant 0 : index
      %c0_21 = arith.constant 0 : index
      %28 = vector.load %arg5[%c0_19, %c0_20, %c0_21] : memref<1x1x128xf32, #tpu.memory_space<vmem>>, vector<1x1x128xf32>
      %29 = vector.shape_cast %28 : vector<1x1x128xf32> to vector<1x128xf32>
      %cst_22 = arith.constant 9.99999974E-6 : f32
      %30 = vector.broadcast %cst_22 : f32 to vector<1x128xf32>
      %31 = arith.addf %27, %30 : vector<1x128xf32>
      %32 = math.rsqrt %31 : vector<1x128xf32>
      %33 = arith.mulf %29, %32 : vector<1x128xf32>
      %c0_23 = arith.constant 0 : index
      %c0_24 = arith.constant 0 : index
      %c0_25 = arith.constant 0 : index
      %34 = vector.load %arg6[%c0_23, %c0_24, %c0_25] : memref<1x1x128xf32, #tpu.memory_space<vmem>>, vector<1x1x128xf32>
      %35 = vector.shape_cast %34 : vector<1x1x128xf32> to vector<1x128xf32>
      %36 = arith.mulf %18, %33 : vector<1x128xf32>
      %37 = arith.subf %35, %36 : vector<1x128xf32>
      %38 = vector.broadcast %33 : vector<1x128xf32> to vector<80x128xf32>
      %39 = arith.mulf %14, %38 : vector<80x128xf32>
      %40 = vector.broadcast %37 : vector<1x128xf32> to vector<80x128xf32>
      %41 = arith.addf %39, %40 : vector<80x128xf32>
      %cst_26 = arith.constant 2.000000e-01 : f32
      %42 = vector.broadcast %cst_26 : f32 to vector<80x128xf32>
      %43 = arith.mulf %41, %42 : vector<80x128xf32>
      %44 = arith.maximumf %41, %43 : vector<80x128xf32>
      %45 = arith.truncf %44 : vector<80x128xf32> to vector<80x128xbf16>
      %c0_27 = arith.constant 0 : index
      %c0_28 = arith.constant 0 : index
      %c0_29 = arith.constant 0 : index
      %46 = vector.load %arg7[%c0_27, %c0_28, %c0_29] : memref<1x80x128xbf16, #tpu.memory_space<vmem>>, vector<1x80x128xbf16>
      %47 = vector.shape_cast %46 : vector<1x80x128xbf16> to vector<80x128xbf16>
      %48 = vector.shape_cast %45 : vector<80x128xbf16> to vector<1x80x128xbf16>
      tpu.vector_store %arg7[%c0_27, %c0_28, %c0_29], %48 {strides = array<i32>} : memref<1x80x128xbf16, #tpu.memory_space<vmem>>, vector<1x80x128xbf16>,
    } else {
    }
    return
  }
  func.func @transform_0(%arg0: i32, %arg1: i32, %arg2: i32) -> (i32, i32, i32) {
    %c0_i32 = arith.constant 0 : i32
    %c0_i32_0 = arith.constant 0 : i32
    return %arg0, %c0_i32, %arg2 : i32, i32, i32
  }
  func.func @transform_1(%arg0: i32, %arg1: i32, %arg2: i32) -> (i32, i32, i32) {
    %c0_i32 = arith.constant 0 : i32
    return %arg0, %arg2, %arg1 : i32, i32, i32
  }
  func.func @transform_2(%arg0: i32, %arg1: i32, %arg2: i32) -> (i32, i32, i32) {
    %c0_i32 = arith.constant 0 : i32
    %c0_i32_0 = arith.constant 0 : i32
    return %arg0, %c0_i32, %arg1 : i32, i32, i32
  }
  func.func @transform_3(%arg0: i32, %arg1: i32, %arg2: i32) -> (i32, i32, i32) {
    %c0_i32 = arith.constant 0 : i32
    %c0_i32_0 = arith.constant 0 : i32
    return %arg0, %c0_i32, %arg1 : i32, i32, i32
  }
  func.func @transform_4(%arg0: i32, %arg1: i32, %arg2: i32) -> (i32, i32, i32) {
    %c0_i32 = arith.constant 0 : i32
    %c0_i32_0 = arith.constant 0 : i32
    return %arg0, %c0_i32, %arg1 : i32, i32, i32
  }
}

module attributes {stable_mosaic.version = 11 : i64} {
  func.func @_gemm_bias_act_kernel(%arg0: i32, %arg1: i32, %arg2: i32, %arg3: i32, %arg4: memref<1x112x2048xbf16, #tpu.memory_space<vmem>>, %arg5: memref<1x2048x128xbf16, #tpu.memory_space<vmem>>, %arg6: memref<1x1x128xf32, #tpu.memory_space<vmem>>, %arg7: memref<1x112x128xf32, #tpu.memory_space<vmem>>, %arg8: memref<112x128xf32, #tpu.memory_space<vmem>>) attributes {dimension_semantics = [#tpu.dimension_semantics<parallel>, #tpu.dimension_semantics<parallel>, #tpu.dimension_semantics<parallel>, #tpu.dimension_semantics<arbitrary>], iteration_bounds = array<i64: 2, 1, 1, 1>, scalar_prefetch = 0 : i64, scratch_operands = 1 : i64, tpu.core_type = #tpu.core_type<tc>, window_params = [{transform_indices = @transform_0, window_bounds = array<i64: 1, 112, 2048>}, {transform_indices = @transform_1, window_bounds = array<i64: 1, 2048, 128>}, {transform_indices = @transform_2, window_bounds = array<i64: 1, 1, 128>}, {transform_indices = @transform_3, window_bounds = array<i64: 1, 112, 128>}]} {
    %c0_i32 = arith.constant 0 : i32
    %0 = arith.cmpi eq, %arg3, %c0_i32 : i32
    %1 = arith.extui %0 : i1 to i32
    %c0_i32_0 = arith.constant 0 : i32
    %2 = arith.cmpi ne, %1, %c0_i32_0 : i32
    scf.if %2 {
      %cst_12 = arith.constant 0.000000e+00 : f32
      %14 = vector.broadcast %cst_12 : f32 to vector<112x128xf32>
      %c0_13 = arith.constant 0 : index
      %c0_14 = arith.constant 0 : index
      %15 = vector.load %arg8[%c0_13, %c0_14] : memref<112x128xf32, #tpu.memory_space<vmem>>, vector<112x128xf32>
      tpu.vector_store %arg8[%c0_13, %c0_14], %14 {strides = array<i32>} : memref<112x128xf32, #tpu.memory_space<vmem>>, vector<112x128xf32>,
    } else {
    }
    %c0 = arith.constant 0 : index
    %c0_1 = arith.constant 0 : index
    %3 = vector.load %arg8[%c0, %c0_1] : memref<112x128xf32, #tpu.memory_space<vmem>>, vector<112x128xf32>
    %c0_2 = arith.constant 0 : index
    %c0_3 = arith.constant 0 : index
    %c0_4 = arith.constant 0 : index
    %4 = vector.load %arg4[%c0_2, %c0_3, %c0_4] : memref<1x112x2048xbf16, #tpu.memory_space<vmem>>, vector<1x112x2048xbf16>
    %5 = vector.shape_cast %4 : vector<1x112x2048xbf16> to vector<112x2048xbf16>
    %c0_5 = arith.constant 0 : index
    %c0_6 = arith.constant 0 : index
    %c0_7 = arith.constant 0 : index
    %6 = vector.load %arg5[%c0_5, %c0_6, %c0_7] : memref<1x2048x128xbf16, #tpu.memory_space<vmem>>, vector<1x2048x128xbf16>
    %7 = vector.shape_cast %6 : vector<1x2048x128xbf16> to vector<2048x128xbf16>
    %cst = arith.constant dense<0.000000e+00> : vector<112x128xf32>
    %8 = tpu.matmul %5, %7, %cst {dimension_numbers = #tpu.dot_dimension_numbers<[1], [0], [0], [1], [0, 0, 1, 1], [], []>} : vector<112x2048xbf16>, vector<2048x128xbf16>, vector<112x128xf32> -> vector<112x128xf32>
    %9 = arith.addf %3, %8 : vector<112x128xf32>
    %c0_8 = arith.constant 0 : index
    %c0_9 = arith.constant 0 : index
    %10 = vector.load %arg8[%c0_8, %c0_9] : memref<112x128xf32, #tpu.memory_space<vmem>>, vector<112x128xf32>
    tpu.vector_store %arg8[%c0_8, %c0_9], %9 {strides = array<i32>} : memref<112x128xf32, #tpu.memory_space<vmem>>, vector<112x128xf32>,
    %c0_i32_10 = arith.constant 0 : i32
    %11 = arith.cmpi eq, %arg3, %c0_i32_10 : i32
    %12 = arith.extui %11 : i1 to i32
    %c0_i32_11 = arith.constant 0 : i32
    %13 = arith.cmpi ne, %12, %c0_i32_11 : i32
    scf.if %13 {
      %c0_12 = arith.constant 0 : index
      %c0_13 = arith.constant 0 : index
      %14 = vector.load %arg8[%c0_12, %c0_13] : memref<112x128xf32, #tpu.memory_space<vmem>>, vector<112x128xf32>
      %c0_14 = arith.constant 0 : index
      %c0_15 = arith.constant 0 : index
      %c0_16 = arith.constant 0 : index
      %15 = vector.load %arg6[%c0_14, %c0_15, %c0_16] : memref<1x1x128xf32, #tpu.memory_space<vmem>>, vector<1x1x128xf32>
      %16 = vector.shape_cast %15 : vector<1x1x128xf32> to vector<1x128xf32>
      %17 = vector.broadcast %16 : vector<1x128xf32> to vector<112x128xf32>
      %18 = arith.addf %14, %17 : vector<112x128xf32>
      %c0_17 = arith.constant 0 : index
      %c0_18 = arith.constant 0 : index
      %c0_19 = arith.constant 0 : index
      %19 = vector.load %arg7[%c0_17, %c0_18, %c0_19] : memref<1x112x128xf32, #tpu.memory_space<vmem>>, vector<1x112x128xf32>
      %20 = vector.shape_cast %19 : vector<1x112x128xf32> to vector<112x128xf32>
      %21 = vector.shape_cast %18 : vector<112x128xf32> to vector<1x112x128xf32>
      tpu.vector_store %arg7[%c0_17, %c0_18, %c0_19], %21 {strides = array<i32>} : memref<1x112x128xf32, #tpu.memory_space<vmem>>, vector<1x112x128xf32>,
    } else {
    }
    return
  }
  func.func @transform_0(%arg0: i32, %arg1: i32, %arg2: i32, %arg3: i32) -> (i32, i32, i32) {
    %c0_i32 = arith.constant 0 : i32
    return %arg0, %arg1, %arg3 : i32, i32, i32
  }
  func.func @transform_1(%arg0: i32, %arg1: i32, %arg2: i32, %arg3: i32) -> (i32, i32, i32) {
    %c0_i32 = arith.constant 0 : i32
    return %arg0, %arg3, %arg2 : i32, i32, i32
  }
  func.func @transform_2(%arg0: i32, %arg1: i32, %arg2: i32, %arg3: i32) -> (i32, i32, i32) {
    %c0_i32 = arith.constant 0 : i32
    %c0_i32_0 = arith.constant 0 : i32
    return %arg0, %c0_i32, %arg2 : i32, i32, i32
  }
  func.func @transform_3(%arg0: i32, %arg1: i32, %arg2: i32, %arg3: i32) -> (i32, i32, i32) {
    %c0_i32 = arith.constant 0 : i32
    return %arg0, %arg1, %arg2 : i32, i32, i32
  }
}

</mosaic_0001>

<bundles_post_ra>
// kernel: multiscale_forward.5
= control target key start
LH: loop header
LB: loop body
LE: loop exit
PB: predicated region body
PF: predicated region fallthrough
CT: control target
= control target key end

     0   :  { %s1632_s12 = smov 0   ;;  %s1634_s13 = smov 0   ;;  %s1778_s0 = inlined_call_operand.vmem [shape: bf16[1,768,128], index: 0, kind: input, shape index: {}]   ;;  %s1779_s1 = inlined_call_operand.vmem [shape: bf16[2,128,128], index: 1, kind: input, shape index: {}]   ;;  %s1780_s2 = inlined_call_operand.vmem [shape: f32[2,1,128], index: 2, kind: input, shape index: {}]   ;;  %s1781_s3 = inlined_call_operand.vmem [shape: bf16[2,768,128], index: 3, kind: output, shape index: {}]  }
   0x1   :  { %s1636_s14 = smov 0   ;;  %s1638_s15 = smov 0  }
   0x2   :  { %s1640_s16 = smov 0  }
   0x3 LB: > { %s35_s17 = sadd.s32 1, %s1602_s14  ;;  %s39_s18 = sadd.s32 1, %s1606_s15  ;;  %s1610_s16 = sphi %s1640_s16, %s13_s16   ;;  %s1606_s15 = sphi %s1638_s15, %s1785_s15   ;;  %s1602_s14 = sphi %s1636_s14, %s1784_s14   ;;  %s1598_s13 = sphi %s1634_s13, %s1783_s13   ;;  %s1594_s12 = sphi %s1632_s12, %s1782_s12  }
   0x4   : > { %p37_p0 = scmp.ge.s32.totalorder %s35_s17, 3  ;;  %p1225_p1 = scmp.ge.s32.totalorder %s1610_s16, 1 }
   0x5   : > { %p208_p2 = scmp.lt.s32.totalorder %s1610_s16, 7 }
   0x6   : > { %s1787_s17 = smov (%p37_p0, %s35_s17), 0  ;;  %s1789_s18 = smov (!%p37_p0, %s39_s18), %s1606_s15 }
   0x7   : > { %p209_p3 = pnand %p1225_p1, %p208_p2  ;;  %p41_p4 = scmp.ge.s32.totalorder %s1789_s18, 2 }
   0x8   : > { %p270_p5 = scmp.lt.s32.totalorder (!%p209_p3), %s1598_s13, 1  ;;  %s1226_s19 = sshll.u32 (!%p209_p3), %s1594_s12, 5 }
   0x9   : > { %s1791_s18 = smov (%p41_p4, %s1789_s18), 0  ;;  %212 = sbr.rel (%p209_p3) target bundleno = 301 (0x12d), region = 32 }
   0xa   : > { %p261_p6 = scmp.lt.s32.totalorder (!%p209_p3), %s1226_s19, 95 }
  0x10   : > { %s1793_s13 = smov (!%p270_p5, %s1598_s13), 1  ;;  %s1795_s19 = smov (!%p261_p6, %s1226_s19), 95 }
  0x11   : > { %s1291_s20 = sshll.u32 %s1793_s13, 6  ;;  %s1227_s24 = sshll.u32 %s1795_s19, 2 }
  0x12   : > { %s1670_s23 = scalar_lea.vmem %s1779_s1, %s1291_s20  ;;  %s1679_s27 = scalar_lea.vmem %s1778_s0, %s1227_s24 }
  0x13   : > { %v1548_v0 = vld [vmem:[%s1670_s23] sm:$0xff]   ;;  %v1549_v1 = vld [vmem:[%s1670_s23 + $0x8] sm:$0xff]   ;;  %v1550_v2 = vld [vmem:[%s1670_s23 + $0x10] sm:$0xff]   ;;  %s287_s30 = scalar_lea.vmem %s1780_s2, %s1793_s13  ;;  %s1507_s4 = smul.u32 96, %s1793_s13 }
  0x14   : > { %1443 = vmatprep.subr.bf16.mxu0 %v1548_v0  ;;  %1491 = vmatprep.subr.bf16.mxu1 %v1548_v0  ;;  %v1551_v3 = vld [vmem:[%s1670_s23 + $0x18] sm:$0xff]   ;;  %v1556_v4 = vld [vmem:[%s1679_s27] sm:$0xff]   ;;  %v1553_v7 = vld [vmem:[%s1670_s23 + $0x28] sm:$0xff]  }
  0x15   : > { %1444 = vmatpush3.bf16.msra.mxu0 %v1548_v0  ;;  %1499 = vmatpush3.bf16.msra.mxu1 %v1548_v0  ;;  %v1557_v5 = vld [vmem:[%s1679_s27 + $0x40] sm:$0xff]   ;;  %v1554_v8 = vld [vmem:[%s1670_s23 + $0x30] sm:$0xff]   ;;  %v1555_v9 = vld [vmem:[%s1670_s23 + $0x38] sm:$0xff]   ;;  %s297_s5 = sadd.s32 %s1507_s4, %s1795_s19 }
  0x16   : > { %1445 = vmatprep.subr.bf16.mxu0 %v1549_v1  ;;  %1492 = vmatprep.subr.bf16.mxu1 %v1549_v1  ;;  %v1552_v6 = vld [vmem:[%s1670_s23 + $0x20] sm:$0xff]   ;;  %v1558_v10 = vld [vmem:[%s1679_s27 + $0x8] sm:$0xff]   ;;  %v1560_v12 = vld [vmem:[%s1679_s27 + $0x10] sm:$0xff]   ;;  %s1231_s6 = sshll.u32 %s297_s5, 2 }
  0x17   : > { %1459 = vmatprep.mubr.bf16.mxu0 %v1556_v4  ;;  %1475 = vmatprep.mubr.bf16.mxu1 %v1557_v5  ;;  %v1559_v11 = vld [vmem:[%s1679_s27 + $0x48] sm:$0xff]   ;;  %v1561_v13 = vld [vmem:[%s1679_s27 + $0x50] sm:$0xff]   ;;  %v1562_v14 = vld [vmem:[%s1679_s27 + $0x18] sm:$0xff]   ;;  %s1721_s9 = scalar_lea.vmem %s1781_s3, %s1231_s6 }
  0x18   : > { %v1563_v15 = vld [vmem:[%s1679_s27 + $0x58] sm:$0xff]   ;;  %v1564_v16 = vld [vmem:[%s1679_s27 + $0x20] sm:$0xff]   ;;  %v1566_v18 = vld [vmem:[%s1679_s27 + $0x28] sm:$0xff]  }
  0x19   : > { %1446 = vmatpush3.bf16.msra.mxu0 %v1549_v1  ;;  %1500 = vmatpush3.bf16.msra.mxu1 %v1549_v1  ;;  %v1565_v17 = vld [vmem:[%s1679_s27 + $0x60] sm:$0xff]   ;;  %v1567_v19 = vld [vmem:[%s1679_s27 + $0x68] sm:$0xff]   ;;  %v1568_v20 = vld [vmem:[%s1679_s27 + $0x30] sm:$0xff]  }
  0x1a   : > { %1447 = vmatprep.subr.bf16.mxu0 %v1550_v2  ;;  %1493 = vmatprep.subr.bf16.mxu1 %v1550_v2  ;;  %v1569_v21 = vld [vmem:[%s1679_s27 + $0x70] sm:$0xff]   ;;  %v1570_v22 = vld [vmem:[%s1679_s27 + $0x38] sm:$0xff]   ;;  %v1706_v24 = vld [vmem:[%s287_s30] ss:$0 sm:$0xff] }
  0x1b   : > { %v1571_v23 = vld [vmem:[%s1679_s27 + $0x78] sm:$0xff]  }
  0x1d   : > { %1448 = vmatpush3.bf16.msra.mxu0 %v1550_v2  ;;  %1501 = vmatpush3.bf16.msra.mxu1 %v1550_v2 }
  0x1e   : > { %1449 = vmatprep.subr.bf16.mxu0 %v1551_v3  ;;  %1494 = vmatprep.subr.bf16.mxu1 %v1551_v3 }
  0x21   : > { %1450 = vmatpush3.bf16.msra.mxu0 %v1551_v3  ;;  %1502 = vmatpush3.bf16.msra.mxu1 %v1551_v3 }
  0x22   : > { %1451 = vmatprep.subr.bf16.mxu0 %v1552_v6  ;;  %1495 = vmatprep.subr.bf16.mxu1 %v1552_v6 }
  0x25   : > { %1452 = vmatpush3.bf16.msra.mxu0 %v1552_v6  ;;  %1503 = vmatpush3.bf16.msra.mxu1 %v1552_v6 }
  0x26   : > { %1453 = vmatprep.subr.bf16.mxu0 %v1553_v7  ;;  %1496 = vmatprep.subr.bf16.mxu1 %v1553_v7 }
  0x29   : > { %1454 = vmatpush3.bf16.msra.mxu0 %v1553_v7  ;;  %1504 = vmatpush3.bf16.msra.mxu1 %v1553_v7 }
  0x2a   : > { %1455 = vmatprep.subr.bf16.mxu0 %v1554_v8  ;;  %1497 = vmatprep.subr.bf16.mxu1 %v1554_v8 }
  0x2d   : > { %1456 = vmatpush3.bf16.msra.mxu0 %v1554_v8  ;;  %1505 = vmatpush3.bf16.msra.mxu1 %v1554_v8 }
  0x2e   : > { %1457 = vmatprep.subr.bf16.mxu0 %v1555_v9  ;;  %1498 = vmatprep.subr.bf16.mxu1 %v1555_v9 }
  0x31   : > { %1458 = vmatpush3.bf16.msra.mxu0 %v1555_v9  ;;  %1506 = vmatpush3.bf16.msra.mxu1 %v1555_v9 }
  0x34   : > { %1460 = vmatmul.mubr.bf16.vlgmr.msra.gmra.mrb[0].mxu0 %v1558_v10  ;;  %1476 = vmatmul.mubr.bf16.vlgmr.msra.gmra.mrb[0].mxu1 %v1559_v11 }
  0x35   : > { %1463 = vmatprep.mubr.bf16.mxu0 %v1560_v12  ;;  %1479 = vmatprep.mubr.bf16.mxu1 %v1561_v13 }
  0x3c   : > { %1464 = vmatmul.mubr.bf16.gmra.mrb[4].mxu0 %v1562_v14  ;;  %1480 = vmatmul.mubr.bf16.gmra.mrb[4].mxu1 %v1563_v15 }
  0x3d   : > { %1467 = vmatprep.mubr.bf16.mxu0 %v1564_v16  ;;  %1483 = vmatprep.mubr.bf16.mxu1 %v1565_v17 }
  0x44   : > { %1468 = vmatmul.mubr.bf16.gmra.mrb[8].mxu0 %v1566_v18  ;;  %1484 = vmatmul.mubr.bf16.gmra.mrb[8].mxu1 %v1567_v19 }
  0x45   : > { %1471 = vmatprep.mubr.bf16.mxu0 %v1568_v20  ;;  %1487 = vmatprep.mubr.bf16.mxu1 %v1569_v21 }
  0x4c   : > { %1472 = vmatmul.mubr.bf16.gmra.mrb[12].mxu0 %v1570_v22  ;;  %1488 = vmatmul.mubr.bf16.gmra.mrb[12].mxu1 %v1571_v23 }
 0x107   : > { %v1461_v25 = vpop.f32.mrb[0].mxu0  ;;  %v1477_v26 = vpop.f32.mrb[0].mxu1 }
 0x108   : > { %v831_v27 = vadd.f32 %v1461_v25, %v1706_v24  ;;  %v847_v28 = vadd.f32 %v1477_v26, %v1706_v24  ;;  %v596_v29 = vpop.f32.mrb[1].mxu0  ;;  %v660_v30 = vpop.f32.mrb[1].mxu1 }
 0x109   : > { %v829_v31 = vadd.f32 %v1706_v24, %v596_v29  ;;  %v845_v32 = vadd.f32 %v1706_v24, %v660_v30  ;;  %v1462_v33 = vpop.f32.mrb[2].mxu0  ;;  %v1478_v34 = vpop.f32.mrb[2].mxu1 }
 0x10a   : > { %v863_v35 = vmul.f32 0.2, %v831_v27  ;;  %v879_v36 = vmul.f32 0.2, %v847_v28  ;;  %v832_v37 = vadd.f32 %v1462_v33, %v1706_v24  ;;  %v848_v38 = vadd.f32 %v1478_v34, %v1706_v24  ;;  %v599_v39 = vpop.f32.mrb[3].mxu0  ;;  %v663_v40 = vpop.f32.mrb[3].mxu1 }
 0x10b   : > { %v861_v41 = vmul.f32 0.2, %v829_v31  ;;  %v877_v42 = vmul.f32 0.2, %v845_v32  ;;  %v830_v43 = vadd.f32 %v1706_v24, %v599_v39  ;;  %v846_v44 = vadd.f32 %v1706_v24, %v663_v40 }
 0x10c   : > { %v864_v45 = vmul.f32 0.2, %v832_v37  ;;  %v880_v46 = vmul.f32 0.2, %v848_v38  ;;  %v895_v49 = vmax.f32 %v831_v27, %v863_v35  ;;  %v911_v50 = vmax.f32 %v847_v28, %v879_v36 }
 0x10d   : > { %v862_v47 = vmul.f32 0.2, %v830_v43  ;;  %v878_v48 = vmul.f32 0.2, %v846_v44  ;;  %v893_v53 = vmax.f32 %v829_v31, %v861_v41  ;;  %v909_v54 = vmax.f32 %v845_v32, %v877_v42 }
 0x10e   : > { %v896_v51 = vmax.f32 %v832_v37, %v864_v45  ;;  %v912_v52 = vmax.f32 %v848_v38, %v880_v46 }
 0x10f   : > { %v894_v55 = vmax.f32 %v830_v43, %v862_v47  ;;  %v910_v56 = vmax.f32 %v846_v44, %v878_v48  ;;  %v1465_v57 = vpop.f32.mrb[4].mxu0  ;;  %v1481_v58 = vpop.f32.mrb[4].mxu1 }
 0x110   : > { %v1332_v59 = vpack.c.bf16 %v896_v51, %v895_v49  ;;  %v1372_v60 = vpack.c.bf16 %v912_v52, %v911_v50  ;;  %v835_v61 = vadd.f32 %v1465_v57, %v1706_v24  ;;  %v851_v62 = vadd.f32 %v1481_v58, %v1706_v24  ;;  %v612_v63 = vpop.f32.mrb[5].mxu0  ;;  %v676_v0 = vpop.f32.mrb[5].mxu1 }
 0x111   : > { %v1327_v1 = vpack.c.bf16 %v894_v55, %v893_v53  ;;  %v1367_v2 = vpack.c.bf16 %v910_v56, %v909_v54  ;;  %v833_v3 = vadd.f32 %v1706_v24, %v612_v63  ;;  %v849_v4 = vadd.f32 %v1706_v24, %v676_v0  ;;  %v1466_v5 = vpop.f32.mrb[6].mxu0  ;;  %v1482_v6 = vpop.f32.mrb[6].mxu1 }
 0x112   : > { %1404 = vst [vmem:[%s1721_s9 + $0x8] sm:$0xff] %v1332_v59   ;;  %1412 = vst [vmem:[%s1721_s9 + $0x48] sm:$0xff] %v1372_v60   ;;  %v867_v7 = vmul.f32 0.2, %v835_v61  ;;  %v883_v8 = vmul.f32 0.2, %v851_v62  ;;  %v836_v9 = vadd.f32 %v1466_v5, %v1706_v24  ;;  %v852_v10 = vadd.f32 %v1482_v6, %v1706_v24 }
 0x113   : > { %v615_v11 = vpop.f32.mrb[7].mxu0  ;;  %v679_v12 = vpop.f32.mrb[7].mxu1  ;;  %1328 = vst [vmem:[%s1721_s9] sm:$0xff] %v1327_v1   ;;  %1411 = vst [vmem:[%s1721_s9 + $0x40] sm:$0xff] %v1367_v2   ;;  %v865_v13 = vmul.f32 0.2, %v833_v3 }
 0x114   : > { %v881_v14 = vmul.f32 0.2, %v849_v4  ;;  %v834_v15 = vadd.f32 %v1706_v24, %v615_v11  ;;  %v850_v16 = vadd.f32 %v1706_v24, %v679_v12  ;;  %v868_v17 = vmul.f32 0.2, %v836_v9 }
 0x115   : > { %v884_v18 = vmul.f32 0.2, %v852_v10  ;;  %v899_v21 = vmax.f32 %v835_v61, %v867_v7  ;;  %v915_v22 = vmax.f32 %v851_v62, %v883_v8  ;;  %v897_v26 = vmax.f32 %v833_v3, %v865_v13 }
 0x116   : > { %v866_v19 = vmul.f32 0.2, %v834_v15  ;;  %v882_v20 = vmul.f32 0.2, %v850_v16  ;;  %v900_v23 = vmax.f32 %v836_v9, %v868_v17  ;;  %v913_v27 = vmax.f32 %v849_v4, %v881_v14 }
 0x117   : > { %v916_v25 = vmax.f32 %v852_v10, %v884_v18  ;;  %v1469_v30 = vpop.f32.mrb[8].mxu0  ;;  %v1485_v31 = vpop.f32.mrb[8].mxu1 }
 0x118   : > { %v898_v28 = vmax.f32 %v834_v15, %v866_v19  ;;  %v914_v29 = vmax.f32 %v850_v16, %v882_v20  ;;  %v1342_v32 = vpack.c.bf16 %v900_v23, %v899_v21  ;;  %v839_v34 = vadd.f32 %v1469_v30, %v1706_v24  ;;  %v628_v36 = vpop.f32.mrb[9].mxu0  ;;  %v692_v37 = vpop.f32.mrb[9].mxu1 }
 0x119   : > { %v1382_v33 = vpack.c.bf16 %v916_v25, %v915_v22  ;;  %v855_v35 = vadd.f32 %v1485_v31, %v1706_v24  ;;  %v837_v40 = vadd.f32 %v1706_v24, %v628_v36  ;;  %v853_v41 = vadd.f32 %v1706_v24, %v692_v37  ;;  %v1470_v42 = vpop.f32.mrb[10].mxu0  ;;  %v1486_v43 = vpop.f32.mrb[10].mxu1 }
 0x11a   : > { %v1337_v38 = vpack.c.bf16 %v898_v28, %v897_v26  ;;  %v1377_v39 = vpack.c.bf16 %v914_v29, %v913_v27  ;;  %1406 = vst [vmem:[%s1721_s9 + $0x18] sm:$0xff] %v1342_v32   ;;  %v871_v44 = vmul.f32 0.2, %v839_v34  ;;  %v840_v46 = vadd.f32 %v1470_v42, %v1706_v24  ;;  %v631_v48 = vpop.f32.mrb[11].mxu0  ;;  %v695_v49 = vpop.f32.mrb[11].mxu1 }
 0x11b   : > { %1414 = vst [vmem:[%s1721_s9 + $0x58] sm:$0xff] %v1382_v33   ;;  %v887_v45 = vmul.f32 0.2, %v855_v35  ;;  %v856_v47 = vadd.f32 %v1486_v43, %v1706_v24  ;;  %v869_v50 = vmul.f32 0.2, %v837_v40  ;;  %v838_v52 = vadd.f32 %v1706_v24, %v631_v48 }
 0x11c   : > { %1405 = vst [vmem:[%s1721_s9 + $0x10] sm:$0xff] %v1337_v38   ;;  %1413 = vst [vmem:[%s1721_s9 + $0x50] sm:$0xff] %v1377_v39   ;;  %v885_v51 = vmul.f32 0.2, %v853_v41  ;;  %v854_v53 = vadd.f32 %v1706_v24, %v695_v49  ;;  %v872_v54 = vmul.f32 0.2, %v840_v46  ;;  %v903_v58 = vmax.f32 %v839_v34, %v871_v44 }
 0x11d   : > { %v888_v55 = vmul.f32 0.2, %v856_v47  ;;  %v870_v56 = vmul.f32 0.2, %v838_v52  ;;  %v919_v59 = vmax.f32 %v855_v35, %v887_v45  ;;  %v901_v62 = vmax.f32 %v837_v40, %v869_v50 }
 0x11e   : > { %v886_v57 = vmul.f32 0.2, %v854_v53  ;;  %v904_v60 = vmax.f32 %v840_v46, %v872_v54  ;;  %v917_v63 = vmax.f32 %v853_v41, %v885_v51 }
 0x11f   : > { %v920_v61 = vmax.f32 %v856_v47, %v888_v55  ;;  %v902_v0 = vmax.f32 %v838_v52, %v870_v56  ;;  %v1473_v2 = vpop.f32.mrb[12].mxu0  ;;  %v1489_v3 = vpop.f32.mrb[12].mxu1 }
 0x120   : > { %v918_v1 = vmax.f32 %v854_v53, %v886_v57  ;;  %v1352_v4 = vpack.c.bf16 %v904_v60, %v903_v58  ;;  %v843_v6 = vadd.f32 %v1473_v2, %v1706_v24  ;;  %v859_v7 = vadd.f32 %v1489_v3, %v1706_v24  ;;  %v644_v8 = vpop.f32.mrb[13].mxu0  ;;  %v708_v9 = vpop.f32.mrb[13].mxu1 }
 0x121   : > { %v1392_v5 = vpack.c.bf16 %v920_v61, %v919_v59  ;;  %v1347_v10 = vpack.c.bf16 %v902_v0, %v901_v62  ;;  %v841_v12 = vadd.f32 %v1706_v24, %v644_v8  ;;  %v857_v13 = vadd.f32 %v1706_v24, %v708_v9  ;;  %v1474_v14 = vpop.f32.mrb[14].mxu0  ;;  %v1490_v15 = vpop.f32.mrb[14].mxu1 }
 0x122   : > { %v1387_v11 = vpack.c.bf16 %v918_v1, %v917_v63  ;;  %1408 = vst [vmem:[%s1721_s9 + $0x28] sm:$0xff] %v1352_v4   ;;  %v875_v16 = vmul.f32 0.2, %v843_v6  ;;  %v891_v17 = vmul.f32 0.2, %v859_v7  ;;  %v844_v18 = vadd.f32 %v1474_v14, %v1706_v24  ;;  %v647_v20 = vpop.f32.mrb[15].mxu0 }
 0x123   : > { %1416 = vst [vmem:[%s1721_s9 + $0x68] sm:$0xff] %v1392_v5   ;;  %v860_v19 = vadd.f32 %v1490_v15, %v1706_v24  ;;  %v711_v21 = vpop.f32.mrb[15].mxu1  ;;  %1407 = vst [vmem:[%s1721_s9 + $0x20] sm:$0xff] %v1347_v10   ;;  %v873_v22 = vmul.f32 0.2, %v841_v12  ;;  %v842_v25 = vadd.f32 %v1706_v24, %v647_v20 }
 0x124   : > { %1415 = vst [vmem:[%s1721_s9 + $0x60] sm:$0xff] %v1387_v11   ;;  %v889_v23 = vmul.f32 0.2, %v857_v13  ;;  %v858_v26 = vadd.f32 %v1706_v24, %v711_v21  ;;  %v876_v27 = vmul.f32 0.2, %v844_v18  ;;  %v907_v31 = vmax.f32 %v843_v6, %v875_v16 }
 0x125   : > { %v892_v28 = vmul.f32 0.2, %v860_v19  ;;  %v874_v29 = vmul.f32 0.2, %v842_v25  ;;  %v923_v32 = vmax.f32 %v859_v7, %v891_v17  ;;  %v905_v35 = vmax.f32 %v841_v12, %v873_v22 }
 0x126   : > { %v890_v30 = vmul.f32 0.2, %v858_v26  ;;  %v908_v33 = vmax.f32 %v844_v18, %v876_v27  ;;  %v921_v36 = vmax.f32 %v857_v13, %v889_v23 }
 0x127   : > { %v924_v34 = vmax.f32 %v860_v19, %v892_v28  ;;  %v906_v37 = vmax.f32 %v842_v25, %v874_v29 }
 0x128   : > { %v922_v38 = vmax.f32 %v858_v26, %v890_v30  ;;  %v1362_v39 = vpack.c.bf16 %v908_v33, %v907_v31 }
 0x129   : > { %v1402_v40 = vpack.c.bf16 %v924_v34, %v923_v32  ;;  %v1357_v41 = vpack.c.bf16 %v906_v37, %v905_v35 }
 0x12a   : > { %v1397_v24 = vpack.c.bf16 %v922_v38, %v921_v36  ;;  %1410 = vst [vmem:[%s1721_s9 + $0x38] sm:$0xff] %v1362_v39  }
 0x12b   : > { %1418 = vst [vmem:[%s1721_s9 + $0x78] sm:$0xff] %v1402_v40   ;;  %1409 = vst [vmem:[%s1721_s9 + $0x30] sm:$0xff] %v1357_v41  }
 0x12c   : > { %1417 = vst [vmem:[%s1721_s9 + $0x70] sm:$0xff] %v1397_v24  }
 0x12d PF: > { %s13_s16 = sadd.s32 1, %s1610_s16   ;;  %s1782_s12 = smov %s1602_s14 }
 0x12e   : > { %p10_p7 = scmp.ge.s32.totalorder %s13_s16, 8   ;;  %s1783_s13 = smov %s1606_s15 }
 0x12f   : > { %s1784_s14 = smov %s1787_s17  ;;  %s1785_s15 = smov %s1791_s18 }
 0x130   :  { %12 = sbr.rel (!%p10_p7) target bundleno = 3 (0x3), region = 76 }

// kernel: multiscale_forward.6
= control target key start
LH: loop header
LB: loop body
LE: loop exit
PB: predicated region body
PF: predicated region fallthrough
CT: control target
= control target key end

     0   :  { %s1649_s15 = smov 0   ;;  %s1651_s16 = smov 0   ;;  %s1946_s0 = inlined_call_operand.vmem [shape: bf16[2,176,256], index: 0, kind: input, shape index: {}]   ;;  %s1947_s1 = inlined_call_operand.vmem [shape: bf16[2,256,128], index: 1, kind: input, shape index: {}]   ;;  %s1948_s2 = inlined_call_operand.vmem [shape: f32[2,1,128], index: 2, kind: input, shape index: {}]   ;;  %s1949_s3 = inlined_call_operand.vmem [shape: f32[2,1,128], index: 3, kind: input, shape index: {}]   ;;  %s1950_s4 = inlined_call_operand.vmem [shape: bf16[2,176,128], index: 4, kind: output, shape index: {}]  }
   0x1   :  { %s1653_s17 = smov 0  }
   0x2 LB: > { %s33_s18 = sadd.s32 1, %s1618_s16  ;;  %p1270_p0 = scmp.ge.s32.totalorder %s1622_s17, 1  ;;  %s1622_s17 = sphi %s1653_s17, %s14_s17   ;;  %s1618_s16 = sphi %s1651_s16, %s1952_s16   ;;  %s1614_s15 = sphi %s1649_s15, %s1951_s15  }
   0x3   : > { %p35_p1 = scmp.ge.s32.totalorder %s33_s18, 2  ;;  %p238_p2 = scmp.lt.s32.totalorder %s1622_s17, 3 }
   0x5   : > { %s1954_s18 = smov (%p35_p1, %s33_s18), 0  ;;  %p239_p3 = pnand %p1270_p0, %p238_p2 }
   0x6   : > { %p296_p4 = scmp.lt.s32.totalorder (!%p239_p3), %s1614_s15, 1 }
   0x7   : > { %242 = sbr.rel (%p239_p3) target bundleno = 396 (0x18c), region = 36 }
   0xe   : > { %s1956_s15 = smov (!%p296_p4, %s1614_s15), 1 }
   0xf   : > { %s1337_s19 = sshll.u32 %s1956_s15, 7  ;;  %s1523_s23 = smul.u32 176, %s1956_s15 }
  0x10   : > { %s1673_s22 = scalar_lea.vmem %s1947_s1, %s1337_s19  ;;  %s323_s29 = scalar_lea.vmem %s1948_s2, %s1956_s15 }
  0x11   : > { %v1549_v0 = vld [vmem:[%s1673_s22 + $0x40] sm:$0xff]   ;;  %v1551_v2 = vld [vmem:[%s1673_s22 + $0x48] sm:$0xff]   ;;  %v1553_v4 = vld [vmem:[%s1673_s22 + $0x50] sm:$0xff]   ;;  %s1688_s26 = scalar_lea.vmem %s1946_s0, %s1523_s23  ;;  %s329_s6 = scalar_lea.vmem %s1949_s3, %s1956_s15 }
  0x12   : > { %v1550_v1 = vld [vmem:[%s1673_s22] sm:$0xff]   ;;  %1425 = vmatprep.subr.bf16.mxu0 %v1549_v0  ;;  %1507 = vmatprep.subr.bf16.mxu1 %v1549_v0  ;;  %v1552_v3 = vld [vmem:[%s1673_s22 + $0x8] sm:$0xff]   ;;  %v1554_v5 = vld [vmem:[%s1673_s22 + $0x10] sm:$0xff]   ;;  %s1524_s7 = smul.u32 88, %s1956_s15 }
  0x13   : > { %1426 = vmatpush3.bf16.msra.mxu0 %v1550_v1  ;;  %1515 = vmatpush3.bf16.msra.mxu1 %v1550_v1  ;;  %v1555_v6 = vld [vmem:[%s1673_s22 + $0x58] sm:$0xff]   ;;  %v1557_v8 = vld [vmem:[%s1673_s22 + $0x60] sm:$0xff]   ;;  %v1559_v10 = vld [vmem:[%s1673_s22 + $0x68] sm:$0xff]  }
  0x14   : > { %1427 = vmatprep.subr.bf16.mxu0 %v1551_v2  ;;  %1508 = vmatprep.subr.bf16.mxu1 %v1551_v2  ;;  %v1556_v7 = vld [vmem:[%s1673_s22 + $0x18] sm:$0xff]   ;;  %v1558_v9 = vld [vmem:[%s1673_s22 + $0x20] sm:$0xff]   ;;  %v1560_v12 = vld [vmem:[%s1673_s22 + $0x28] sm:$0xff]   ;;  %s337_s10 = scalar_lea.vmem %s1950_s4, %s1524_s7 }
  0x15   : > { %v1567_v11 = vld [vmem:[%s1688_s26 + $0x4] ss:$8 sps:$4 sm:$0xff]   ;;  %v1561_v13 = vld [vmem:[%s1673_s22 + $0x70] sm:$0xff]   ;;  %v1563_v16 = vld [vmem:[%s1673_s22 + $0x78] sm:$0xff]  }
  0x16   : > { %679 = vmatprep.mubr.bf16.mxu0 %v1567_v11  ;;  %v1579_v14 = vld [vmem:[%s1688_s26 + $0x64] ss:$8 sps:$4 sm:$0xff]   ;;  %v1562_v15 = vld [vmem:[%s1673_s22 + $0x30] sm:$0xff]   ;;  %v1564_v17 = vld [vmem:[%s1673_s22 + $0x38] sm:$0xff]  }
  0x17   : > { %1428 = vmatpush3.bf16.msra.mxu0 %v1552_v3  ;;  %1516 = vmatpush3.bf16.msra.mxu1 %v1552_v3  ;;  %v1565_v18 = vld [vmem:[%s1688_s26] ss:$8 sps:$4 sm:$0xff]   ;;  %v1568_v19 = vld [vmem:[%s1688_s26 + $0x14] ss:$8 sps:$4 sm:$0xff]   ;;  %v1570_v22 = vld [vmem:[%s1688_s26 + $0x10] ss:$8 sps:$4 sm:$0xff]  }
  0x18   : > { %1429 = vmatprep.subr.bf16.mxu0 %v1553_v4  ;;  %1509 = vmatprep.subr.bf16.mxu1 %v1553_v4  ;;  %v1577_v20 = vld [vmem:[%s1688_s26 + $0x60] ss:$8 sps:$4 sm:$0xff]   ;;  %v1583_v21 = vld [vmem:[%s1688_s26 + $0x74] ss:$8 sps:$4 sm:$0xff]   ;;  %v1571_v23 = vld [vmem:[%s1688_s26 + $0x24] ss:$8 sps:$4 sm:$0xff]  }
  0x19   : > { %727 = vmatprep.mubr.bf16.mxu1 %v1579_v14  ;;  %v1585_v24 = vld [vmem:[%s1688_s26 + $0x70] ss:$8 sps:$4 sm:$0xff]   ;;  %v1589_v25 = vld [vmem:[%s1688_s26 + $0x84] ss:$8 sps:$4 sm:$0xff]   ;;  %v1573_v26 = vld [vmem:[%s1688_s26 + $0x20] ss:$8 sps:$4 sm:$0xff]  }
  0x1a   : > { %v1574_v27 = vld [vmem:[%s1688_s26 + $0x34] ss:$8 sps:$4 sm:$0xff]   ;;  %v1591_v28 = vld [vmem:[%s1688_s26 + $0x80] ss:$8 sps:$4 sm:$0xff]   ;;  %v1576_v30 = vld [vmem:[%s1688_s26 + $0x30] ss:$8 sps:$4 sm:$0xff]  }
  0x1b   : > { %1430 = vmatpush3.bf16.msra.mxu0 %v1554_v5  ;;  %1517 = vmatpush3.bf16.msra.mxu1 %v1554_v5  ;;  %v1592_v29 = vld [vmem:[%s1688_s26 + $0x94] ss:$8 sps:$4 sm:$0xff]   ;;  %v1580_v31 = vld [vmem:[%s1688_s26 + $0x44] ss:$8 sps:$4 sm:$0xff]   ;;  %v1594_v32 = vld [vmem:[%s1688_s26 + $0x90] ss:$8 sps:$4 sm:$0xff]  }
  0x1c   : > { %1431 = vmatprep.subr.bf16.mxu0 %v1555_v6  ;;  %1510 = vmatprep.subr.bf16.mxu1 %v1555_v6  ;;  %v1595_v33 = vld [vmem:[%s1688_s26 + $0xa4] ss:$8 sps:$4 sm:$0xff]   ;;  %v1582_v34 = vld [vmem:[%s1688_s26 + $0x40] ss:$8 sps:$4 sm:$0xff]   ;;  %v1586_v35 = vld [vmem:[%s1688_s26 + $0x54] ss:$8 sps:$4 sm:$0xff]  }
  0x1d   : > { %v1597_v36 = vld [vmem:[%s1688_s26 + $0xa0] ss:$8 sps:$4 sm:$0xff]   ;;  %v1588_v37 = vld [vmem:[%s1688_s26 + $0x50] ss:$8 sps:$4 sm:$0xff]  }
  0x1f   : > { %1432 = vmatpush3.bf16.msra.mxu0 %v1556_v7  ;;  %1518 = vmatpush3.bf16.msra.mxu1 %v1556_v7 }
  0x20   : > { %1433 = vmatprep.subr.bf16.mxu0 %v1557_v8  ;;  %1511 = vmatprep.subr.bf16.mxu1 %v1557_v8 }
  0x23   : > { %1434 = vmatpush3.bf16.msra.mxu0 %v1558_v9  ;;  %1519 = vmatpush3.bf16.msra.mxu1 %v1558_v9 }
  0x24   : > { %1435 = vmatprep.subr.bf16.mxu0 %v1559_v10  ;;  %1512 = vmatprep.subr.bf16.mxu1 %v1559_v10 }
  0x27   : > { %1436 = vmatpush3.bf16.msra.mxu0 %v1560_v12  ;;  %1520 = vmatpush3.bf16.msra.mxu1 %v1560_v12 }
  0x28   : > { %1437 = vmatprep.subr.bf16.mxu0 %v1561_v13  ;;  %1513 = vmatprep.subr.bf16.mxu1 %v1561_v13 }
  0x2b   : > { %1438 = vmatpush3.bf16.msra.mxu0 %v1562_v15  ;;  %1521 = vmatpush3.bf16.msra.mxu1 %v1562_v15 }
  0x2c   : > { %1439 = vmatprep.subr.bf16.mxu0 %v1563_v16  ;;  %1514 = vmatprep.subr.bf16.mxu1 %v1563_v16 }
  0x2f   : > { %1440 = vmatpush3.bf16.msra.mxu0 %v1564_v17  ;;  %1522 = vmatpush3.bf16.msra.mxu1 %v1564_v17 }
  0x32   : > { %680 = vmatmul.mubr.bf16.vlgmr.msra.gmra.mrb[0].mxu0 %v1565_v18  ;;  %728 = vmatmul.mubr.bf16.vlgmr.msra.gmra.mrb[0].mxu1 %v1577_v20 }
  0x33   : > { %687 = vmatprep.mubr.bf16.mxu0 %v1568_v19  ;;  %735 = vmatprep.mubr.bf16.mxu1 %v1583_v21 }
  0x3a   : > { %688 = vmatmul.mubr.bf16.gmra.mrb[4].mxu0 %v1570_v22  ;;  %736 = vmatmul.mubr.bf16.gmra.mrb[4].mxu1 %v1585_v24 }
  0x3b   : > { %695 = vmatprep.mubr.bf16.mxu0 %v1571_v23  ;;  %743 = vmatprep.mubr.bf16.mxu1 %v1589_v25 }
  0x42   : > { %696 = vmatmul.mubr.bf16.gmra.mrb[8].mxu0 %v1573_v26  ;;  %744 = vmatmul.mubr.bf16.gmra.mrb[8].mxu1 %v1591_v28 }
  0x43   : > { %703 = vmatprep.mubr.bf16.mxu0 %v1574_v27  ;;  %751 = vmatprep.mubr.bf16.mxu1 %v1592_v29 }
  0x4a   : > { %704 = vmatmul.mubr.bf16.gmra.mrb[12].mxu0 %v1576_v30  ;;  %752 = vmatmul.mubr.bf16.gmra.mrb[12].mxu1 %v1594_v32 }
  0x4b   : > { %711 = vmatprep.mubr.bf16.mxu0 %v1580_v31  ;;  %759 = vmatprep.mubr.bf16.mxu1 %v1595_v33 }
  0x52   : > { %712 = vmatmul.mubr.bf16.gmra.mrb[16].mxu0 %v1582_v34  ;;  %760 = vmatmul.mubr.bf16.gmra.mrb[16].mxu1 %v1597_v36 }
  0x53   : > { %719 = vmatprep.mubr.bf16.mxu0 %v1586_v35 }
  0x5a   : > { %720 = vmatmul.mubr.bf16.gmra.mrb[20].mxu0 %v1588_v37 }
 0x105   : > { %v1441_v38 = vpop.f32.mrb[0].mxu0  ;;  %v1477_v40 = vpop.f32.mrb[0].mxu1 }
 0x106   : > { %v1442_v39 = vpop.f32.mrb[1].mxu0  ;;  %v1478_v43 = vpop.f32.mrb[1].mxu1 }
 0x107   : > { %v1719_v41 = vadd.f32 %v1442_v39, %v1441_v38  ;;  %v1444_v42 = vpop.f32.mrb[2].mxu0  ;;  %v1721_v45 = vadd.f32 %v1478_v43, %v1477_v40  ;;  %v1480_v46 = vpop.f32.mrb[2].mxu1 }
 0x108   : > { %v1445_v44 = vpop.f32.mrb[3].mxu0  ;;  %v1481_v48 = vpop.f32.mrb[3].mxu1 }
 0x109   : > { %v1723_v47 = vadd.f32 %v1445_v44, %v1444_v42  ;;  %v1725_v49 = vadd.f32 %v1481_v48, %v1480_v46  ;;  %v865_v2 = vmul.f32 %v1719_v41, %v1719_v41 }
 0x10b   : > { %v866_v62 = vmul.f32 %v1723_v47, %v1723_v47  ;;  %v837_v3 = vadd.f32 %v1723_v47, %v1719_v41 }
 0x10d   : > { %v1447_v50 = vpop.f32.mrb[4].mxu0  ;;  %v1483_v52 = vpop.f32.mrb[4].mxu1  ;;  %v887_v11 = vadd.f32 %v866_v62, %v865_v2 }
 0x10e   : > { %v1448_v51 = vpop.f32.mrb[5].mxu0  ;;  %v1484_v55 = vpop.f32.mrb[5].mxu1 }
 0x10f   : > { %v1727_v53 = vadd.f32 %v1448_v51, %v1447_v50  ;;  %v1450_v54 = vpop.f32.mrb[6].mxu0  ;;  %v1729_v57 = vadd.f32 %v1484_v55, %v1483_v52  ;;  %v1486_v58 = vpop.f32.mrb[6].mxu1 }
 0x110   : > { %v1451_v56 = vpop.f32.mrb[7].mxu0  ;;  %v1487_v60 = vpop.f32.mrb[7].mxu1 }
 0x111   : > { %v1731_v59 = vadd.f32 %v1451_v56, %v1450_v54  ;;  %v1733_v61 = vadd.f32 %v1487_v60, %v1486_v58  ;;  %v867_v4 = vmul.f32 %v1727_v53, %v1727_v53  ;;  %v838_v12 = vadd.f32 %v1727_v53, %v837_v3 }
 0x113   : > { %v888_v16 = vadd.f32 %v887_v11, %v867_v4  ;;  %v868_v17 = vmul.f32 %v1731_v59, %v1731_v59  ;;  %v839_v18 = vadd.f32 %v1731_v59, %v838_v12 }
 0x115   : > { %v1453_v63 = vpop.f32.mrb[8].mxu0  ;;  %v1489_v1 = vpop.f32.mrb[8].mxu1  ;;  %v889_v23 = vadd.f32 %v888_v16, %v868_v17 }
 0x116   : > { %v1454_v0 = vpop.f32.mrb[9].mxu0  ;;  %v1490_v7 = vpop.f32.mrb[9].mxu1 }
 0x117   : > { %v1743_v5 = vadd.f32 %v1454_v0, %v1453_v63  ;;  %v1456_v6 = vpop.f32.mrb[10].mxu0  ;;  %v1745_v9 = vadd.f32 %v1490_v7, %v1489_v1  ;;  %v1492_v10 = vpop.f32.mrb[10].mxu1 }
 0x118   : > { %v1457_v8 = vpop.f32.mrb[11].mxu0  ;;  %v1493_v14 = vpop.f32.mrb[11].mxu1 }
 0x119   : > { %v1748_v13 = vadd.f32 %v1457_v8, %v1456_v6  ;;  %v1750_v15 = vadd.f32 %v1493_v14, %v1492_v10  ;;  %v869_v19 = vmul.f32 %v1743_v5, %v1743_v5  ;;  %v840_v24 = vadd.f32 %v1743_v5, %v839_v18 }
 0x11b   : > { %v890_v31 = vadd.f32 %v889_v23, %v869_v19  ;;  %v870_v32 = vmul.f32 %v1748_v13, %v1748_v13  ;;  %v841_v36 = vadd.f32 %v1748_v13, %v840_v24  ;;  %v878_v24 = vmul.f32 %v1725_v49, %v1725_v49 }
 0x11d   : > { %v1459_v20 = vpop.f32.mrb[12].mxu0  ;;  %v1495_v22 = vpop.f32.mrb[12].mxu1  ;;  %v891_v38 = vadd.f32 %v890_v31, %v870_v32  ;;  %v880_v32 = vmul.f32 %v1733_v61, %v1733_v61 }
 0x11e   : > { %v1460_v21 = vpop.f32.mrb[13].mxu0  ;;  %v1496_v27 = vpop.f32.mrb[13].mxu1 }
 0x11f   : > { %v1758_v25 = vadd.f32 %v1460_v21, %v1459_v20  ;;  %v1462_v26 = vpop.f32.mrb[14].mxu0  ;;  %v1760_v29 = vadd.f32 %v1496_v27, %v1495_v22  ;;  %v1498_v30 = vpop.f32.mrb[14].mxu1  ;;  %v877_v21 = vmul.f32 %v1721_v45, %v1721_v45 }
 0x120   : > { %v1463_v28 = vpop.f32.mrb[15].mxu0  ;;  %v1499_v34 = vpop.f32.mrb[15].mxu1 }
 0x121   : > { %v1764_v33 = vadd.f32 %v1463_v28, %v1462_v26  ;;  %v1766_v35 = vadd.f32 %v1499_v34, %v1498_v30  ;;  %v871_v37 = vmul.f32 %v1758_v25, %v1758_v25  ;;  %v842_v39 = vadd.f32 %v1758_v25, %v841_v36 }
 0x122   : > { %v879_v28 = vmul.f32 %v1729_v57, %v1729_v57 }
 0x123   : > { %v892_v44 = vadd.f32 %v891_v38, %v871_v37  ;;  %v872_v46 = vmul.f32 %v1764_v33, %v1764_v33  ;;  %v843_v56 = vadd.f32 %v1764_v33, %v842_v39  ;;  %v881_v37 = vmul.f32 %v1745_v9, %v1745_v9 }
 0x125   : > { %v1465_v40 = vpop.f32.mrb[16].mxu0  ;;  %v1501_v43 = vpop.f32.mrb[16].mxu1  ;;  %v893_v0 = vadd.f32 %v892_v44, %v872_v46 }
 0x126   : > { %v1466_v42 = vpop.f32.mrb[17].mxu0  ;;  %v1502_v51 = vpop.f32.mrb[17].mxu1 }
 0x127   : > { %v1774_v48 = vadd.f32 %v1466_v42, %v1465_v40  ;;  %v1468_v50 = vpop.f32.mrb[18].mxu0  ;;  %v1776_v54 = vadd.f32 %v1502_v51, %v1501_v43  ;;  %v1504_v55 = vpop.f32.mrb[18].mxu1  ;;  %v882_v42 = vmul.f32 %v1750_v15, %v1750_v15 }
 0x128   : > { %v1469_v52 = vpop.f32.mrb[19].mxu0  ;;  %v1505_v62 = vpop.f32.mrb[19].mxu1 }
 0x129   : > { %v873_v58 = vmul.f32 %v1774_v48, %v1774_v48  ;;  %v1781_v60 = vadd.f32 %v1469_v52, %v1468_v50  ;;  %v1783_v63 = vadd.f32 %v1505_v62, %v1504_v55  ;;  %v844_v1 = vadd.f32 %v1774_v48, %v843_v56 }
 0x12a   : > { %v883_v50 = vmul.f32 %v1760_v29, %v1760_v29  ;;  %v884_v55 = vmul.f32 %v1766_v35, %v1766_v35  ;;  %v885_v56 = vmul.f32 %v1776_v54, %v1776_v54 }
 0x12b   : > { %v894_v2 = vadd.f32 %v893_v0, %v873_v58  ;;  %v874_v3 = vmul.f32 %v1781_v60, %v1781_v60  ;;  %v845_v7 = vadd.f32 %v1781_v60, %v844_v1 }
 0x12d   : > { %v1471_v4 = vpop.f32.mrb[20].mxu0  ;;  %v895_v12 = vadd.f32 %v894_v2, %v874_v3  ;;  %v886_v2 = vmul.f32 %v1783_v63, %v1783_v63 }
 0x12e   : > { %v1472_v6 = vpop.f32.mrb[21].mxu0 }
 0x12f   : > { %v1789_v8 = vadd.f32 %v1472_v6, %v1471_v4  ;;  %v1474_v10 = vpop.f32.mrb[22].mxu0 }
 0x130   : > { %v1475_v11 = vpop.f32.mrb[23].mxu0 }
 0x131   : > { %v846_v14 = vadd.f32 %v1789_v8, %v845_v7  ;;  %v875_v16 = vmul.f32 %v1789_v8, %v1789_v8  ;;  %v1794_v17 = vadd.f32 %v1475_v11, %v1474_v10 }
 0x133   : > { %v896_v18 = vadd.f32 %v895_v12, %v875_v16  ;;  %v847_v19 = vadd.f32 %v1794_v17, %v846_v14  ;;  %v876_v20 = vmul.f32 %v1794_v17, %v1794_v17 }
 0x135   : > { %v848_v22 = vadd.f32 %v1721_v45, %v847_v19  ;;  %v897_v23 = vadd.f32 %v896_v18, %v876_v20 }
 0x137   : > { %v849_v26 = vadd.f32 %v1725_v49, %v848_v22  ;;  %v898_v27 = vadd.f32 %v897_v23, %v877_v21 }
 0x139   : > { %v899_v30 = vadd.f32 %v898_v27, %v878_v24  ;;  %v850_v31 = vadd.f32 %v1729_v57, %v849_v26 }
 0x13b   : > { %v851_v34 = vadd.f32 %v1733_v61, %v850_v31  ;;  %v900_v36 = vadd.f32 %v899_v30, %v879_v28  ;;  %v926_v30 = vlaneseq }
 0x13d   : > { %v852_v38 = vadd.f32 %v1745_v9, %v851_v34  ;;  %v901_v39 = vadd.f32 %v900_v36, %v880_v32  ;;  %v927_v31 = vshrl.u32 %v926_v30, 7  ;;  %v918_v32 = vld [vmem:[%s323_s29] sm:$0x1] }
 0x13f   : > { %v853_v40 = vadd.f32 %v1750_v15, %v852_v38  ;;  %v902_v43 = vadd.f32 %v901_v39, %v881_v37  ;;  %v928_v34 = vsub.s32 0, %v927_v31  ;;  %v922_v38 = vld [vmem:[%s329_s6] sm:$0x1] }
 0x141   : > { %v903_v44 = vadd.f32 %v902_v43, %v882_v42  ;;  %v854_v46 = vadd.f32 %v1760_v29, %v853_v40 }
 0x143   : > { %v904_v51 = vadd.f32 %v903_v44, %v883_v50  ;;  %v855_v52 = vadd.f32 %v1766_v35, %v854_v46 }
 0x145   : > { %v905_v58 = vadd.f32 %v904_v51, %v884_v55  ;;  %v856_v62 = vadd.f32 %v1776_v54, %v855_v52 }
 0x147   : > { %v906_v0 = vadd.f32 %v905_v58, %v885_v56  ;;  %v857_v1 = vadd.f32 %v1783_v63, %v856_v62 }
 0x149   : > { %v858_v3 = vrot.slane %v857_v1, 4  ;;  %v907_v4 = vadd.f32 %v906_v0, %v886_v2 }
 0x14b   : > { %v859_v6 = vadd.f32 %v858_v3, %v857_v1  ;;  %v908_v7 = vrot.slane %v907_v4, 4 }
 0x14d   : > { %v860_v10 = vrot.slane %v859_v6, 2  ;;  %v909_v11 = vadd.f32 %v908_v7, %v907_v4 }
 0x14f   : > { %v861_v12 = vadd.f32 %v860_v10, %v859_v6  ;;  %v910_v14 = vrot.slane %v909_v11, 2 }
 0x151   : > { %v862_v16 = vrot.slane %v861_v12, 1  ;;  %v911_v18 = vadd.f32 %v910_v14, %v909_v11 }
 0x153   : > { %v863_v19 = vadd.f32 %v862_v16, %v861_v12  ;;  %v912_v20 = vrot.slane %v911_v18, 1 }
 0x155   : > { %v864_v21 = vmul.f32 0.0061728396, %v863_v19  ;;  %v913_v22 = vadd.f32 %v912_v20, %v911_v18 }
 0x157   : > { %v914_v23 = vmul.f32 0.0061728396, %v913_v22  ;;  %v915_v24 = vmul.f32 %v864_v21, %v864_v21 }
 0x159   : > { %v916_v26 = vsub.f32 %v914_v23, %v915_v24 }
 0x15b   : > { %v917_v27 = vmax.f32 %v916_v26, 0.0 }
 0x15d   : > { %v919_v28 = vadd.f32 1e-05, %v917_v27 }
 0x15f   : > { %1598 = vrsqrt.f32 %v919_v28 }
 0x169   : > { %v1599_v36 = vpop.eup %1598 }
 0x16a   : > { %v921_v37 = vmul.f32 %v1599_v36, %v918_v32 }
 0x16c   : > { %v923_v39 = vmul.f32 %v921_v37, %v864_v21  ;;  %v929_v40 = vrot.slane %v921_v37, %v928_v34 }
 0x16e   : > { %v924_v42 = vsub.f32 %v922_v38, %v923_v39  ;;  %v931_v43 = vmul.f32 %v1719_v41, %v929_v40  ;;  %v932_v44 = vmul.f32 %v1723_v47, %v929_v40  ;;  %v933_v46 = vmul.f32 %v1727_v53, %v929_v40 }
 0x16f   : > { %v934_v50 = vmul.f32 %v1731_v59, %v929_v40  ;;  %v935_v51 = vmul.f32 %v1743_v5, %v929_v40  ;;  %v936_v52 = vmul.f32 %v1748_v13, %v929_v40  ;;  %v941_v55 = vmul.f32 %v1789_v8, %v929_v40 }
 0x170   : > { %v942_v56 = vmul.f32 %v1794_v17, %v929_v40  ;;  %v943_v58 = vmul.f32 %v1721_v45, %v929_v40  ;;  %v944_v62 = vmul.f32 %v1725_v49, %v929_v40  ;;  %v945_v41 = vmul.f32 %v1729_v57, %v929_v40 }
 0x171   : > { %v946_v47 = vmul.f32 %v1733_v61, %v929_v40  ;;  %v947_v53 = vmul.f32 %v1745_v9, %v929_v40  ;;  %v948_v59 = vmul.f32 %v1750_v15, %v929_v40  ;;  %v949_v5 = vmul.f32 %v1760_v29, %v929_v40 }
 0x172   : > { %v950_v13 = vmul.f32 %v1766_v35, %v929_v40  ;;  %v951_v8 = vmul.f32 %v1776_v54, %v929_v40  ;;  %v952_v17 = vmul.f32 %v1783_v63, %v929_v40  ;;  %v957_v0 = vrot.slane %v924_v42, %v928_v34 }
 0x173   : > { %v937_v45 = vmul.f32 %v1758_v25, %v929_v40  ;;  %v938_v49 = vmul.f32 %v1764_v33, %v929_v40  ;;  %v939_v57 = vmul.f32 %v1774_v48, %v929_v40  ;;  %v940_v61 = vmul.f32 %v1781_v60, %v929_v40 }
 0x174   : > { %v1859_v9 = vadd.f32 %v957_v0, %v931_v43  ;;  %v1861_v15 = vadd.f32 %v957_v0, %v932_v44  ;;  %v1863_v29 = vadd.f32 %v957_v0, %v933_v46  ;;  %v1865_v35 = vadd.f32 %v957_v0, %v934_v50 }
 0x175   : > { %v1867_v54 = vadd.f32 %v957_v0, %v935_v51  ;;  %v1869_v63 = vadd.f32 %v957_v0, %v936_v52  ;;  %v1871_v25 = vadd.f32 %v957_v0, %v937_v45  ;;  %v1873_v33 = vadd.f32 %v957_v0, %v938_v49 }
 0x176   : > { %v1875_v48 = vadd.f32 %v957_v0, %v939_v57  ;;  %v1877_v60 = vadd.f32 %v957_v0, %v940_v61  ;;  %v1879_v1 = vadd.f32 %v957_v0, %v941_v55  ;;  %v1881_v2 = vadd.f32 %v957_v0, %v942_v56 }
 0x177   : > { %v1883_v3 = vadd.f32 %v957_v0, %v943_v58  ;;  %v1885_v4 = vadd.f32 %v957_v0, %v944_v62  ;;  %v1887_v6 = vadd.f32 %v957_v0, %v945_v41  ;;  %v974_v7 = vadd.f32 %v957_v0, %v946_v47 }
 0x178   : > { %v975_v10 = vadd.f32 %v957_v0, %v947_v53  ;;  %v976_v11 = vadd.f32 %v957_v0, %v948_v59  ;;  %v1889_v12 = vadd.f32 %v957_v0, %v949_v5  ;;  %v1891_v14 = vadd.f32 %v957_v0, %v950_v13 }
 0x179   : > { %v1894_v16 = vadd.f32 %v957_v0, %v951_v8  ;;  %v980_v18 = vadd.f32 %v957_v0, %v952_v17  ;;  %v981_v19 = vmul.f32 0.2, %v1859_v9  ;;  %v982_v20 = vmul.f32 0.2, %v1861_v15 }
 0x17a   : > { %v983_v21 = vmul.f32 0.2, %v1863_v29  ;;  %v984_v22 = vmul.f32 0.2, %v1865_v35  ;;  %v985_v23 = vmul.f32 0.2, %v1867_v54 }
 0x17b   : > { %v986_v24 = vmul.f32 0.2, %v1869_v63  ;;  %v987_v26 = vmul.f32 0.2, %v1871_v25  ;;  %v988_v27 = vmul.f32 0.2, %v1873_v33  ;;  %v1003_v28 = vmax.f32 %v1859_v9, %v981_v19 }
 0x17c   : > { %v989_v30 = vmul.f32 0.2, %v1875_v48  ;;  %v990_v31 = vmul.f32 0.2, %v1877_v60  ;;  %v991_v32 = vmul.f32 0.2, %v1879_v1  ;;  %v1004_v34 = vmax.f32 %v1861_v15, %v982_v20 }
 0x17d   : > { %v992_v36 = vmul.f32 0.2, %v1881_v2  ;;  %v993_v37 = vmul.f32 0.2, %v1883_v3  ;;  %v994_v38 = vmul.f32 0.2, %v1885_v4  ;;  %v1005_v39 = vmax.f32 %v1863_v29, %v983_v21 }
 0x17e   : > { %v995_v40 = vmul.f32 0.2, %v1887_v6  ;;  %v996_v42 = vmul.f32 0.2, %v974_v7  ;;  %v997_v43 = vmul.f32 0.2, %v975_v10  ;;  %v1006_v44 = vmax.f32 %v1865_v35, %v984_v22 }
 0x17f   : > { %v998_v46 = vmul.f32 0.2, %v976_v11  ;;  %v999_v50 = vmul.f32 0.2, %v1889_v12  ;;  %v1000_v51 = vmul.f32 0.2, %v1891_v14  ;;  %v1007_v52 = vmax.f32 %v1867_v54, %v985_v23 }
 0x180   : > { %v1001_v55 = vmul.f32 0.2, %v1894_v16  ;;  %v1002_v56 = vmul.f32 0.2, %v980_v18  ;;  %v1008_v58 = vmax.f32 %v1869_v63, %v986_v24  ;;  %v1009_v62 = vmax.f32 %v1871_v25, %v987_v26 }
 0x181   : > { %v1010_v41 = vmax.f32 %v1873_v33, %v988_v27  ;;  %v1011_v47 = vmax.f32 %v1875_v48, %v989_v30  ;;  %v1012_v53 = vmax.f32 %v1877_v60, %v990_v31  ;;  %v1013_v59 = vmax.f32 %v1879_v1, %v991_v32 }
 0x182   : > { %v1014_v5 = vmax.f32 %v1881_v2, %v992_v36  ;;  %v1015_v13 = vmax.f32 %v1883_v3, %v993_v37  ;;  %v1016_v8 = vmax.f32 %v1885_v4, %v994_v38  ;;  %v1017_v17 = vmax.f32 %v1887_v6, %v995_v40 }
 0x183   : > { %v1018_v0 = vmax.f32 %v974_v7, %v996_v42  ;;  %v1019_v45 = vmax.f32 %v975_v10, %v997_v43  ;;  %v1020_v49 = vmax.f32 %v976_v11, %v998_v46  ;;  %v1021_v57 = vmax.f32 %v1889_v12, %v999_v50 }
 0x184   : > { %v1022_v61 = vmax.f32 %v1891_v14, %v1000_v51  ;;  %v1023_v9 = vmax.f32 %v1894_v16, %v1001_v55  ;;  %v1024_v15 = vmax.f32 %v980_v18, %v1002_v56  ;;  %v1363_v29 = vpack.c.bf16 %v1004_v34, %v1003_v28 }
 0x185   : > { %v1368_v35 = vpack.c.bf16 %v1006_v44, %v1005_v39  ;;  %v1373_v54 = vpack.c.bf16 %v1008_v58, %v1007_v52  ;;  %v1378_v63 = vpack.c.bf16 %v1010_v41, %v1009_v62  ;;  %v1383_v25 = vpack.c.bf16 %v1012_v53, %v1011_v47 }
 0x186   : > { %1364 = vst [vmem:[%s337_s10] sm:$0xff] %v1363_v29   ;;  %v1388_v33 = vpack.c.bf16 %v1014_v5, %v1013_v59  ;;  %v1393_v48 = vpack.c.bf16 %v1016_v8, %v1015_v13  ;;  %v1398_v60 = vpack.c.bf16 %v1018_v0, %v1017_v17  ;;  %v1403_v1 = vpack.c.bf16 %v1020_v49, %v1019_v45 }
 0x187   : > { %1415 = vst [vmem:[%s337_s10 + $0x8] sm:$0xff] %v1368_v35   ;;  %1416 = vst [vmem:[%s337_s10 + $0x10] sm:$0xff] %v1373_v54   ;;  %v1408_v2 = vpack.c.bf16 %v1022_v61, %v1021_v57  ;;  %v1413_v3 = vpack.c.bf16 %v1024_v15, %v1023_v9 }
 0x188   : > { %1417 = vst [vmem:[%s337_s10 + $0x18] sm:$0xff] %v1378_v63   ;;  %1418 = vst [vmem:[%s337_s10 + $0x20] sm:$0xff] %v1383_v25  }
 0x189   : > { %1419 = vst [vmem:[%s337_s10 + $0x28] sm:$0xff] %v1388_v33   ;;  %1420 = vst [vmem:[%s337_s10 + $0x30] sm:$0xff] %v1393_v48  }
 0x18a   : > { %1421 = vst [vmem:[%s337_s10 + $0x38] sm:$0xff] %v1398_v60   ;;  %1422 = vst [vmem:[%s337_s10 + $0x40] sm:$0xff] %v1403_v1  }
 0x18b   : > { %1423 = vst [vmem:[%s337_s10 + $0x48] sm:$0xff] %v1408_v2   ;;  %1424 = vst [vmem:[%s337_s10 + $0x50] sm:$0xff] %v1413_v3  }
 0x18c PF: > { %s14_s17 = sadd.s32 1, %s1622_s17   ;;  %s1951_s15 = smov %s1618_s16 }
 0x18d   : > { %p11_p5 = scmp.ge.s32.totalorder %s14_s17, 4   ;;  %s1952_s16 = smov %s1954_s18 }
 0x18f   :  { %13 = sbr.rel (!%p11_p5) target bundleno = 2 (0x2), region = 83 }

// kernel: multiscale_forward.7
= control target key start
LH: loop header
LB: loop body
LE: loop exit
PB: predicated region body
PF: predicated region fallthrough
CT: control target
= control target key end

     0   :  { %s1443_s15 = smov 0   ;;  %s1445_s16 = smov 0   ;;  %s1574_s0 = inlined_call_operand.vmem [shape: bf16[2,64,512], index: 0, kind: input, shape index: {}]   ;;  %s1575_s1 = inlined_call_operand.vmem [shape: bf16[2,512,128], index: 1, kind: input, shape index: {}]   ;;  %s1576_s2 = inlined_call_operand.vmem [shape: f32[2,1,128], index: 2, kind: input, shape index: {}]   ;;  %s1577_s3 = inlined_call_operand.vmem [shape: f32[2,1,128], index: 3, kind: input, shape index: {}]   ;;  %s1578_s4 = inlined_call_operand.vmem [shape: bf16[2,64,128], index: 4, kind: output, shape index: {}]  }
   0x1   :  { %s1447_s17 = smov 0  }
   0x2 LB: > { %s33_s18 = sadd.s32 1, %s1412_s16  ;;  %p1133_p0 = scmp.ge.s32.totalorder %s1416_s17, 1  ;;  %s1416_s17 = sphi %s1447_s17, %s14_s17   ;;  %s1412_s16 = sphi %s1445_s16, %s1580_s16   ;;  %s1408_s15 = sphi %s1443_s15, %s1579_s15  }
   0x3   : > { %p35_p1 = scmp.ge.s32.totalorder %s33_s18, 2  ;;  %p238_p2 = scmp.lt.s32.totalorder %s1416_s17, 3 }
   0x5   : > { %s1582_s18 = smov (%p35_p1, %s33_s18), 0  ;;  %p239_p3 = pnand %p1133_p0, %p238_p2 }
   0x6   : > { %p296_p4 = scmp.lt.s32.totalorder (!%p239_p3), %s1408_s15, 1 }
   0x7   : > { %242 = sbr.rel (%p239_p3) target bundleno = 349 (0x15d), region = 36 }
   0xe   : > { %s1584_s15 = smov (!%p296_p4, %s1408_s15), 1 }
   0xf   : > { %s1199_s19 = sshll.u32 %s1584_s15, 8  ;;  %s1198_s23 = sshll.u32 %s1584_s15, 7 }
  0x10   : > { %s1467_s22 = scalar_lea.vmem %s1575_s1, %s1199_s19  ;;  %s1503_s26 = scalar_lea.vmem %s1574_s0, %s1198_s23 }
  0x11   : > { %v1336_v0 = vld [vmem:[%s1467_s22 + $0x40] sm:$0xff]   ;;  %v1340_v4 = vld [vmem:[%s1467_s22 + $0x48] sm:$0xff]   ;;  %v1344_v8 = vld [vmem:[%s1467_s22 + $0x50] sm:$0xff]   ;;  %s323_s29 = scalar_lea.vmem %s1576_s2, %s1584_s15  ;;  %s329_s6 = scalar_lea.vmem %s1577_s3, %s1584_s15 }
  0x12   : > { %v1337_v1 = vld [vmem:[%s1467_s22 + $0xc0] sm:$0xff]   ;;  %1232 = vmatprep.subr.bf16.mxu0 %v1336_v0  ;;  %v1341_v5 = vld [vmem:[%s1467_s22 + $0xc8] sm:$0xff]   ;;  %v1345_v9 = vld [vmem:[%s1467_s22 + $0xd0] sm:$0xff]   ;;  %s1200_s7 = sshll.u32 %s1584_s15, 5 }
  0x13   : > { %v1338_v2 = vld [vmem:[%s1467_s22] sm:$0xff]   ;;  %1272 = vmatprep.subr.bf16.mxu1 %v1337_v1  ;;  %v1342_v6 = vld [vmem:[%s1467_s22 + $0x8] sm:$0xff]   ;;  %v1346_v10 = vld [vmem:[%s1467_s22 + $0x10] sm:$0xff]   ;;  %s337_s10 = scalar_lea.vmem %s1578_s4, %s1200_s7 }
  0x14   : > { %v1339_v3 = vld [vmem:[%s1467_s22 + $0x80] sm:$0xff]   ;;  %1233 = vmatpush3.bf16.msra.mxu0 %v1338_v2  ;;  %v1343_v7 = vld [vmem:[%s1467_s22 + $0x88] sm:$0xff]   ;;  %v1347_v11 = vld [vmem:[%s1467_s22 + $0x90] sm:$0xff]  }
  0x15   : > { %1273 = vmatpush3.bf16.msra.mxu1 %v1339_v3  ;;  %1234 = vmatprep.subr.bf16.mxu0 %v1340_v4  ;;  %v1348_v12 = vld [vmem:[%s1467_s22 + $0x58] sm:$0xff]   ;;  %v1352_v16 = vld [vmem:[%s1467_s22 + $0x60] sm:$0xff]   ;;  %v1356_v20 = vld [vmem:[%s1467_s22 + $0x68] sm:$0xff]  }
  0x16   : > { %1274 = vmatprep.subr.bf16.mxu1 %v1341_v5  ;;  %v1349_v13 = vld [vmem:[%s1467_s22 + $0xd8] sm:$0xff]   ;;  %v1353_v17 = vld [vmem:[%s1467_s22 + $0xe0] sm:$0xff]   ;;  %v1357_v21 = vld [vmem:[%s1467_s22 + $0xe8] sm:$0xff]  }
  0x17   : > { %v1350_v14 = vld [vmem:[%s1467_s22 + $0x18] sm:$0xff]   ;;  %v1354_v18 = vld [vmem:[%s1467_s22 + $0x20] sm:$0xff]   ;;  %v1358_v22 = vld [vmem:[%s1467_s22 + $0x28] sm:$0xff]  }
  0x18   : > { %1235 = vmatpush3.bf16.msra.mxu0 %v1342_v6  ;;  %v1351_v15 = vld [vmem:[%s1467_s22 + $0x98] sm:$0xff]   ;;  %v1355_v19 = vld [vmem:[%s1467_s22 + $0xa0] sm:$0xff]   ;;  %v1359_v23 = vld [vmem:[%s1467_s22 + $0xa8] sm:$0xff]  }
  0x19   : > { %1275 = vmatpush3.bf16.msra.mxu1 %v1343_v7  ;;  %1236 = vmatprep.subr.bf16.mxu0 %v1344_v8  ;;  %v1360_v24 = vld [vmem:[%s1467_s22 + $0x70] sm:$0xff]   ;;  %v1364_v28 = vld [vmem:[%s1467_s22 + $0x78] sm:$0xff]  }
  0x1a   : > { %1276 = vmatprep.subr.bf16.mxu1 %v1345_v9  ;;  %v1361_v25 = vld [vmem:[%s1467_s22 + $0xf0] sm:$0xff]   ;;  %v1365_v29 = vld [vmem:[%s1467_s22 + $0xf8] sm:$0xff]  }
  0x1b   : > { %v1362_v26 = vld [vmem:[%s1467_s22 + $0x30] sm:$0xff]   ;;  %v1366_v30 = vld [vmem:[%s1467_s22 + $0x38] sm:$0xff]  }
  0x1c   : > { %1237 = vmatpush3.bf16.msra.mxu0 %v1346_v10  ;;  %v1363_v27 = vld [vmem:[%s1467_s22 + $0xb0] sm:$0xff]   ;;  %v1367_v31 = vld [vmem:[%s1467_s22 + $0xb8] sm:$0xff]  }
  0x1d   : > { %1277 = vmatpush3.bf16.msra.mxu1 %v1347_v11  ;;  %1238 = vmatprep.subr.bf16.mxu0 %v1348_v12  ;;  %v1368_v32 = vld [vmem:[%s1503_s26] ss:$16 sps:$4 sm:$0xff]   ;;  %v1370_v33 = vld [vmem:[%s1503_s26 + $0x4] ss:$16 sps:$4 sm:$0xff]   ;;  %v1371_v34 = vld [vmem:[%s1503_s26 + $0x8] ss:$16 sps:$4 sm:$0xff]  }
  0x1e   : > { %1278 = vmatprep.subr.bf16.mxu1 %v1349_v13  ;;  %v1373_v35 = vld [vmem:[%s1503_s26 + $0xc] ss:$16 sps:$4 sm:$0xff]   ;;  %743 = vmatprep.mubr.bf16.mxu0 %v1370_v33  ;;  %v1374_v36 = vld [vmem:[%s1503_s26 + $0x24] ss:$16 sps:$4 sm:$0xff]   ;;  %v1378_v38 = vld [vmem:[%s1503_s26 + $0x20] ss:$16 sps:$4 sm:$0xff]  }
  0x1f   : > { %808 = vmatprep.mubr.bf16.mxu1 %v1373_v35  ;;  %v1376_v37 = vld [vmem:[%s1503_s26 + $0x2c] ss:$16 sps:$4 sm:$0xff]   ;;  %v1379_v39 = vld [vmem:[%s1503_s26 + $0x28] ss:$16 sps:$4 sm:$0xff]   ;;  %v1380_v40 = vld [vmem:[%s1503_s26 + $0x44] ss:$16 sps:$4 sm:$0xff]  }
  0x20   : > { %1239 = vmatpush3.bf16.msra.mxu0 %v1350_v14  ;;  %v1382_v41 = vld [vmem:[%s1503_s26 + $0x4c] ss:$16 sps:$4 sm:$0xff]   ;;  %v1384_v42 = vld [vmem:[%s1503_s26 + $0x40] ss:$16 sps:$4 sm:$0xff]   ;;  %v1385_v43 = vld [vmem:[%s1503_s26 + $0x48] ss:$16 sps:$4 sm:$0xff]  }
  0x21   : > { %1279 = vmatpush3.bf16.msra.mxu1 %v1351_v15  ;;  %1240 = vmatprep.subr.bf16.mxu0 %v1352_v16  ;;  %v1386_v44 = vld [vmem:[%s1503_s26 + $0x64] ss:$16 sps:$4 sm:$0xff]   ;;  %v1388_v45 = vld [vmem:[%s1503_s26 + $0x6c] ss:$16 sps:$4 sm:$0xff]   ;;  %v1390_v46 = vld [vmem:[%s1503_s26 + $0x60] ss:$16 sps:$4 sm:$0xff]  }
  0x22   : > { %1280 = vmatprep.subr.bf16.mxu1 %v1353_v17  ;;  %v1391_v47 = vld [vmem:[%s1503_s26 + $0x68] ss:$16 sps:$4 sm:$0xff]  }
  0x24   : > { %1241 = vmatpush3.bf16.msra.mxu0 %v1354_v18 }
  0x25   : > { %1281 = vmatpush3.bf16.msra.mxu1 %v1355_v19  ;;  %1242 = vmatprep.subr.bf16.mxu0 %v1356_v20 }
  0x26   : > { %1282 = vmatprep.subr.bf16.mxu1 %v1357_v21 }
  0x28   : > { %1243 = vmatpush3.bf16.msra.mxu0 %v1358_v22 }
  0x29   : > { %1283 = vmatpush3.bf16.msra.mxu1 %v1359_v23  ;;  %1244 = vmatprep.subr.bf16.mxu0 %v1360_v24 }
  0x2a   : > { %1284 = vmatprep.subr.bf16.mxu1 %v1361_v25 }
  0x2c   : > { %1245 = vmatpush3.bf16.msra.mxu0 %v1362_v26 }
  0x2d   : > { %1285 = vmatpush3.bf16.msra.mxu1 %v1363_v27  ;;  %1246 = vmatprep.subr.bf16.mxu0 %v1364_v28 }
  0x2e   : > { %1286 = vmatprep.subr.bf16.mxu1 %v1365_v29 }
  0x30   : > { %1247 = vmatpush3.bf16.msra.mxu0 %v1366_v30 }
  0x31   : > { %1287 = vmatpush3.bf16.msra.mxu1 %v1367_v31 }
  0x33   : > { %744 = vmatmul.mubr.bf16.vlgmr.msra.gmra.mrb[0].mxu0 %v1368_v32 }
  0x34   : > { %809 = vmatmul.mubr.bf16.vlgmr.msra.gmra.mrb[0].mxu1 %v1371_v34  ;;  %751 = vmatprep.mubr.bf16.mxu0 %v1374_v36 }
  0x35   : > { %816 = vmatprep.mubr.bf16.mxu1 %v1376_v37 }
  0x3b   : > { %752 = vmatmul.mubr.bf16.gmra.mrb[4].mxu0 %v1378_v38 }
  0x3c   : > { %817 = vmatmul.mubr.bf16.gmra.mrb[4].mxu1 %v1379_v39  ;;  %759 = vmatprep.mubr.bf16.mxu0 %v1380_v40 }
  0x3d   : > { %824 = vmatprep.mubr.bf16.mxu1 %v1382_v41 }
  0x43   : > { %760 = vmatmul.mubr.bf16.gmra.mrb[8].mxu0 %v1384_v42 }
  0x44   : > { %825 = vmatmul.mubr.bf16.gmra.mrb[8].mxu1 %v1385_v43  ;;  %767 = vmatprep.mubr.bf16.mxu0 %v1386_v44 }
  0x45   : > { %832 = vmatprep.mubr.bf16.mxu1 %v1388_v45 }
  0x4b   : > { %768 = vmatmul.mubr.bf16.gmra.mrb[12].mxu0 %v1390_v46 }
  0x4c   : > { %833 = vmatmul.mubr.bf16.gmra.mrb[12].mxu1 %v1391_v47 }
 0x106   : > { %v1248_v48 = vpop.f32.mrb[0].mxu0 }
 0x107   : > { %v1288_v49 = vpop.f32.mrb[0].mxu1  ;;  %v1249_v50 = vpop.f32.mrb[1].mxu0 }
 0x108   : > { %v1250_v51 = vadd.f32 %v1249_v50, %v1248_v48  ;;  %v1289_v52 = vpop.f32.mrb[1].mxu1  ;;  %v1251_v53 = vpop.f32.mrb[2].mxu0 }
 0x109   : > { %v1290_v54 = vadd.f32 %v1289_v52, %v1288_v49  ;;  %v1291_v55 = vpop.f32.mrb[2].mxu1  ;;  %v1252_v56 = vpop.f32.mrb[3].mxu0 }
 0x10a   : > { %v1253_v57 = vadd.f32 %v1252_v56, %v1251_v53  ;;  %v1292_v58 = vpop.f32.mrb[3].mxu1 }
 0x10b   : > { %v1523_v59 = vadd.f32 %v1290_v54, %v1250_v51  ;;  %v1293_v60 = vadd.f32 %v1292_v58, %v1291_v55 }
 0x10d   : > { %v1525_v61 = vadd.f32 %v1293_v60, %v1253_v57  ;;  %v882_v63 = vmul.f32 %v1523_v59, %v1523_v59 }
 0x10e   : > { %v1254_v62 = vpop.f32.mrb[4].mxu0 }
 0x10f   : > { %v868_v0 = vadd.f32 %v1525_v61, %v1523_v59  ;;  %v883_v1 = vmul.f32 %v1525_v61, %v1525_v61  ;;  %v1294_v2 = vpop.f32.mrb[4].mxu1  ;;  %v1255_v3 = vpop.f32.mrb[5].mxu0 }
 0x110   : > { %v1256_v4 = vadd.f32 %v1255_v3, %v1254_v62  ;;  %v1295_v5 = vpop.f32.mrb[5].mxu1  ;;  %v1257_v6 = vpop.f32.mrb[6].mxu0 }
 0x111   : > { %v890_v7 = vadd.f32 %v883_v1, %v882_v63  ;;  %v1296_v8 = vadd.f32 %v1295_v5, %v1294_v2  ;;  %v1297_v9 = vpop.f32.mrb[6].mxu1  ;;  %v1258_v10 = vpop.f32.mrb[7].mxu0 }
 0x112   : > { %v1259_v11 = vadd.f32 %v1258_v10, %v1257_v6  ;;  %v1298_v12 = vpop.f32.mrb[7].mxu1 }
 0x113   : > { %v1533_v13 = vadd.f32 %v1296_v8, %v1256_v4  ;;  %v1299_v14 = vadd.f32 %v1298_v12, %v1297_v9 }
 0x115   : > { %v869_v15 = vadd.f32 %v868_v0, %v1533_v13  ;;  %v884_v16 = vmul.f32 %v1533_v13, %v1533_v13  ;;  %v1538_v17 = vadd.f32 %v1299_v14, %v1259_v11 }
 0x116   : > { %v1260_v18 = vpop.f32.mrb[8].mxu0 }
 0x117   : > { %v891_v19 = vadd.f32 %v890_v7, %v884_v16  ;;  %v870_v20 = vadd.f32 %v869_v15, %v1538_v17  ;;  %v885_v21 = vmul.f32 %v1538_v17, %v1538_v17  ;;  %v1300_v22 = vpop.f32.mrb[8].mxu1  ;;  %v1261_v23 = vpop.f32.mrb[9].mxu0 }
 0x118   : > { %v1262_v24 = vadd.f32 %v1261_v23, %v1260_v18  ;;  %v1301_v25 = vpop.f32.mrb[9].mxu1  ;;  %v1263_v26 = vpop.f32.mrb[10].mxu0 }
 0x119   : > { %v892_v27 = vadd.f32 %v891_v19, %v885_v21  ;;  %v1302_v28 = vadd.f32 %v1301_v25, %v1300_v22  ;;  %v1303_v29 = vpop.f32.mrb[10].mxu1  ;;  %v1264_v30 = vpop.f32.mrb[11].mxu0  ;;  %v907_v22 = vld [vmem:[%s323_s29] sm:$0x1] }
 0x11a   : > { %v1265_v31 = vadd.f32 %v1264_v30, %v1263_v26  ;;  %v1304_v32 = vpop.f32.mrb[11].mxu1  ;;  %v911_v26 = vld [vmem:[%s329_s6] sm:$0x1] }
 0x11b   : > { %v1543_v33 = vadd.f32 %v1302_v28, %v1262_v24  ;;  %v1305_v34 = vadd.f32 %v1304_v32, %v1303_v29 }
 0x11d   : > { %v871_v35 = vadd.f32 %v870_v20, %v1543_v33  ;;  %v886_v36 = vmul.f32 %v1543_v33, %v1543_v33  ;;  %v830_v37 = vadd.f32 %v1305_v34, %v1265_v31  ;;  %v915_v20 = vlaneseq }
 0x11e   : > { %v1266_v38 = vpop.f32.mrb[12].mxu0 }
 0x11f   : > { %v893_v39 = vadd.f32 %v892_v27, %v886_v36  ;;  %v872_v40 = vadd.f32 %v871_v35, %v830_v37  ;;  %v887_v41 = vmul.f32 %v830_v37, %v830_v37  ;;  %v1306_v42 = vpop.f32.mrb[12].mxu1  ;;  %v1267_v43 = vpop.f32.mrb[13].mxu0  ;;  %v916_v21 = vshrl.u32 %v915_v20, 7 }
 0x120   : > { %v1268_v44 = vadd.f32 %v1267_v43, %v1266_v38  ;;  %v1307_v45 = vpop.f32.mrb[13].mxu1  ;;  %v1269_v46 = vpop.f32.mrb[14].mxu0 }
 0x121   : > { %v894_v47 = vadd.f32 %v893_v39, %v887_v41  ;;  %v1308_v48 = vadd.f32 %v1307_v45, %v1306_v42  ;;  %v1309_v49 = vpop.f32.mrb[14].mxu1  ;;  %v1270_v50 = vpop.f32.mrb[15].mxu0  ;;  %v917_v23 = vsub.s32 0, %v916_v21 }
 0x122   : > { %v1271_v51 = vadd.f32 %v1270_v50, %v1269_v46  ;;  %v1310_v52 = vpop.f32.mrb[15].mxu1 }
 0x123   : > { %v835_v53 = vadd.f32 %v1308_v48, %v1268_v44  ;;  %v1311_v54 = vadd.f32 %v1310_v52, %v1309_v49 }
 0x125   : > { %v873_v55 = vadd.f32 %v872_v40, %v835_v53  ;;  %v888_v56 = vmul.f32 %v835_v53, %v835_v53  ;;  %v838_v57 = vadd.f32 %v1311_v54, %v1271_v51 }
 0x127   : > { %v895_v58 = vadd.f32 %v894_v47, %v888_v56  ;;  %v874_v60 = vadd.f32 %v873_v55, %v838_v57  ;;  %v889_v62 = vmul.f32 %v838_v57, %v838_v57 }
 0x129   : > { %v875_v63 = vrot.slane %v874_v60, 4  ;;  %v896_v0 = vadd.f32 %v895_v58, %v889_v62 }
 0x12b   : > { %v876_v1 = vadd.f32 %v875_v63, %v874_v60  ;;  %v897_v2 = vrot.slane %v896_v0, 4 }
 0x12d   : > { %v877_v3 = vrot.slane %v876_v1, 2  ;;  %v898_v4 = vadd.f32 %v897_v2, %v896_v0 }
 0x12f   : > { %v878_v5 = vadd.f32 %v877_v3, %v876_v1  ;;  %v899_v6 = vrot.slane %v898_v4, 2 }
 0x131   : > { %v879_v7 = vrot.slane %v878_v5, 1  ;;  %v900_v8 = vadd.f32 %v899_v6, %v898_v4 }
 0x133   : > { %v880_v9 = vadd.f32 %v879_v7, %v878_v5  ;;  %v901_v10 = vrot.slane %v900_v8, 1 }
 0x135   : > { %v881_v11 = vmul.f32 0.02, %v880_v9  ;;  %v902_v12 = vadd.f32 %v901_v10, %v900_v8 }
 0x137   : > { %v903_v14 = vmul.f32 0.02, %v902_v12  ;;  %v904_v15 = vmul.f32 %v881_v11, %v881_v11 }
 0x139   : > { %v905_v16 = vsub.f32 %v903_v14, %v904_v15 }
 0x13b   : > { %v906_v18 = vmax.f32 %v905_v16, 0.0 }
 0x13d   : > { %v908_v19 = vadd.f32 1e-05, %v906_v18 }
 0x13f   : > { %1392 = vrsqrt.f32 %v908_v19 }
 0x149   : > { %v1393_v24 = vpop.eup %1392 }
 0x14a   : > { %v910_v25 = vmul.f32 %v1393_v24, %v907_v22 }
 0x14c   : > { %v912_v27 = vmul.f32 %v910_v25, %v881_v11  ;;  %v918_v28 = vrot.slane %v910_v25, %v917_v23 }
 0x14e   : > { %v913_v29 = vsub.f32 %v911_v26, %v912_v27  ;;  %v920_v30 = vmul.f32 %v918_v28, %v1523_v59  ;;  %v921_v31 = vmul.f32 %v918_v28, %v1525_v61  ;;  %v922_v32 = vmul.f32 %v918_v28, %v1533_v13 }
 0x14f   : > { %v923_v34 = vmul.f32 %v918_v28, %v1538_v17  ;;  %v924_v35 = vmul.f32 %v918_v28, %v1543_v33  ;;  %v925_v36 = vmul.f32 %v918_v28, %v830_v37  ;;  %v926_v38 = vmul.f32 %v918_v28, %v835_v53 }
 0x150   : > { %v927_v39 = vmul.f32 %v918_v28, %v838_v57  ;;  %v932_v40 = vrot.slane %v913_v29, %v917_v23 }
 0x152   : > { %v934_v41 = vadd.f32 %v932_v40, %v920_v30  ;;  %v935_v42 = vadd.f32 %v932_v40, %v921_v31  ;;  %v936_v43 = vadd.f32 %v932_v40, %v922_v32  ;;  %v937_v44 = vadd.f32 %v932_v40, %v923_v34 }
 0x153   : > { %v938_v45 = vadd.f32 %v932_v40, %v924_v35  ;;  %v939_v46 = vadd.f32 %v932_v40, %v925_v36  ;;  %v940_v59 = vadd.f32 %v932_v40, %v926_v38  ;;  %v941_v47 = vadd.f32 %v932_v40, %v927_v39 }
 0x154   : > { %v942_v61 = vmul.f32 0.2, %v934_v41  ;;  %v943_v48 = vmul.f32 0.2, %v935_v42  ;;  %v944_v13 = vmul.f32 0.2, %v936_v43 }
 0x155   : > { %v945_v49 = vmul.f32 0.2, %v937_v44  ;;  %v946_v17 = vmul.f32 0.2, %v938_v45  ;;  %v947_v50 = vmul.f32 0.2, %v939_v46 }
 0x156   : > { %v948_v33 = vmul.f32 0.2, %v940_v59  ;;  %v949_v37 = vmul.f32 0.2, %v941_v47  ;;  %v950_v51 = vmax.f32 %v934_v41, %v942_v61  ;;  %v951_v52 = vmax.f32 %v935_v42, %v943_v48 }
 0x157   : > { %v952_v53 = vmax.f32 %v936_v43, %v944_v13  ;;  %v953_v54 = vmax.f32 %v937_v44, %v945_v49  ;;  %v954_v55 = vmax.f32 %v938_v45, %v946_v17  ;;  %v955_v56 = vmax.f32 %v939_v46, %v947_v50 }
 0x158   : > { %v956_v57 = vmax.f32 %v940_v59, %v948_v33  ;;  %v957_v58 = vmax.f32 %v941_v47, %v949_v37  ;;  %v1212_v60 = vpack.c.bf16 %v951_v52, %v950_v51 }
 0x159   : > { %v1217_v62 = vpack.c.bf16 %v953_v54, %v952_v53  ;;  %v1222_v63 = vpack.c.bf16 %v955_v56, %v954_v55 }
 0x15a   : > { %1213 = vst [vmem:[%s337_s10] sm:$0xff] %v1212_v60   ;;  %v1227_v0 = vpack.c.bf16 %v957_v58, %v956_v57 }
 0x15b   : > { %1229 = vst [vmem:[%s337_s10 + $0x8] sm:$0xff] %v1217_v62   ;;  %1230 = vst [vmem:[%s337_s10 + $0x10] sm:$0xff] %v1222_v63  }
 0x15c   : > { %1231 = vst [vmem:[%s337_s10 + $0x18] sm:$0xff] %v1227_v0  }
 0x15d PF: > { %s14_s17 = sadd.s32 1, %s1416_s17   ;;  %s1579_s15 = smov %s1412_s16 }
 0x15e   : > { %p11_p5 = scmp.ge.s32.totalorder %s14_s17, 4   ;;  %s1580_s16 = smov %s1582_s18 }
 0x160   :  { %13 = sbr.rel (!%p11_p5) target bundleno = 2 (0x2), region = 83 }

// kernel: multiscale_forward.8
= control target key start
LH: loop header
LB: loop body
LE: loop exit
PB: predicated region body
PF: predicated region fallthrough
CT: control target
= control target key end

     0   :  { %s2215_s15 = smov 0   ;;  %s2217_s16 = smov 0   ;;  %s2450_s0 = inlined_call_operand.vmem [shape: bf16[2,80,1024], index: 0, kind: input, shape index: {}]   ;;  %s2451_s1 = inlined_call_operand.vmem [shape: bf16[2,1024,128], index: 1, kind: input, shape index: {}]   ;;  %s2452_s2 = inlined_call_operand.vmem [shape: f32[2,1,128], index: 2, kind: input, shape index: {}]   ;;  %s2453_s3 = inlined_call_operand.vmem [shape: f32[2,1,128], index: 3, kind: input, shape index: {}]   ;;  %s2454_s4 = inlined_call_operand.vmem [shape: bf16[2,80,128], index: 4, kind: output, shape index: {}]  }
   0x1   :  { %s2219_s17 = smov 0  }
   0x2 LB: > { %s33_s18 = sadd.s32 1, %s2184_s16  ;;  %p1729_p0 = scmp.ge.s32.totalorder %s2188_s17, 1  ;;  %s2188_s17 = sphi %s2219_s17, %s14_s17   ;;  %s2184_s16 = sphi %s2217_s16, %s2456_s16   ;;  %s2180_s15 = sphi %s2215_s15, %s2455_s15  }
   0x3   : > { %p35_p1 = scmp.ge.s32.totalorder %s33_s18, 2  ;;  %p238_p2 = scmp.lt.s32.totalorder %s2188_s17, 3 }
   0x5   : > { %s2458_s18 = smov (%p35_p1, %s33_s18), 0  ;;  %p239_p3 = pnand %p1729_p0, %p238_p2 }
   0x6   : > { %p296_p4 = scmp.lt.s32.totalorder (!%p239_p3), %s2180_s15, 1 }
   0x7   : > { %242 = sbr.rel (%p239_p3) target bundleno = 399 (0x18f), region = 36 }
   0xe   : > { %s2460_s15 = smov (!%p296_p4, %s2180_s15), 1 }
   0xf   : > { %s1850_s19 = sshll.u32 %s2460_s15, 9  ;;  %s2074_s23 = smul.u32 320, %s2460_s15 }
  0x10   : > { %s2239_s22 = scalar_lea.vmem %s2451_s1, %s1850_s19  ;;  %s323_s29 = scalar_lea.vmem %s2452_s2, %s2460_s15 }
  0x11   : > { %v2100_v0 = vld [vmem:[%s2239_s22 + $0x40] sm:$0xff]   ;;  %v2104_v4 = vld [vmem:[%s2239_s22 + $0x48] sm:$0xff]   ;;  %v2108_v8 = vld [vmem:[%s2239_s22 + $0x50] sm:$0xff]   ;;  %s2275_s26 = scalar_lea.vmem %s2450_s0, %s2074_s23  ;;  %s329_s6 = scalar_lea.vmem %s2453_s3, %s2460_s15 }
  0x12   : > { %v2101_v1 = vld [vmem:[%s2239_s22 + $0xc0] sm:$0xff]   ;;  %1890 = vmatprep.subr.bf16.mxu0 %v2100_v0  ;;  %v2105_v5 = vld [vmem:[%s2239_s22 + $0xc8] sm:$0xff]   ;;  %v2109_v9 = vld [vmem:[%s2239_s22 + $0xd0] sm:$0xff]   ;;  %s2075_s7 = smul.u32 40, %s2460_s15 }
  0x13   : > { %v2102_v2 = vld [vmem:[%s2239_s22] sm:$0xff]   ;;  %1936 = vmatprep.subr.bf16.mxu1 %v2101_v1  ;;  %v2106_v6 = vld [vmem:[%s2239_s22 + $0x8] sm:$0xff]   ;;  %v2110_v10 = vld [vmem:[%s2239_s22 + $0x10] sm:$0xff]  }
  0x14   : > { %v2103_v3 = vld [vmem:[%s2239_s22 + $0x80] sm:$0xff]   ;;  %1891 = vmatpush3.bf16.msra.mxu0 %v2102_v2  ;;  %v2107_v7 = vld [vmem:[%s2239_s22 + $0x88] sm:$0xff]   ;;  %v2111_v11 = vld [vmem:[%s2239_s22 + $0x90] sm:$0xff]   ;;  %s337_s10 = scalar_lea.vmem %s2454_s4, %s2075_s7 }
  0x15   : > { %1937 = vmatpush3.bf16.msra.mxu1 %v2103_v3  ;;  %1892 = vmatprep.subr.bf16.mxu0 %v2104_v4  ;;  %v2112_v12 = vld [vmem:[%s2239_s22 + $0x58] sm:$0xff]   ;;  %v2116_v16 = vld [vmem:[%s2239_s22 + $0x60] sm:$0xff]   ;;  %v2120_v20 = vld [vmem:[%s2239_s22 + $0x68] sm:$0xff]  }
  0x16   : > { %1938 = vmatprep.subr.bf16.mxu1 %v2105_v5  ;;  %v2113_v13 = vld [vmem:[%s2239_s22 + $0xd8] sm:$0xff]   ;;  %v2117_v17 = vld [vmem:[%s2239_s22 + $0xe0] sm:$0xff]   ;;  %v2121_v21 = vld [vmem:[%s2239_s22 + $0xe8] sm:$0xff]  }
  0x17   : > { %v2114_v14 = vld [vmem:[%s2239_s22 + $0x18] sm:$0xff]   ;;  %v2118_v18 = vld [vmem:[%s2239_s22 + $0x20] sm:$0xff]   ;;  %v2122_v22 = vld [vmem:[%s2239_s22 + $0x28] sm:$0xff]  }
  0x18   : > { %1893 = vmatpush3.bf16.msra.mxu0 %v2106_v6  ;;  %v2115_v15 = vld [vmem:[%s2239_s22 + $0x98] sm:$0xff]   ;;  %v2119_v19 = vld [vmem:[%s2239_s22 + $0xa0] sm:$0xff]   ;;  %v2123_v23 = vld [vmem:[%s2239_s22 + $0xa8] sm:$0xff]  }
  0x19   : > { %1939 = vmatpush3.bf16.msra.mxu1 %v2107_v7  ;;  %1894 = vmatprep.subr.bf16.mxu0 %v2108_v8  ;;  %v2124_v24 = vld [vmem:[%s2239_s22 + $0x70] sm:$0xff]   ;;  %v2128_v28 = vld [vmem:[%s2239_s22 + $0x78] sm:$0xff]   ;;  %v363_v32 = vld [vmem:[%s2275_s26] sm:$0xff] }
  0x1a   : > { %1940 = vmatprep.subr.bf16.mxu1 %v2109_v9  ;;  %v2125_v25 = vld [vmem:[%s2239_s22 + $0xf0] sm:$0xff]   ;;  %v2129_v29 = vld [vmem:[%s2239_s22 + $0xf8] sm:$0xff]   ;;  %v367_v33 = vld [vmem:[%s2275_s26 + $0x20] sm:$0xff] }
  0x1b   : > { %v2126_v26 = vld [vmem:[%s2239_s22 + $0x30] sm:$0xff]   ;;  %v2130_v30 = vld [vmem:[%s2239_s22 + $0x38] sm:$0xff]   ;;  %v364_v34 = vld [vmem:[%s2275_s26 + $0x8] sm:$0xff]  ;;  %v1734_v35 = vcombine.low %v363_v32, %v367_v33  ;;  %v1735_v36 = vcombine.high %v363_v32, %v367_v33 }
  0x1c   : > { %1895 = vmatpush3.bf16.msra.mxu0 %v2110_v10  ;;  %v2127_v27 = vld [vmem:[%s2239_s22 + $0xb0] sm:$0xff]   ;;  %v2131_v31 = vld [vmem:[%s2239_s22 + $0xb8] sm:$0xff]   ;;  %v368_v37 = vld [vmem:[%s2275_s26 + $0x28] sm:$0xff] }
  0x1d   : > { %1941 = vmatpush3.bf16.msra.mxu1 %v2111_v11  ;;  %1896 = vmatprep.subr.bf16.mxu0 %v2112_v12  ;;  %v1736_v38 = vcombine.low %v364_v34, %v368_v37  ;;  %v1737_v39 = vcombine.high %v364_v34, %v368_v37  ;;  %v2132_v40 = vld [vmem:[%s2239_s22 + $0x140] sm:$0xff]   ;;  %v2136_v44 = vld [vmem:[%s2239_s22 + $0x148] sm:$0xff]   ;;  %v2140_v56 = vld [vmem:[%s2239_s22 + $0x150] sm:$0xff]  }
  0x1e   : > { %1942 = vmatprep.subr.bf16.mxu1 %v2113_v13  ;;  %1147 = vmatprep.mubr.bf16.mxu0 %v1735_v36  ;;  %v2133_v41 = vld [vmem:[%s2239_s22 + $0x100] sm:$0xff]   ;;  %v2137_v45 = vld [vmem:[%s2239_s22 + $0x108] sm:$0xff]   ;;  %v2141_v57 = vld [vmem:[%s2239_s22 + $0x110] sm:$0xff]  }
  0x1f   : > { %1220 = vmatprep.mubr.bf16.mxu1 %v1737_v39  ;;  %v2134_v42 = vld [vmem:[%s2239_s22 + $0x1c0] sm:$0xff]   ;;  %v372_v49 = vld [vmem:[%s2275_s26 + $0x48] sm:$0xff]  ;;  %v2142_v58 = vld [vmem:[%s2239_s22 + $0x1d0] sm:$0xff]  }
  0x20   : > { %1897 = vmatpush3.bf16.msra.mxu0 %v2114_v14  ;;  %v2135_v43 = vld [vmem:[%s2239_s22 + $0x180] sm:$0xff]   ;;  %v376_v50 = vld [vmem:[%s2275_s26 + $0x68] sm:$0xff]  ;;  %v2143_v59 = vld [vmem:[%s2239_s22 + $0x190] sm:$0xff]  }
  0x21   : > { %1943 = vmatpush3.bf16.msra.mxu1 %v2115_v15  ;;  %1898 = vmatprep.subr.bf16.mxu0 %v2116_v16  ;;  %v371_v46 = vld [vmem:[%s2275_s26 + $0x40] sm:$0xff]  ;;  %v1745_v52 = vcombine.high %v372_v49, %v376_v50  ;;  %v2138_v53 = vld [vmem:[%s2239_s22 + $0x1c8] sm:$0xff]   ;;  %v1744_v54 = vcombine.low %v372_v49, %v376_v50  ;;  %v2144_v2 = vld [vmem:[%s2239_s22 + $0x158] sm:$0xff]  }
  0x22   : > { %1944 = vmatprep.subr.bf16.mxu1 %v2117_v17  ;;  %v375_v47 = vld [vmem:[%s2275_s26 + $0x60] sm:$0xff]  ;;  %v2139_v55 = vld [vmem:[%s2239_s22 + $0x188] sm:$0xff]   ;;  %v2145_v5 = vld [vmem:[%s2239_s22 + $0x118] sm:$0xff]  }
  0x23   : > { %v1743_v48 = vcombine.high %v371_v46, %v375_v47  ;;  %v1742_v51 = vcombine.low %v371_v46, %v375_v47  ;;  %v379_v60 = vld [vmem:[%s2275_s26 + $0x80] sm:$0xff]  ;;  %v380_v62 = vld [vmem:[%s2275_s26 + $0x88] sm:$0xff]  ;;  %v2146_v6 = vld [vmem:[%s2239_s22 + $0x1d8] sm:$0xff]  }
  0x24   : > { %1899 = vmatpush3.bf16.msra.mxu0 %v2118_v18  ;;  %v383_v61 = vld [vmem:[%s2275_s26 + $0xa0] sm:$0xff]  ;;  %v384_v63 = vld [vmem:[%s2275_s26 + $0xa8] sm:$0xff]  ;;  %v2147_v7 = vld [vmem:[%s2239_s22 + $0x198] sm:$0xff]  }
  0x25   : > { %1945 = vmatpush3.bf16.msra.mxu1 %v2119_v19  ;;  %1900 = vmatprep.subr.bf16.mxu0 %v2120_v20  ;;  %v1751_v0 = vcombine.high %v379_v60, %v383_v61  ;;  %v1753_v1 = vcombine.high %v380_v62, %v384_v63  ;;  %v1750_v3 = vcombine.low %v379_v60, %v383_v61  ;;  %v2148_v8 = vld [vmem:[%s2239_s22 + $0x160] sm:$0xff]   ;;  %v388_v13 = vld [vmem:[%s2275_s26 + $0xc8] sm:$0xff]  ;;  %v2158_v34 = vld [vmem:[%s2239_s22 + $0x1f0] sm:$0xff]  }
  0x26   : > { %1946 = vmatprep.subr.bf16.mxu1 %v2121_v21  ;;  %v1752_v4 = vcombine.low %v380_v62, %v384_v63  ;;  %v2149_v9 = vld [vmem:[%s2239_s22 + $0x120] sm:$0xff]   ;;  %v392_v15 = vld [vmem:[%s2275_s26 + $0xe8] sm:$0xff]  ;;  %v2160_v36 = vld [vmem:[%s2239_s22 + $0x178] sm:$0xff]  }
  0x27   : > { %v2150_v10 = vld [vmem:[%s2239_s22 + $0x1e0] sm:$0xff]   ;;  %v1761_v17 = vcombine.high %v388_v13, %v392_v15  ;;  %v1760_v19 = vcombine.low %v388_v13, %v392_v15  ;;  %v2152_v20 = vld [vmem:[%s2239_s22 + $0x168] sm:$0xff]   ;;  %v2161_v37 = vld [vmem:[%s2239_s22 + $0x138] sm:$0xff]  }
  0x28   : > { %1901 = vmatpush3.bf16.msra.mxu0 %v2122_v22  ;;  %v387_v11 = vld [vmem:[%s2275_s26 + $0xc0] sm:$0xff]  ;;  %v2153_v21 = vld [vmem:[%s2239_s22 + $0x128] sm:$0xff]   ;;  %v2163_v39 = vld [vmem:[%s2239_s22 + $0x1b8] sm:$0xff]  }
  0x29   : > { %1947 = vmatpush3.bf16.msra.mxu1 %v2123_v23  ;;  %1902 = vmatprep.subr.bf16.mxu0 %v2124_v24  ;;  %v391_v12 = vld [vmem:[%s2275_s26 + $0xe0] sm:$0xff]  ;;  %v2154_v22 = vld [vmem:[%s2239_s22 + $0x1e8] sm:$0xff]   ;;  %v2156_v24 = vld [vmem:[%s2239_s22 + $0x170] sm:$0xff]  }
  0x2a   : > { %1948 = vmatprep.subr.bf16.mxu1 %v2125_v25  ;;  %v1759_v14 = vcombine.high %v387_v11, %v391_v12  ;;  %v1758_v16 = vcombine.low %v387_v11, %v391_v12  ;;  %v2151_v18 = vld [vmem:[%s2239_s22 + $0x1a0] sm:$0xff]   ;;  %v2155_v23 = vld [vmem:[%s2239_s22 + $0x1a8] sm:$0xff]   ;;  %v373_v47 = vld [vmem:[%s2275_s26 + $0x50] sm:$0xff] }
  0x2b   : > { %v395_v25 = vld [vmem:[%s2275_s26 + $0x100] sm:$0xff]  ;;  %v374_v49 = vld [vmem:[%s2275_s26 + $0x58] sm:$0xff]  ;;  %v389_v62 = vld [vmem:[%s2275_s26 + $0xd0] sm:$0xff] }
  0x2c   : > { %1903 = vmatpush3.bf16.msra.mxu0 %v2126_v26  ;;  %v399_v26 = vld [vmem:[%s2275_s26 + $0x120] sm:$0xff]  ;;  %v393_v63 = vld [vmem:[%s2275_s26 + $0xf0] sm:$0xff] }
  0x2d   : > { %1949 = vmatpush3.bf16.msra.mxu1 %v2127_v27  ;;  %1904 = vmatprep.subr.bf16.mxu0 %v2128_v28  ;;  %v1767_v27 = vcombine.high %v395_v25, %v399_v26  ;;  %v396_v28 = vld [vmem:[%s2275_s26 + $0x108] sm:$0xff]  ;;  %v1766_v32 = vcombine.low %v395_v25, %v399_v26 }
  0x2e   : > { %1950 = vmatprep.subr.bf16.mxu1 %v2129_v29  ;;  %v400_v29 = vld [vmem:[%s2275_s26 + $0x128] sm:$0xff] }
  0x2f   : > { %v1768_v33 = vcombine.low %v396_v28, %v400_v29 }
  0x30   : > { %1905 = vmatpush3.bf16.msra.mxu0 %v2130_v30  ;;  %v1769_v30 = vcombine.high %v396_v28, %v400_v29 }
  0x31   : > { %1951 = vmatpush3.bf16.msra.mxu1 %v2131_v31  ;;  %1982 = vmatprep.subr.bf16.mxu0 %v2132_v40  ;;  %v2157_v31 = vld [vmem:[%s2239_s22 + $0x130] sm:$0xff]  }
  0x32   : > { %2028 = vmatprep.subr.bf16.mxu1 %v2134_v42  ;;  %v365_v40 = vld [vmem:[%s2275_s26 + $0x10] sm:$0xff]  ;;  %v366_v42 = vld [vmem:[%s2275_s26 + $0x18] sm:$0xff] }
  0x33   : > { %1148 = vmatmul.mubr.bf16.vlgmr.msra.gmra.mrb[0].mxu0 %v1734_v35  ;;  %v2159_v35 = vld [vmem:[%s2239_s22 + $0x1b0] sm:$0xff]  }
  0x34   : > { %1221 = vmatmul.mubr.bf16.vlgmr.msra.gmra.mrb[0].mxu1 %v1736_v38  ;;  %1983 = vmatpush3.bf16.msra.mxu0 %v2133_v41  ;;  %v2162_v38 = vld [vmem:[%s2239_s22 + $0x1f8] sm:$0xff]   ;;  %v369_v41 = vld [vmem:[%s2275_s26 + $0x30] sm:$0xff] }
  0x35   : > { %2029 = vmatpush3.bf16.msra.mxu1 %v2135_v43  ;;  %1984 = vmatprep.subr.bf16.mxu0 %v2136_v44  ;;  %v370_v43 = vld [vmem:[%s2275_s26 + $0x38] sm:$0xff]  ;;  %v1738_v44 = vcombine.low %v365_v40, %v369_v41 }
  0x36   : > { %1155 = vmatprep.mubr.bf16.mxu0 %v1743_v48  ;;  %1228 = vmatprep.mubr.bf16.mxu1 %v1745_v52  ;;  %v1741_v46 = vcombine.high %v366_v42, %v370_v43  ;;  %v377_v48 = vld [vmem:[%s2275_s26 + $0x70] sm:$0xff]  ;;  %v1740_v50 = vcombine.low %v366_v42, %v370_v43  ;;  %v378_v52 = vld [vmem:[%s2275_s26 + $0x78] sm:$0xff] }
  0x37   : > { %2030 = vmatprep.subr.bf16.mxu1 %v2138_v53  ;;  %v1749_v53 = vcombine.high %v374_v49, %v378_v52 }
  0x38   : > { %1985 = vmatpush3.bf16.msra.mxu0 %v2137_v45  ;;  %v1739_v45 = vcombine.high %v365_v40, %v369_v41 }
  0x39   : > { %2031 = vmatpush3.bf16.msra.mxu1 %v2139_v55  ;;  %1986 = vmatprep.subr.bf16.mxu0 %v2140_v56  ;;  %v385_v55 = vld [vmem:[%s2275_s26 + $0xb0] sm:$0xff]  ;;  %v382_v56 = vld [vmem:[%s2275_s26 + $0x98] sm:$0xff] }
  0x3a   : > { %2032 = vmatprep.subr.bf16.mxu1 %v2142_v58  ;;  %v1746_v58 = vcombine.low %v373_v47, %v377_v48 }
  0x3b   : > { %1156 = vmatmul.mubr.bf16.gmra.mrb[4].mxu0 %v1742_v51  ;;  %v1747_v51 = vcombine.high %v373_v47, %v377_v48 }
  0x3c   : > { %1229 = vmatmul.mubr.bf16.gmra.mrb[4].mxu1 %v1744_v54  ;;  %1987 = vmatpush3.bf16.msra.mxu0 %v2141_v57  ;;  %v381_v54 = vld [vmem:[%s2275_s26 + $0x90] sm:$0xff]  ;;  %v386_v57 = vld [vmem:[%s2275_s26 + $0xb8] sm:$0xff] }
  0x3d   : > { %2033 = vmatpush3.bf16.msra.mxu1 %v2143_v59  ;;  %1163 = vmatprep.mubr.bf16.mxu0 %v1751_v0  ;;  %v1748_v59 = vcombine.low %v374_v49, %v378_v52  ;;  %v1755_v60 = vcombine.high %v381_v54, %v385_v55  ;;  %v1757_v61 = vcombine.high %v382_v56, %v386_v57  ;;  %v390_v0 = vld [vmem:[%s2275_s26 + $0xd8] sm:$0xff] }
  0x3e   : > { %1236 = vmatprep.mubr.bf16.mxu1 %v1753_v1  ;;  %1988 = vmatprep.subr.bf16.mxu0 %v2144_v2  ;;  %v394_v1 = vld [vmem:[%s2275_s26 + $0xf8] sm:$0xff]  ;;  %v1754_v2 = vcombine.low %v381_v54, %v385_v55 }
  0x3f   : > { %2034 = vmatprep.subr.bf16.mxu1 %v2146_v6  ;;  %v397_v6 = vld [vmem:[%s2275_s26 + $0x110] sm:$0xff]  ;;  %v1764_v11 = vcombine.low %v390_v0, %v394_v1 }
  0x40   : > { %1989 = vmatpush3.bf16.msra.mxu0 %v2145_v5  ;;  %v1765_v5 = vcombine.high %v390_v0, %v394_v1 }
  0x41   : > { %2035 = vmatpush3.bf16.msra.mxu1 %v2147_v7  ;;  %1990 = vmatprep.subr.bf16.mxu0 %v2148_v8  ;;  %v401_v7 = vld [vmem:[%s2275_s26 + $0x130] sm:$0xff]  ;;  %v398_v8 = vld [vmem:[%s2275_s26 + $0x118] sm:$0xff] }
  0x42   : > { %2036 = vmatprep.subr.bf16.mxu1 %v2150_v10  ;;  %v1762_v10 = vcombine.low %v389_v62, %v393_v63  ;;  %v1771_v12 = vcombine.high %v397_v6, %v401_v7 }
  0x43   : > { %1164 = vmatmul.mubr.bf16.gmra.mrb[8].mxu0 %v1750_v3  ;;  %v1756_v3 = vcombine.low %v382_v56, %v386_v57 }
  0x44   : > { %1237 = vmatmul.mubr.bf16.gmra.mrb[8].mxu1 %v1752_v4  ;;  %1991 = vmatpush3.bf16.msra.mxu0 %v2149_v9  ;;  %v1763_v4 = vcombine.high %v389_v62, %v393_v63  ;;  %v402_v9 = vld [vmem:[%s2275_s26 + $0x138] sm:$0xff] }
  0x45   : > { %1171 = vmatprep.mubr.bf16.mxu0 %v1759_v14  ;;  %1244 = vmatprep.mubr.bf16.mxu1 %v1761_v17  ;;  %v1773_v13 = vcombine.high %v398_v8, %v402_v9  ;;  %v1770_v14 = vcombine.low %v397_v6, %v401_v7  ;;  %v1772_v15 = vcombine.low %v398_v8, %v402_v9 }
  0x46   : > { %2037 = vmatpush3.bf16.msra.mxu1 %v2151_v18  ;;  %1992 = vmatprep.subr.bf16.mxu0 %v2152_v20 }
  0x47   : > { %2038 = vmatprep.subr.bf16.mxu1 %v2154_v22 }
  0x48   : > { %1993 = vmatpush3.bf16.msra.mxu0 %v2153_v21 }
  0x49   : > { %1994 = vmatprep.subr.bf16.mxu0 %v2156_v24 }
  0x4a   : > { %2039 = vmatpush3.bf16.msra.mxu1 %v2155_v23 }
  0x4b   : > { %1172 = vmatmul.mubr.bf16.gmra.mrb[12].mxu0 %v1758_v16  ;;  %2040 = vmatprep.subr.bf16.mxu1 %v2158_v34 }
  0x4c   : > { %1245 = vmatmul.mubr.bf16.gmra.mrb[12].mxu1 %v1760_v19  ;;  %1179 = vmatprep.mubr.bf16.mxu0 %v1767_v27 }
  0x4d   : > { %1252 = vmatprep.mubr.bf16.mxu1 %v1769_v30  ;;  %1995 = vmatpush3.bf16.msra.mxu0 %v2157_v31 }
  0x4e   : > { %2041 = vmatpush3.bf16.msra.mxu1 %v2159_v35  ;;  %1996 = vmatprep.subr.bf16.mxu0 %v2160_v36 }
  0x4f   : > { %2042 = vmatprep.subr.bf16.mxu1 %v2162_v38 }
  0x51   : > { %1997 = vmatpush3.bf16.msra.mxu0 %v2161_v37 }
  0x52   : > { %2043 = vmatpush3.bf16.msra.mxu1 %v2163_v39 }
  0x53   : > { %1180 = vmatmul.mubr.bf16.gmra.mrb[16].mxu0 %v1766_v32 }
  0x54   : > { %1253 = vmatmul.mubr.bf16.gmra.mrb[16].mxu1 %v1768_v33  ;;  %1293 = vmatprep.mubr.bf16.mxu0 %v1739_v45 }
  0x55   : > { %1366 = vmatprep.mubr.bf16.mxu1 %v1741_v46 }
  0x5b   : > { %1294 = vmatmul.mubr.bf16.vlgmr.msra.gmra.mrb[20].mxu0 %v1738_v44 }
  0x5c   : > { %1367 = vmatmul.mubr.bf16.vlgmr.msra.gmra.mrb[20].mxu1 %v1740_v50  ;;  %1301 = vmatprep.mubr.bf16.mxu0 %v1747_v51 }
  0x5d   : > { %1374 = vmatprep.mubr.bf16.mxu1 %v1749_v53 }
  0x63   : > { %1302 = vmatmul.mubr.bf16.gmra.mrb[24].mxu0 %v1746_v58 }
  0x64   : > { %1375 = vmatmul.mubr.bf16.gmra.mrb[24].mxu1 %v1748_v59  ;;  %1309 = vmatprep.mubr.bf16.mxu0 %v1755_v60 }
  0x65   : > { %1382 = vmatprep.mubr.bf16.mxu1 %v1757_v61 }
  0x6b   : > { %1310 = vmatmul.mubr.bf16.gmra.mrb[28].mxu0 %v1754_v2 }
  0x6c   : > { %1383 = vmatmul.mubr.bf16.gmra.mrb[28].mxu1 %v1756_v3  ;;  %1317 = vmatprep.mubr.bf16.mxu0 %v1763_v4 }
  0x6d   : > { %1390 = vmatprep.mubr.bf16.mxu1 %v1765_v5 }
  0x73   : > { %1318 = vmatmul.mubr.bf16.gmra.mrb[32].mxu0 %v1762_v10 }
  0x74   : > { %1391 = vmatmul.mubr.bf16.gmra.mrb[32].mxu1 %v1764_v11  ;;  %1325 = vmatprep.mubr.bf16.mxu0 %v1771_v12 }
  0x75   : > { %1398 = vmatprep.mubr.bf16.mxu1 %v1773_v13 }
  0x7b   : > { %1326 = vmatmul.mubr.bf16.gmra.mrb[36].mxu0 %v1770_v14 }
  0x7c   : > { %1399 = vmatmul.mubr.bf16.gmra.mrb[36].mxu1 %v1772_v15 }
 0x106   : > { %v1906_v16 = vpop.f32.mrb[0].mxu0 }
 0x107   : > { %v1952_v17 = vpop.f32.mrb[0].mxu1  ;;  %v1907_v18 = vpop.f32.mrb[1].mxu0 }
 0x108   : > { %v1908_v19 = vadd.f32 %v1907_v18, %v1906_v16  ;;  %v1953_v20 = vpop.f32.mrb[1].mxu1  ;;  %v1909_v21 = vpop.f32.mrb[2].mxu0 }
 0x109   : > { %v1954_v22 = vadd.f32 %v1953_v20, %v1952_v17  ;;  %v1955_v23 = vpop.f32.mrb[2].mxu1  ;;  %v1910_v24 = vpop.f32.mrb[3].mxu0 }
 0x10a   : > { %v1911_v25 = vadd.f32 %v1910_v24, %v1909_v21  ;;  %v1956_v26 = vpop.f32.mrb[3].mxu1 }
 0x10b   : > { %v2351_v27 = vadd.f32 %v1954_v22, %v1908_v19  ;;  %v1957_v28 = vadd.f32 %v1956_v26, %v1955_v23 }
 0x10d   : > { %v2353_v29 = vadd.f32 %v1957_v28, %v1911_v25 }
 0x10e   : > { %v1912_v30 = vpop.f32.mrb[4].mxu0 }
 0x10f   : > { %v1958_v31 = vpop.f32.mrb[4].mxu1  ;;  %v1913_v32 = vpop.f32.mrb[5].mxu0 }
 0x110   : > { %v1914_v33 = vadd.f32 %v1913_v32, %v1912_v30  ;;  %v1959_v34 = vpop.f32.mrb[5].mxu1  ;;  %v1915_v35 = vpop.f32.mrb[6].mxu0 }
 0x111   : > { %v1960_v36 = vadd.f32 %v1959_v34, %v1958_v31  ;;  %v1961_v37 = vpop.f32.mrb[6].mxu1  ;;  %v1916_v38 = vpop.f32.mrb[7].mxu0 }
 0x112   : > { %v1917_v39 = vadd.f32 %v1916_v38, %v1915_v35  ;;  %v1962_v40 = vpop.f32.mrb[7].mxu1 }
 0x113   : > { %v2355_v41 = vadd.f32 %v1960_v36, %v1914_v33  ;;  %v1963_v42 = vadd.f32 %v1962_v40, %v1961_v37 }
 0x115   : > { %v2357_v43 = vadd.f32 %v1963_v42, %v1917_v39 }
 0x116   : > { %v1918_v44 = vpop.f32.mrb[8].mxu0 }
 0x117   : > { %v1964_v45 = vpop.f32.mrb[8].mxu1  ;;  %v1919_v46 = vpop.f32.mrb[9].mxu0 }
 0x118   : > { %v1920_v47 = vadd.f32 %v1919_v46, %v1918_v44  ;;  %v1965_v48 = vpop.f32.mrb[9].mxu1  ;;  %v1921_v49 = vpop.f32.mrb[10].mxu0 }
 0x119   : > { %v1966_v50 = vadd.f32 %v1965_v48, %v1964_v45  ;;  %v1967_v51 = vpop.f32.mrb[10].mxu1  ;;  %v1922_v52 = vpop.f32.mrb[11].mxu0 }
 0x11a   : > { %v1923_v53 = vadd.f32 %v1922_v52, %v1921_v49  ;;  %v1968_v54 = vpop.f32.mrb[11].mxu1 }
 0x11b   : > { %v2359_v55 = vadd.f32 %v1966_v50, %v1920_v47  ;;  %v1969_v56 = vadd.f32 %v1968_v54, %v1967_v51 }
 0x11d   : > { %v2361_v57 = vadd.f32 %v1969_v56, %v1923_v53 }
 0x11e   : > { %v1924_v58 = vpop.f32.mrb[12].mxu0 }
 0x11f   : > { %v1970_v59 = vpop.f32.mrb[12].mxu1  ;;  %v1925_v60 = vpop.f32.mrb[13].mxu0 }
 0x120   : > { %v1926_v61 = vadd.f32 %v1925_v60, %v1924_v58  ;;  %v1971_v62 = vpop.f32.mrb[13].mxu1  ;;  %v1927_v63 = vpop.f32.mrb[14].mxu0 }
 0x121   : > { %v1972_v0 = vadd.f32 %v1971_v62, %v1970_v59  ;;  %v1973_v1 = vpop.f32.mrb[14].mxu1  ;;  %v1928_v2 = vpop.f32.mrb[15].mxu0 }
 0x122   : > { %v1929_v3 = vadd.f32 %v1928_v2, %v1927_v63  ;;  %v1974_v4 = vpop.f32.mrb[15].mxu1 }
 0x123   : > { %v2363_v5 = vadd.f32 %v1972_v0, %v1926_v61  ;;  %v1975_v6 = vadd.f32 %v1974_v4, %v1973_v1 }
 0x125   : > { %v2365_v7 = vadd.f32 %v1975_v6, %v1929_v3 }
 0x126   : > { %v1930_v8 = vpop.f32.mrb[16].mxu0 }
 0x127   : > { %v1976_v9 = vpop.f32.mrb[16].mxu1  ;;  %v1931_v10 = vpop.f32.mrb[17].mxu0 }
 0x128   : > { %v1932_v11 = vadd.f32 %v1931_v10, %v1930_v8  ;;  %v1977_v12 = vpop.f32.mrb[17].mxu1  ;;  %v1933_v13 = vpop.f32.mrb[18].mxu0 }
 0x129   : > { %v1978_v14 = vadd.f32 %v1977_v12, %v1976_v9  ;;  %v1979_v15 = vpop.f32.mrb[18].mxu1  ;;  %v1934_v16 = vpop.f32.mrb[19].mxu0 }
 0x12a   : > { %v1935_v17 = vadd.f32 %v1934_v16, %v1933_v13  ;;  %v1980_v18 = vpop.f32.mrb[19].mxu1 }
 0x12b   : > { %v2367_v19 = vadd.f32 %v1978_v14, %v1932_v11  ;;  %v1981_v20 = vadd.f32 %v1980_v18, %v1979_v15 }
 0x12d   : > { %v2369_v21 = vadd.f32 %v1981_v20, %v1935_v17 }
 0x12e   : > { %v1998_v22 = vpop.f32.mrb[20].mxu0 }
 0x12f   : > { %v2044_v23 = vpop.f32.mrb[20].mxu1  ;;  %v1999_v24 = vpop.f32.mrb[21].mxu0 }
 0x130   : > { %v2000_v25 = vadd.f32 %v1999_v24, %v1998_v22  ;;  %v2045_v26 = vpop.f32.mrb[21].mxu1  ;;  %v2001_v28 = vpop.f32.mrb[22].mxu0 }
 0x131   : > { %v2046_v30 = vadd.f32 %v2045_v26, %v2044_v23  ;;  %v2047_v31 = vpop.f32.mrb[22].mxu1  ;;  %v2002_v32 = vpop.f32.mrb[23].mxu0 }
 0x132   : > { %v1296_v33 = vadd.f32 %v2000_v25, %v2351_v27  ;;  %v2003_v34 = vadd.f32 %v2002_v32, %v2001_v28  ;;  %v2048_v35 = vpop.f32.mrb[23].mxu1 }
 0x133   : > { %v2049_v36 = vadd.f32 %v2048_v35, %v2047_v31 }
 0x134   : > { %v2372_v37 = vadd.f32 %v2046_v30, %v1296_v33  ;;  %v1299_v38 = vadd.f32 %v2003_v34, %v2353_v29 }
 0x136   : > { %v2375_v39 = vadd.f32 %v2049_v36, %v1299_v38  ;;  %v2004_v40 = vpop.f32.mrb[24].mxu0  ;;  %v1456_v45 = vmul.f32 %v2372_v37, %v2372_v37 }
 0x137   : > { %v2050_v42 = vpop.f32.mrb[24].mxu1  ;;  %v2005_v44 = vpop.f32.mrb[25].mxu0 }
 0x138   : > { %v1440_v46 = vadd.f32 %v2375_v39, %v2372_v37  ;;  %v1457_v27 = vmul.f32 %v2375_v39, %v2375_v39  ;;  %v2006_v47 = vadd.f32 %v2005_v44, %v2004_v40  ;;  %v2051_v48 = vpop.f32.mrb[25].mxu1  ;;  %v2007_v49 = vpop.f32.mrb[26].mxu0 }
 0x139   : > { %v2052_v50 = vadd.f32 %v2051_v48, %v2050_v42  ;;  %v2053_v51 = vpop.f32.mrb[26].mxu1  ;;  %v2008_v29 = vpop.f32.mrb[27].mxu0 }
 0x13a   : > { %v1466_v52 = vadd.f32 %v1457_v27, %v1456_v45  ;;  %v1304_v53 = vadd.f32 %v2006_v47, %v2355_v41  ;;  %v2009_v54 = vadd.f32 %v2008_v29, %v2007_v49  ;;  %v2054_v56 = vpop.f32.mrb[27].mxu1 }
 0x13b   : > { %v2055_v58 = vadd.f32 %v2054_v56, %v2053_v51 }
 0x13c   : > { %v2384_v59 = vadd.f32 %v2052_v50, %v1304_v53  ;;  %v1307_v60 = vadd.f32 %v2009_v54, %v2357_v43 }
 0x13e   : > { %v1441_v61 = vadd.f32 %v1440_v46, %v2384_v59  ;;  %v1458_v62 = vmul.f32 %v2384_v59, %v2384_v59  ;;  %v2390_v63 = vadd.f32 %v2055_v58, %v1307_v60  ;;  %v2010_v0 = vpop.f32.mrb[28].mxu0 }
 0x13f   : > { %v2056_v1 = vpop.f32.mrb[28].mxu1  ;;  %v2011_v2 = vpop.f32.mrb[29].mxu0 }
 0x140   : > { %v1467_v3 = vadd.f32 %v1466_v52, %v1458_v62  ;;  %v1442_v41 = vadd.f32 %v1441_v61, %v2390_v63  ;;  %v1459_v4 = vmul.f32 %v2390_v63, %v2390_v63  ;;  %v2012_v6 = vadd.f32 %v2011_v2, %v2010_v0  ;;  %v2057_v8 = vpop.f32.mrb[29].mxu1  ;;  %v2013_v9 = vpop.f32.mrb[30].mxu0 }
 0x141   : > { %v2058_v43 = vadd.f32 %v2057_v8, %v2056_v1  ;;  %v2059_v10 = vpop.f32.mrb[30].mxu1  ;;  %v2014_v11 = vpop.f32.mrb[31].mxu0 }
 0x142   : > { %v1468_v12 = vadd.f32 %v1467_v3, %v1459_v4  ;;  %v1312_v13 = vadd.f32 %v2012_v6, %v2359_v55  ;;  %v2015_v14 = vadd.f32 %v2014_v11, %v2013_v9  ;;  %v2060_v15 = vpop.f32.mrb[31].mxu1 }
 0x143   : > { %v2061_v16 = vadd.f32 %v2060_v15, %v2059_v10 }
 0x144   : > { %v2396_v17 = vadd.f32 %v2058_v43, %v1312_v13  ;;  %v1315_v18 = vadd.f32 %v2015_v14, %v2361_v57 }
 0x146   : > { %v1443_v20 = vadd.f32 %v1442_v41, %v2396_v17  ;;  %v1460_v22 = vmul.f32 %v2396_v17, %v2396_v17  ;;  %v2402_v23 = vadd.f32 %v2061_v16, %v1315_v18  ;;  %v2016_v24 = vpop.f32.mrb[32].mxu0 }
 0x147   : > { %v2062_v25 = vpop.f32.mrb[32].mxu1  ;;  %v2017_v26 = vpop.f32.mrb[33].mxu0 }
 0x148   : > { %v1469_v28 = vadd.f32 %v1468_v12, %v1460_v22  ;;  %v1444_v55 = vadd.f32 %v1443_v20, %v2402_v23  ;;  %v1461_v30 = vmul.f32 %v2402_v23, %v2402_v23  ;;  %v2018_v31 = vadd.f32 %v2017_v26, %v2016_v24  ;;  %v2063_v32 = vpop.f32.mrb[33].mxu1  ;;  %v2019_v33 = vpop.f32.mrb[34].mxu0 }
 0x149   : > { %v2064_v57 = vadd.f32 %v2063_v32, %v2062_v25  ;;  %v2065_v34 = vpop.f32.mrb[34].mxu1  ;;  %v2020_v35 = vpop.f32.mrb[35].mxu0 }
 0x14a   : > { %v1470_v36 = vadd.f32 %v1469_v28, %v1461_v30  ;;  %v1320_v38 = vadd.f32 %v2018_v31, %v2363_v5  ;;  %v2021_v40 = vadd.f32 %v2020_v35, %v2019_v33  ;;  %v2066_v42 = vpop.f32.mrb[35].mxu1  ;;  %v1493_v33 = vlaneseq }
 0x14b   : > { %v2067_v44 = vadd.f32 %v2066_v42, %v2065_v34  ;;  %v1485_v34 = vld [vmem:[%s323_s29] sm:$0x1] }
 0x14c   : > { %v2408_v45 = vadd.f32 %v2064_v57, %v1320_v38  ;;  %v1323_v46 = vadd.f32 %v2021_v40, %v2365_v7  ;;  %v1494_v57 = vshrl.u32 %v1493_v33, 7  ;;  %v1489_v40 = vld [vmem:[%s329_s6] sm:$0x1] }
 0x14e   : > { %v1445_v27 = vadd.f32 %v1444_v55, %v2408_v45  ;;  %v1462_v47 = vmul.f32 %v2408_v45, %v2408_v45  ;;  %v2414_v48 = vadd.f32 %v2067_v44, %v1323_v46  ;;  %v2022_v49 = vpop.f32.mrb[36].mxu0  ;;  %v1495_v35 = vsub.s32 0, %v1494_v57 }
 0x14f   : > { %v2068_v50 = vpop.f32.mrb[36].mxu1  ;;  %v2023_v51 = vpop.f32.mrb[37].mxu0 }
 0x150   : > { %v1471_v29 = vadd.f32 %v1470_v36, %v1462_v47  ;;  %v1446_v5 = vadd.f32 %v1445_v27, %v2414_v48  ;;  %v1463_v52 = vmul.f32 %v2414_v48, %v2414_v48  ;;  %v2024_v53 = vadd.f32 %v2023_v51, %v2022_v49  ;;  %v2069_v54 = vpop.f32.mrb[37].mxu1  ;;  %v2025_v56 = vpop.f32.mrb[38].mxu0 }
 0x151   : > { %v2070_v7 = vadd.f32 %v2069_v54, %v2068_v50  ;;  %v2071_v58 = vpop.f32.mrb[38].mxu1  ;;  %v2026_v60 = vpop.f32.mrb[39].mxu0 }
 0x152   : > { %v1472_v61 = vadd.f32 %v1471_v29, %v1463_v52  ;;  %v1328_v62 = vadd.f32 %v2024_v53, %v2367_v19  ;;  %v2027_v0 = vadd.f32 %v2026_v60, %v2025_v56  ;;  %v2072_v1 = vpop.f32.mrb[39].mxu1 }
 0x153   : > { %v2073_v2 = vadd.f32 %v2072_v1, %v2071_v58 }
 0x154   : > { %v1401_v3 = vadd.f32 %v2070_v7, %v1328_v62  ;;  %v1331_v41 = vadd.f32 %v2027_v0, %v2369_v21 }
 0x156   : > { %v1447_v4 = vadd.f32 %v1446_v5, %v1401_v3  ;;  %v1464_v6 = vmul.f32 %v1401_v3, %v1401_v3  ;;  %v1404_v8 = vadd.f32 %v2073_v2, %v1331_v41 }
 0x158   : > { %v1473_v9 = vadd.f32 %v1472_v61, %v1464_v6  ;;  %v1448_v43 = vadd.f32 %v1447_v4, %v1404_v8  ;;  %v1465_v10 = vmul.f32 %v1404_v8, %v1404_v8 }
 0x15a   : > { %v1449_v11 = vrot.slane %v1448_v43, 4  ;;  %v1474_v12 = vadd.f32 %v1473_v9, %v1465_v10 }
 0x15c   : > { %v1450_v13 = vadd.f32 %v1449_v11, %v1448_v43  ;;  %v1475_v14 = vrot.slane %v1474_v12, 4 }
 0x15e   : > { %v1451_v15 = vrot.slane %v1450_v13, 2  ;;  %v1476_v16 = vadd.f32 %v1475_v14, %v1474_v12 }
 0x160   : > { %v1452_v19 = vadd.f32 %v1451_v15, %v1450_v13  ;;  %v1477_v18 = vrot.slane %v1476_v16, 2 }
 0x162   : > { %v1453_v20 = vrot.slane %v1452_v19, 1  ;;  %v1478_v22 = vadd.f32 %v1477_v18, %v1476_v16 }
 0x164   : > { %v1454_v24 = vadd.f32 %v1453_v20, %v1452_v19  ;;  %v1479_v21 = vrot.slane %v1478_v22, 1 }
 0x166   : > { %v1455_v25 = vmul.f32 0.013888889, %v1454_v24  ;;  %v1480_v26 = vadd.f32 %v1479_v21, %v1478_v22 }
 0x168   : > { %v1481_v28 = vmul.f32 0.013888889, %v1480_v26  ;;  %v1482_v55 = vmul.f32 %v1455_v25, %v1455_v25 }
 0x16a   : > { %v1483_v30 = vsub.f32 %v1481_v28, %v1482_v55 }
 0x16c   : > { %v1484_v31 = vmax.f32 %v1483_v30, 0.0 }
 0x16e   : > { %v1486_v32 = vadd.f32 1e-05, %v1484_v31 }
 0x170   : > { %2164 = vrsqrt.f32 %v1486_v32 }
 0x17a   : > { %v2165_v36 = vpop.eup %2164 }
 0x17b   : > { %v1488_v38 = vmul.f32 %v2165_v36, %v1485_v34 }
 0x17d   : > { %v1490_v42 = vmul.f32 %v1488_v38, %v1455_v25  ;;  %v1496_v44 = vrot.slane %v1488_v38, %v1495_v35 }
 0x17f   : > { %v1491_v46 = vsub.f32 %v1489_v40, %v1490_v42  ;;  %v1498_v27 = vmul.f32 %v1496_v44, %v2372_v37  ;;  %v1499_v47 = vmul.f32 %v1496_v44, %v2375_v39  ;;  %v1500_v49 = vmul.f32 %v1496_v44, %v2384_v59 }
 0x180   : > { %v1501_v50 = vmul.f32 %v1496_v44, %v2390_v63  ;;  %v1502_v51 = vmul.f32 %v1496_v44, %v2396_v17  ;;  %v1503_v29 = vmul.f32 %v1496_v44, %v2402_v23  ;;  %v1504_v5 = vmul.f32 %v1496_v44, %v2408_v45 }
 0x181   : > { %v1505_v52 = vmul.f32 %v1496_v44, %v2414_v48  ;;  %v1506_v53 = vmul.f32 %v1496_v44, %v1401_v3  ;;  %v1507_v54 = vmul.f32 %v1496_v44, %v1404_v8  ;;  %v1512_v56 = vrot.slane %v1491_v46, %v1495_v35 }
 0x183   : > { %v1514_v7 = vadd.f32 %v1512_v56, %v1498_v27  ;;  %v1515_v37 = vadd.f32 %v1512_v56, %v1499_v47  ;;  %v1516_v58 = vadd.f32 %v1512_v56, %v1500_v49  ;;  %v1517_v39 = vadd.f32 %v1512_v56, %v1501_v50 }
 0x184   : > { %v1518_v60 = vadd.f32 %v1512_v56, %v1502_v51  ;;  %v1519_v59 = vadd.f32 %v1512_v56, %v1503_v29  ;;  %v1520_v61 = vadd.f32 %v1512_v56, %v1504_v5  ;;  %v1521_v63 = vadd.f32 %v1512_v56, %v1505_v52 }
 0x185   : > { %v1522_v62 = vadd.f32 %v1512_v56, %v1506_v53  ;;  %v1523_v17 = vadd.f32 %v1512_v56, %v1507_v54  ;;  %v1524_v0 = vmul.f32 0.2, %v1514_v7  ;;  %v1525_v23 = vmul.f32 0.2, %v1515_v37 }
 0x186   : > { %v1526_v1 = vmul.f32 0.2, %v1516_v58  ;;  %v1527_v45 = vmul.f32 0.2, %v1517_v39  ;;  %v1528_v2 = vmul.f32 0.2, %v1518_v60 }
 0x187   : > { %v1529_v48 = vmul.f32 0.2, %v1519_v59  ;;  %v1530_v3 = vmul.f32 0.2, %v1520_v61  ;;  %v1531_v41 = vmul.f32 0.2, %v1521_v63  ;;  %v1534_v4 = vmax.f32 %v1514_v7, %v1524_v0 }
 0x188   : > { %v1532_v6 = vmul.f32 0.2, %v1522_v62  ;;  %v1533_v8 = vmul.f32 0.2, %v1523_v17  ;;  %v1535_v9 = vmax.f32 %v1515_v37, %v1525_v23  ;;  %v1536_v43 = vmax.f32 %v1516_v58, %v1526_v1 }
 0x189   : > { %v1537_v10 = vmax.f32 %v1517_v39, %v1527_v45  ;;  %v1538_v11 = vmax.f32 %v1518_v60, %v1528_v2  ;;  %v1539_v12 = vmax.f32 %v1519_v59, %v1529_v48  ;;  %v1540_v13 = vmax.f32 %v1520_v61, %v1530_v3 }
 0x18a   : > { %v1541_v14 = vmax.f32 %v1521_v63, %v1531_v41  ;;  %v1542_v15 = vmax.f32 %v1522_v62, %v1532_v6  ;;  %v1543_v16 = vmax.f32 %v1523_v17, %v1533_v8  ;;  %v1864_v19 = vpack.c.bf16 %v1535_v9, %v1534_v4 }
 0x18b   : > { %v1869_v18 = vpack.c.bf16 %v1537_v10, %v1536_v43  ;;  %v1874_v20 = vpack.c.bf16 %v1539_v12, %v1538_v11 }
 0x18c   : > { %1865 = vst [vmem:[%s337_s10] sm:$0xff] %v1864_v19   ;;  %v1879_v22 = vpack.c.bf16 %v1541_v14, %v1540_v13  ;;  %v1884_v24 = vpack.c.bf16 %v1543_v16, %v1542_v15 }
 0x18d   : > { %1886 = vst [vmem:[%s337_s10 + $0x8] sm:$0xff] %v1869_v18   ;;  %1887 = vst [vmem:[%s337_s10 + $0x10] sm:$0xff] %v1874_v20  }
 0x18e   : > { %1888 = vst [vmem:[%s337_s10 + $0x18] sm:$0xff] %v1879_v22   ;;  %1889 = vst [vmem:[%s337_s10 + $0x20] sm:$0xff] %v1884_v24  }
 0x18f PF: > { %s14_s17 = sadd.s32 1, %s2188_s17   ;;  %s2455_s15 = smov %s2184_s16 }
 0x190   : > { %p11_p5 = scmp.ge.s32.totalorder %s14_s17, 4   ;;  %s2456_s16 = smov %s2458_s18 }
 0x192   :  { %13 = sbr.rel (!%p11_p5) target bundleno = 2 (0x2), region = 83 }

// kernel: multiscale_forward.9
= control target key start
LH: loop header
LB: loop body
LE: loop exit
PB: predicated region body
PF: predicated region fallthrough
CT: control target
= control target key end

     0   :  { %s3901_s12 = smov 0   ;;  %s3903_s13 = smov 0   ;;  %s4348_s0 = inlined_call_operand.vmem [shape: bf16[2,112,2048], index: 0, kind: input, shape index: {}]   ;;  %s4349_s1 = inlined_call_operand.vmem [shape: bf16[2,2048,128], index: 1, kind: input, shape index: {}]   ;;  %s4350_s2 = inlined_call_operand.vmem [shape: f32[2,1,128], index: 2, kind: input, shape index: {}]   ;;  %s4351_s3 = inlined_call_operand.vmem [shape: f32[2,112,128], index: 3, kind: output, shape index: {}]  }
   0x1   :  { %s3905_s14 = smov 0  }
   0x2 LB: > { %s39_s15 = sadd.s32 1, %s3875_s13  ;;  %p2990_p0 = scmp.ge.s32.totalorder %s3879_s14, 1  ;;  %s3879_s14 = sphi %s3905_s14, %s13_s14   ;;  %s3875_s13 = sphi %s3903_s13, %s4353_s13   ;;  %s3871_s12 = sphi %s3901_s12, %s4352_s12  }
   0x3   : > { %p41_p1 = scmp.ge.s32.totalorder %s39_s15, 2  ;;  %p217_p2 = scmp.lt.s32.totalorder %s3879_s14, 3 }
   0x5   : > { %s4355_s15 = smov (%p41_p1, %s39_s15), 0  ;;  %p218_p3 = pnand %p2990_p0, %p217_p2 }
   0x6   : > { %p277_p4 = scmp.lt.s32.totalorder (!%p218_p3), %s3871_s12, 1 }
   0x7   : > { %221 = sbr.rel (%p218_p3) target bundleno = 491 (0x1eb), region = 32 }
   0xe   : > { %s4357_s12 = smov (!%p277_p4, %s3871_s12), 1 }
   0xf   : > { %s3238_s16 = sshll.u32 %s4357_s12, 10  ;;  %s3703_s20 = smul.u32 896, %s4357_s12 }
  0x10   : > { %s3925_s19 = scalar_lea.vmem %s4349_s1, %s3238_s16  ;;  %s309_s26 = scalar_lea.vmem %s4350_s2, %s4357_s12 }
  0x11   : > { %v3729_v0 = vld [vmem:[%s3925_s19 + $0x40] sm:$0xff]   ;;  %v3733_v4 = vld [vmem:[%s3925_s19 + $0x48] sm:$0xff]   ;;  %v3737_v8 = vld [vmem:[%s3925_s19 + $0x50] sm:$0xff]   ;;  %s3961_s23 = scalar_lea.vmem %s4348_s0, %s3703_s20  ;;  %s3704_s27 = smul.u32 112, %s4357_s12 }
  0x12   : > { %v3730_v1 = vld [vmem:[%s3925_s19 + $0xc0] sm:$0xff]   ;;  %3239 = vmatprep.subr.bf16.mxu0 %v3729_v0  ;;  %v3734_v5 = vld [vmem:[%s3925_s19 + $0xc8] sm:$0xff]   ;;  %v3738_v9 = vld [vmem:[%s3925_s19 + $0xd0] sm:$0xff]  }
  0x13   : > { %v3731_v2 = vld [vmem:[%s3925_s19] sm:$0xff]   ;;  %3297 = vmatprep.subr.bf16.mxu1 %v3730_v1  ;;  %v3735_v6 = vld [vmem:[%s3925_s19 + $0x8] sm:$0xff]   ;;  %v3739_v10 = vld [vmem:[%s3925_s19 + $0x10] sm:$0xff]   ;;  %s4297_s30 = scalar_lea.vmem %s4351_s3, %s3704_s27 }
  0x14   : > { %v3732_v3 = vld [vmem:[%s3925_s19 + $0x80] sm:$0xff]   ;;  %3240 = vmatpush3.bf16.msra.mxu0 %v3731_v2  ;;  %v3736_v7 = vld [vmem:[%s3925_s19 + $0x88] sm:$0xff]   ;;  %v3740_v11 = vld [vmem:[%s3925_s19 + $0x90] sm:$0xff]  }
  0x15   : > { %3298 = vmatpush3.bf16.msra.mxu1 %v3732_v3  ;;  %3241 = vmatprep.subr.bf16.mxu0 %v3733_v4  ;;  %v3741_v12 = vld [vmem:[%s3925_s19 + $0x58] sm:$0xff]   ;;  %v3745_v16 = vld [vmem:[%s3925_s19 + $0x60] sm:$0xff]   ;;  %v3749_v20 = vld [vmem:[%s3925_s19 + $0x68] sm:$0xff]  }
  0x16   : > { %3299 = vmatprep.subr.bf16.mxu1 %v3734_v5  ;;  %v3742_v13 = vld [vmem:[%s3925_s19 + $0xd8] sm:$0xff]   ;;  %v3746_v17 = vld [vmem:[%s3925_s19 + $0xe0] sm:$0xff]   ;;  %v3750_v21 = vld [vmem:[%s3925_s19 + $0xe8] sm:$0xff]  }
  0x17   : > { %v3743_v14 = vld [vmem:[%s3925_s19 + $0x18] sm:$0xff]   ;;  %v3747_v18 = vld [vmem:[%s3925_s19 + $0x20] sm:$0xff]   ;;  %v3751_v22 = vld [vmem:[%s3925_s19 + $0x28] sm:$0xff]  }
  0x18   : > { %3242 = vmatpush3.bf16.msra.mxu0 %v3735_v6  ;;  %v3744_v15 = vld [vmem:[%s3925_s19 + $0x98] sm:$0xff]   ;;  %v3748_v19 = vld [vmem:[%s3925_s19 + $0xa0] sm:$0xff]   ;;  %v3752_v23 = vld [vmem:[%s3925_s19 + $0xa8] sm:$0xff]  }
  0x19   : > { %3300 = vmatpush3.bf16.msra.mxu1 %v3736_v7  ;;  %3243 = vmatprep.subr.bf16.mxu0 %v3737_v8  ;;  %v3753_v24 = vld [vmem:[%s3925_s19 + $0x70] sm:$0xff]   ;;  %v3757_v28 = vld [vmem:[%s3925_s19 + $0x78] sm:$0xff]   ;;  %v356_v32 = vld [vmem:[%s3961_s23] sm:$0xff] }
  0x1a   : > { %3301 = vmatprep.subr.bf16.mxu1 %v3738_v9  ;;  %v3754_v25 = vld [vmem:[%s3925_s19 + $0xf0] sm:$0xff]   ;;  %v3758_v29 = vld [vmem:[%s3925_s19 + $0xf8] sm:$0xff]   ;;  %v364_v33 = vld [vmem:[%s3961_s23 + $0x40] sm:$0xff] }
  0x1b   : > { %v3755_v26 = vld [vmem:[%s3925_s19 + $0x30] sm:$0xff]   ;;  %v3759_v30 = vld [vmem:[%s3925_s19 + $0x38] sm:$0xff]   ;;  %v357_v34 = vld [vmem:[%s3961_s23 + $0x8] sm:$0xff]  ;;  %v2995_v35 = vcombine.low %v356_v32, %v364_v33  ;;  %v2996_v36 = vcombine.high %v356_v32, %v364_v33 }
  0x1c   : > { %3244 = vmatpush3.bf16.msra.mxu0 %v3739_v10  ;;  %v3756_v27 = vld [vmem:[%s3925_s19 + $0xb0] sm:$0xff]   ;;  %v3760_v31 = vld [vmem:[%s3925_s19 + $0xb8] sm:$0xff]   ;;  %v365_v37 = vld [vmem:[%s3961_s23 + $0x48] sm:$0xff] }
  0x1d   : > { %3302 = vmatpush3.bf16.msra.mxu1 %v3740_v11  ;;  %3245 = vmatprep.subr.bf16.mxu0 %v3741_v12  ;;  %v2997_v38 = vcombine.low %v357_v34, %v365_v37  ;;  %v2998_v39 = vcombine.high %v357_v34, %v365_v37  ;;  %v3761_v40 = vld [vmem:[%s3925_s19 + $0x140] sm:$0xff]   ;;  %v373_v47 = vld [vmem:[%s3961_s23 + $0x88] sm:$0xff]  ;;  %v3769_v56 = vld [vmem:[%s3925_s19 + $0x150] sm:$0xff]  }
  0x1e   : > { %3303 = vmatprep.subr.bf16.mxu1 %v3742_v13  ;;  %2084 = vmatprep.mubr.bf16.mxu0 %v2996_v36  ;;  %v3762_v41 = vld [vmem:[%s3925_s19 + $0x100] sm:$0xff]   ;;  %v381_v48 = vld [vmem:[%s3961_s23 + $0xc8] sm:$0xff]  ;;  %v3770_v63 = vld [vmem:[%s3925_s19 + $0x110] sm:$0xff]  }
  0x1f   : > { %2173 = vmatprep.mubr.bf16.mxu1 %v2998_v39  ;;  %v3763_v42 = vld [vmem:[%s3925_s19 + $0x1c0] sm:$0xff]   ;;  %v3014_v49 = vcombine.high %v373_v47, %v381_v48  ;;  %v3765_v50 = vld [vmem:[%s3925_s19 + $0x148] sm:$0xff]   ;;  %v3013_v53 = vcombine.low %v373_v47, %v381_v48  ;;  %v3771_v0 = vld [vmem:[%s3925_s19 + $0x1d0] sm:$0xff]  }
  0x20   : > { %3246 = vmatpush3.bf16.msra.mxu0 %v3743_v14  ;;  %v3764_v43 = vld [vmem:[%s3925_s19 + $0x180] sm:$0xff]   ;;  %v3766_v52 = vld [vmem:[%s3925_s19 + $0x108] sm:$0xff]   ;;  %v3772_v1 = vld [vmem:[%s3925_s19 + $0x190] sm:$0xff]  }
  0x21   : > { %3304 = vmatpush3.bf16.msra.mxu1 %v3744_v15  ;;  %3247 = vmatprep.subr.bf16.mxu0 %v3745_v16  ;;  %v372_v44 = vld [vmem:[%s3961_s23 + $0x80] sm:$0xff]  ;;  %v3767_v54 = vld [vmem:[%s3925_s19 + $0x1c8] sm:$0xff]   ;;  %v3773_v3 = vld [vmem:[%s3925_s19 + $0x158] sm:$0xff]  }
  0x22   : > { %3305 = vmatprep.subr.bf16.mxu1 %v3746_v17  ;;  %v380_v45 = vld [vmem:[%s3961_s23 + $0xc0] sm:$0xff]  ;;  %v3768_v55 = vld [vmem:[%s3925_s19 + $0x188] sm:$0xff]   ;;  %v3774_v5 = vld [vmem:[%s3925_s19 + $0x118] sm:$0xff]  }
  0x23   : > { %v3012_v46 = vcombine.high %v372_v44, %v380_v45  ;;  %v3011_v51 = vcombine.low %v372_v44, %v380_v45  ;;  %v388_v57 = vld [vmem:[%s3961_s23 + $0x100] sm:$0xff]  ;;  %v389_v59 = vld [vmem:[%s3961_s23 + $0x108] sm:$0xff]  ;;  %v3775_v12 = vld [vmem:[%s3925_s19 + $0x1d8] sm:$0xff]  }
  0x24   : > { %3248 = vmatpush3.bf16.msra.mxu0 %v3747_v18  ;;  %v396_v58 = vld [vmem:[%s3961_s23 + $0x140] sm:$0xff]  ;;  %v397_v60 = vld [vmem:[%s3961_s23 + $0x148] sm:$0xff]  ;;  %v3776_v13 = vld [vmem:[%s3925_s19 + $0x198] sm:$0xff]  }
  0x25   : > { %3306 = vmatpush3.bf16.msra.mxu1 %v3748_v19  ;;  %3249 = vmatprep.subr.bf16.mxu0 %v3749_v20  ;;  %v3028_v61 = vcombine.high %v388_v57, %v396_v58  ;;  %v3030_v62 = vcombine.high %v389_v59, %v397_v60  ;;  %v3027_v2 = vcombine.low %v388_v57, %v396_v58  ;;  %v404_v6 = vld [vmem:[%s3961_s23 + $0x180] sm:$0xff]  ;;  %v405_v8 = vld [vmem:[%s3961_s23 + $0x188] sm:$0xff]  ;;  %v3790_v47 = vld [vmem:[%s3925_s19 + $0x138] sm:$0xff]  }
  0x26   : > { %3307 = vmatprep.subr.bf16.mxu1 %v3750_v21  ;;  %v3029_v4 = vcombine.low %v389_v59, %v397_v60  ;;  %v412_v7 = vld [vmem:[%s3961_s23 + $0x1c0] sm:$0xff]  ;;  %v413_v10 = vld [vmem:[%s3961_s23 + $0x1c8] sm:$0xff]  ;;  %v366_v57 = vld [vmem:[%s3961_s23 + $0x50] sm:$0xff] }
  0x27   : > { %v3044_v9 = vcombine.high %v404_v6, %v412_v7  ;;  %v3046_v11 = vcombine.high %v405_v8, %v413_v10  ;;  %v3777_v14 = vld [vmem:[%s3925_s19 + $0x160] sm:$0xff]   ;;  %v3043_v16 = vcombine.low %v404_v6, %v412_v7  ;;  %v3045_v20 = vcombine.low %v405_v8, %v413_v10  ;;  %v437_v32 = vld [vmem:[%s3961_s23 + $0x288] sm:$0xff]  ;;  %v359_v58 = vld [vmem:[%s3961_s23 + $0x18] sm:$0xff] }
  0x28   : > { %3250 = vmatpush3.bf16.msra.mxu0 %v3751_v22  ;;  %v3778_v15 = vld [vmem:[%s3925_s19 + $0x120] sm:$0xff]   ;;  %v421_v22 = vld [vmem:[%s3961_s23 + $0x208] sm:$0xff]  ;;  %v367_v59 = vld [vmem:[%s3961_s23 + $0x58] sm:$0xff] }
  0x29   : > { %3308 = vmatpush3.bf16.msra.mxu1 %v3752_v23  ;;  %3251 = vmatprep.subr.bf16.mxu0 %v3753_v24  ;;  %v3779_v17 = vld [vmem:[%s3925_s19 + $0x1e0] sm:$0xff]   ;;  %v429_v23 = vld [vmem:[%s3961_s23 + $0x248] sm:$0xff] }
  0x2a   : > { %3309 = vmatprep.subr.bf16.mxu1 %v3754_v25  ;;  %v420_v18 = vld [vmem:[%s3961_s23 + $0x200] sm:$0xff]  ;;  %v3062_v24 = vcombine.high %v421_v22, %v429_v23  ;;  %v445_v33 = vld [vmem:[%s3961_s23 + $0x2c8] sm:$0xff]  ;;  %v3061_v36 = vcombine.low %v421_v22, %v429_v23 }
  0x2b   : > { %v428_v19 = vld [vmem:[%s3961_s23 + $0x240] sm:$0xff]  ;;  %v3078_v39 = vcombine.high %v437_v32, %v445_v33  ;;  %v453_v44 = vld [vmem:[%s3961_s23 + $0x308] sm:$0xff] }
  0x2c   : > { %3252 = vmatpush3.bf16.msra.mxu0 %v3755_v26  ;;  %v3060_v21 = vcombine.high %v420_v18, %v428_v19  ;;  %v3780_v25 = vld [vmem:[%s3925_s19 + $0x1a0] sm:$0xff]   ;;  %v3781_v26 = vld [vmem:[%s3925_s19 + $0x168] sm:$0xff]   ;;  %v3059_v34 = vcombine.low %v420_v18, %v428_v19  ;;  %v399_v18 = vld [vmem:[%s3961_s23 + $0x158] sm:$0xff] }
  0x2d   : > { %3310 = vmatpush3.bf16.msra.mxu1 %v3756_v27  ;;  %3253 = vmatprep.subr.bf16.mxu0 %v3757_v28  ;;  %v3782_v27 = vld [vmem:[%s3925_s19 + $0x128] sm:$0xff]   ;;  %v3794_v6 = vld [vmem:[%s3925_s19 + $0x200] sm:$0xff]   ;;  %v3803_v19 = vld [vmem:[%s3925_s19 + $0x2d0] sm:$0xff]  }
  0x2e   : > { %3311 = vmatprep.subr.bf16.mxu1 %v3758_v29  ;;  %v3783_v28 = vld [vmem:[%s3925_s19 + $0x1e8] sm:$0xff]   ;;  %v3796_v7 = vld [vmem:[%s3925_s19 + $0x280] sm:$0xff]  }
  0x2f   : > { %v3784_v29 = vld [vmem:[%s3925_s19 + $0x1a8] sm:$0xff]  }
  0x30   : > { %3254 = vmatpush3.bf16.msra.mxu0 %v3759_v30  ;;  %v436_v30 = vld [vmem:[%s3961_s23 + $0x280] sm:$0xff]  ;;  %v461_v45 = vld [vmem:[%s3961_s23 + $0x348] sm:$0xff] }
  0x31   : > { %3312 = vmatpush3.bf16.msra.mxu1 %v3760_v31  ;;  %3355 = vmatprep.subr.bf16.mxu0 %v3761_v40  ;;  %v444_v31 = vld [vmem:[%s3961_s23 + $0x2c0] sm:$0xff]  ;;  %v3787_v40 = vld [vmem:[%s3925_s19 + $0x1f0] sm:$0xff]   ;;  %v3797_v10 = vld [vmem:[%s3925_s19 + $0x248] sm:$0xff]  }
  0x32   : > { %3413 = vmatprep.subr.bf16.mxu1 %v3763_v42  ;;  %v3076_v37 = vcombine.high %v436_v30, %v444_v31  ;;  %v452_v42 = vld [vmem:[%s3961_s23 + $0x300] sm:$0xff]  ;;  %v3075_v48 = vcombine.low %v436_v30, %v444_v31  ;;  %v3807_v30 = vld [vmem:[%s3925_s19 + $0x2d8] sm:$0xff]  }
  0x33   : > { %2085 = vmatmul.mubr.bf16.vlgmr.msra.gmra.mrb[0].mxu0 %v2995_v35  ;;  %v3785_v35 = vld [vmem:[%s3925_s19 + $0x170] sm:$0xff]   ;;  %v407_v31 = vld [vmem:[%s3961_s23 + $0x198] sm:$0xff] }
  0x34   : > { %2174 = vmatmul.mubr.bf16.vlgmr.msra.gmra.mrb[0].mxu1 %v2997_v38  ;;  %3356 = vmatpush3.bf16.msra.mxu0 %v3762_v41  ;;  %v3786_v38 = vld [vmem:[%s3925_s19 + $0x130] sm:$0xff]  }
  0x35   : > { %3414 = vmatpush3.bf16.msra.mxu1 %v3764_v43  ;;  %2092 = vmatprep.mubr.bf16.mxu0 %v3012_v46  ;;  %v3788_v41 = vld [vmem:[%s3925_s19 + $0x1b0] sm:$0xff]   ;;  %v460_v43 = vld [vmem:[%s3961_s23 + $0x340] sm:$0xff]  ;;  %v3789_v46 = vld [vmem:[%s3925_s19 + $0x178] sm:$0xff]  }
  0x36   : > { %2181 = vmatprep.mubr.bf16.mxu1 %v3014_v49  ;;  %3357 = vmatprep.subr.bf16.mxu0 %v3765_v50  ;;  %v3791_v49 = vld [vmem:[%s3925_s19 + $0x1f8] sm:$0xff]   ;;  %v3077_v50 = vcombine.low %v437_v32, %v445_v33  ;;  %v3091_v60 = vcombine.low %v452_v42, %v460_v43 }
  0x37   : > { %3415 = vmatprep.subr.bf16.mxu1 %v3767_v54  ;;  %v3793_v54 = vld [vmem:[%s3925_s19 + $0x240] sm:$0xff]   ;;  %v415_v32 = vld [vmem:[%s3961_s23 + $0x1d8] sm:$0xff] }
  0x38   : > { %3358 = vmatpush3.bf16.msra.mxu0 %v3766_v52  ;;  %v3792_v52 = vld [vmem:[%s3925_s19 + $0x1b8] sm:$0xff]  }
  0x39   : > { %3416 = vmatpush3.bf16.msra.mxu1 %v3768_v55  ;;  %3359 = vmatprep.subr.bf16.mxu0 %v3769_v56  ;;  %v3795_v55 = vld [vmem:[%s3925_s19 + $0x2c0] sm:$0xff]   ;;  %v358_v56 = vld [vmem:[%s3961_s23 + $0x10] sm:$0xff]  ;;  %v3808_v33 = vld [vmem:[%s3925_s19 + $0x298] sm:$0xff]  }
  0x3a   : > { %3417 = vmatprep.subr.bf16.mxu1 %v3771_v0  ;;  %v374_v0 = vld [vmem:[%s3961_s23 + $0x90] sm:$0xff] }
  0x3b   : > { %2093 = vmatmul.mubr.bf16.gmra.mrb[4].mxu0 %v3011_v51  ;;  %v3092_v51 = vcombine.high %v452_v42, %v460_v43  ;;  %v3813_v42 = vld [vmem:[%s3925_s19 + $0x268] sm:$0xff]   ;;  %v422_v43 = vld [vmem:[%s3961_s23 + $0x210] sm:$0xff] }
  0x3c   : > { %2182 = vmatmul.mubr.bf16.gmra.mrb[4].mxu1 %v3013_v53  ;;  %2100 = vmatprep.mubr.bf16.mxu0 %v3028_v61  ;;  %v3094_v53 = vcombine.high %v453_v44, %v461_v45  ;;  %v3093_v61 = vcombine.low %v453_v44, %v461_v45  ;;  %v3815_v44 = vld [vmem:[%s3925_s19 + $0x2e8] sm:$0xff]   ;;  %v430_v45 = vld [vmem:[%s3961_s23 + $0x250] sm:$0xff] }
  0x3d   : > { %2189 = vmatprep.mubr.bf16.mxu1 %v3030_v62  ;;  %3360 = vmatpush3.bf16.msra.mxu0 %v3770_v63  ;;  %v3000_v62 = vcombine.high %v358_v56, %v366_v57  ;;  %v3002_v63 = vcombine.high %v359_v58, %v367_v59 }
  0x3e   : > { %3418 = vmatpush3.bf16.msra.mxu1 %v3772_v1  ;;  %3361 = vmatprep.subr.bf16.mxu0 %v3773_v3  ;;  %v382_v1 = vld [vmem:[%s3961_s23 + $0xd0] sm:$0xff]  ;;  %v2999_v3 = vcombine.low %v358_v56, %v366_v57 }
  0x3f   : > { %3419 = vmatprep.subr.bf16.mxu1 %v3775_v12  ;;  %v3016_v8 = vcombine.high %v374_v0, %v382_v1  ;;  %v3799_v12 = vld [vmem:[%s3925_s19 + $0x2c8] sm:$0xff]   ;;  %v3818_v56 = vld [vmem:[%s3925_s19 + $0x230] sm:$0xff]  }
  0x40   : > { %v3820_v57 = vld [vmem:[%s3925_s19 + $0x2b0] sm:$0xff]  }
  0x41   : > { %3362 = vmatpush3.bf16.msra.mxu0 %v3774_v5  ;;  %v3001_v5 = vcombine.low %v359_v58, %v367_v59  ;;  %v3821_v58 = vld [vmem:[%s3925_s19 + $0x278] sm:$0xff]   ;;  %v438_v59 = vld [vmem:[%s3961_s23 + $0x290] sm:$0xff] }
  0x42   : > { %3420 = vmatpush3.bf16.msra.mxu1 %v3776_v13  ;;  %3363 = vmatprep.subr.bf16.mxu0 %v3777_v14  ;;  %v3800_v13 = vld [vmem:[%s3925_s19 + $0x288] sm:$0xff]   ;;  %v3801_v14 = vld [vmem:[%s3925_s19 + $0x250] sm:$0xff]  }
  0x43   : > { %2101 = vmatmul.mubr.bf16.gmra.mrb[8].mxu0 %v3027_v2  ;;  %3421 = vmatprep.subr.bf16.mxu1 %v3779_v17  ;;  %v375_v2 = vld [vmem:[%s3961_s23 + $0x98] sm:$0xff] }
  0x44   : > { %2190 = vmatmul.mubr.bf16.gmra.mrb[8].mxu1 %v3029_v4  ;;  %2108 = vmatprep.mubr.bf16.mxu0 %v3044_v9  ;;  %v383_v4 = vld [vmem:[%s3961_s23 + $0xd8] sm:$0xff] }
  0x45   : > { %2197 = vmatprep.mubr.bf16.mxu1 %v3046_v11  ;;  %3364 = vmatpush3.bf16.msra.mxu0 %v3778_v15  ;;  %v3018_v9 = vcombine.high %v375_v2, %v383_v4  ;;  %v3798_v11 = vld [vmem:[%s3925_s19 + $0x208] sm:$0xff]   ;;  %v390_v15 = vld [vmem:[%s3961_s23 + $0x110] sm:$0xff]  ;;  %v391_v17 = vld [vmem:[%s3961_s23 + $0x118] sm:$0xff] }
  0x46   : > { %3422 = vmatpush3.bf16.msra.mxu1 %v3780_v25  ;;  %3365 = vmatprep.subr.bf16.mxu0 %v3781_v26  ;;  %v3034_v23 = vcombine.high %v391_v17, %v399_v18  ;;  %v3804_v25 = vld [vmem:[%s3925_s19 + $0x290] sm:$0xff]   ;;  %v3805_v26 = vld [vmem:[%s3925_s19 + $0x258] sm:$0xff]  }
  0x47   : > { %3423 = vmatprep.subr.bf16.mxu1 %v3783_v28  ;;  %v406_v28 = vld [vmem:[%s3961_s23 + $0x190] sm:$0xff] }
  0x49   : > { %3366 = vmatpush3.bf16.msra.mxu0 %v3782_v27  ;;  %v3806_v27 = vld [vmem:[%s3925_s19 + $0x218] sm:$0xff]  }
  0x4a   : > { %3424 = vmatpush3.bf16.msra.mxu1 %v3784_v29  ;;  %3367 = vmatprep.subr.bf16.mxu0 %v3785_v35  ;;  %v414_v29 = vld [vmem:[%s3961_s23 + $0x1d0] sm:$0xff] }
  0x4b   : > { %2109 = vmatmul.mubr.bf16.gmra.mrb[12].mxu0 %v3043_v16  ;;  %3425 = vmatprep.subr.bf16.mxu1 %v3787_v40  ;;  %v398_v16 = vld [vmem:[%s3961_s23 + $0x150] sm:$0xff]  ;;  %v3050_v40 = vcombine.high %v407_v31, %v415_v32 }
  0x4c   : > { %2198 = vmatmul.mubr.bf16.gmra.mrb[12].mxu1 %v3045_v20  ;;  %2116 = vmatprep.mubr.bf16.mxu0 %v3060_v21  ;;  %v3015_v20 = vcombine.low %v374_v0, %v382_v1  ;;  %v3017_v21 = vcombine.low %v375_v2, %v383_v4  ;;  %v3032_v22 = vcombine.high %v390_v15, %v398_v16  ;;  %v3822_v0 = vld [vmem:[%s3925_s19 + $0x238] sm:$0xff]   ;;  %v3825_v2 = vld [vmem:[%s3925_s19 + $0x340] sm:$0xff]  }
  0x4d   : > { %2205 = vmatprep.mubr.bf16.mxu1 %v3062_v24  ;;  %3368 = vmatpush3.bf16.msra.mxu0 %v3786_v38  ;;  %v3802_v24 = vld [vmem:[%s3925_s19 + $0x210] sm:$0xff]   ;;  %v3031_v35 = vcombine.low %v390_v15, %v398_v16  ;;  %v3048_v38 = vcombine.high %v406_v28, %v414_v29  ;;  %v3824_v1 = vld [vmem:[%s3925_s19 + $0x2b8] sm:$0xff]   ;;  %v3827_v4 = vld [vmem:[%s3925_s19 + $0x3c0] sm:$0xff]  }
  0x4e   : > { %3426 = vmatpush3.bf16.msra.mxu1 %v3788_v41  ;;  %3369 = vmatprep.subr.bf16.mxu0 %v3789_v46  ;;  %v3812_v41 = vld [vmem:[%s3925_s19 + $0x2a0] sm:$0xff]   ;;  %v423_v46 = vld [vmem:[%s3961_s23 + $0x218] sm:$0xff] }
  0x4f   : > { %3427 = vmatprep.subr.bf16.mxu1 %v3791_v49  ;;  %v3816_v49 = vld [vmem:[%s3925_s19 + $0x2a8] sm:$0xff]   ;;  %v360_v16 = vld [vmem:[%s3961_s23 + $0x20] sm:$0xff] }
  0x51   : > { %3370 = vmatpush3.bf16.msra.mxu0 %v3790_v47  ;;  %v431_v47 = vld [vmem:[%s3961_s23 + $0x258] sm:$0xff] }
  0x52   : > { %3428 = vmatpush3.bf16.msra.mxu1 %v3792_v52  ;;  %3471 = vmatprep.subr.bf16.mxu0 %v3793_v54  ;;  %v3819_v52 = vld [vmem:[%s3925_s19 + $0x2f0] sm:$0xff]   ;;  %v3064_v54 = vcombine.high %v422_v43, %v430_v45 }
  0x53   : > { %2117 = vmatmul.mubr.bf16.gmra.mrb[16].mxu0 %v3059_v34  ;;  %3529 = vmatprep.subr.bf16.mxu1 %v3795_v55  ;;  %v3809_v34 = vld [vmem:[%s3925_s19 + $0x260] sm:$0xff]   ;;  %v3066_v55 = vcombine.high %v423_v46, %v431_v47 }
  0x54   : > { %2206 = vmatmul.mubr.bf16.gmra.mrb[16].mxu1 %v3061_v36  ;;  %2124 = vmatprep.mubr.bf16.mxu0 %v3076_v37  ;;  %v3811_v36 = vld [vmem:[%s3925_s19 + $0x2e0] sm:$0xff]   ;;  %v3033_v37 = vcombine.low %v391_v17, %v399_v18  ;;  %v361_v18 = vld [vmem:[%s3961_s23 + $0x28] sm:$0xff] }
  0x55   : > { %2213 = vmatprep.mubr.bf16.mxu1 %v3078_v39  ;;  %v3810_v39 = vld [vmem:[%s3925_s19 + $0x220] sm:$0xff]  }
  0x56   : > { %v368_v17 = vld [vmem:[%s3961_s23 + $0x60] sm:$0xff] }
  0x5b   : > { %2125 = vmatmul.mubr.bf16.gmra.mrb[20].mxu0 %v3075_v48  ;;  %v3814_v48 = vld [vmem:[%s3925_s19 + $0x228] sm:$0xff]  }
  0x5c   : > { %2214 = vmatmul.mubr.bf16.gmra.mrb[20].mxu1 %v3077_v50  ;;  %2132 = vmatprep.mubr.bf16.mxu0 %v3092_v51  ;;  %v3817_v50 = vld [vmem:[%s3925_s19 + $0x270] sm:$0xff]   ;;  %v3047_v51 = vcombine.low %v406_v28, %v414_v29  ;;  %v385_v28 = vld [vmem:[%s3961_s23 + $0xe8] sm:$0xff] }
  0x5d   : > { %2221 = vmatprep.mubr.bf16.mxu1 %v3094_v53  ;;  %v3049_v53 = vcombine.low %v407_v31, %v415_v32  ;;  %v3828_v31 = vld [vmem:[%s3925_s19 + $0x380] sm:$0xff]  }
  0x63   : > { %2133 = vmatmul.mubr.bf16.gmra.mrb[24].mxu0 %v3091_v60  ;;  %v446_v60 = vld [vmem:[%s3961_s23 + $0x2d0] sm:$0xff] }
  0x64   : > { %2222 = vmatmul.mubr.bf16.gmra.mrb[24].mxu1 %v3093_v61  ;;  %2262 = vmatprep.mubr.bf16.mxu0 %v3000_v62  ;;  %v3823_v61 = vld [vmem:[%s3925_s19 + $0x2f8] sm:$0xff]  }
  0x65   : > { %2351 = vmatprep.mubr.bf16.mxu1 %v3002_v63  ;;  %v439_v62 = vld [vmem:[%s3961_s23 + $0x298] sm:$0xff] }
  0x66   : > { %v447_v63 = vld [vmem:[%s3961_s23 + $0x2d8] sm:$0xff] }
  0x6b   : > { %2263 = vmatmul.mubr.bf16.vlgmr.msra.gmra.mrb[28].mxu0 %v2999_v3  ;;  %v3063_v3 = vcombine.low %v422_v43, %v430_v45  ;;  %v3835_v43 = vld [vmem:[%s3925_s19 + $0x3d0] sm:$0xff]  }
  0x6c   : > { %2352 = vmatmul.mubr.bf16.vlgmr.msra.gmra.mrb[28].mxu1 %v3001_v5  ;;  %3472 = vmatpush3.bf16.msra.mxu0 %v3794_v6  ;;  %v3065_v5 = vcombine.low %v423_v46, %v431_v47  ;;  %v3080_v6 = vcombine.high %v438_v59, %v446_v60  ;;  %v3834_v47 = vld [vmem:[%s3925_s19 + $0x310] sm:$0xff]  }
  0x6d   : > { %3530 = vmatpush3.bf16.msra.mxu1 %v3796_v7  ;;  %2270 = vmatprep.mubr.bf16.mxu0 %v3016_v8  ;;  %v3082_v7 = vcombine.high %v439_v62, %v447_v63  ;;  %v454_v8 = vld [vmem:[%s3961_s23 + $0x310] sm:$0xff] }
  0x6e   : > { %2359 = vmatprep.mubr.bf16.mxu1 %v3018_v9  ;;  %3473 = vmatprep.subr.bf16.mxu0 %v3797_v10  ;;  %v462_v9 = vld [vmem:[%s3961_s23 + $0x350] sm:$0xff]  ;;  %v455_v10 = vld [vmem:[%s3961_s23 + $0x318] sm:$0xff] }
  0x6f   : > { %3531 = vmatprep.subr.bf16.mxu1 %v3799_v12  ;;  %v3079_v12 = vcombine.low %v438_v59, %v446_v60  ;;  %v3843_v60 = vld [vmem:[%s3925_s19 + $0x3e0] sm:$0xff]  }
  0x70   : > { %3474 = vmatpush3.bf16.msra.mxu0 %v3798_v11  ;;  %v463_v11 = vld [vmem:[%s3961_s23 + $0x358] sm:$0xff] }
  0x71   : > { %3532 = vmatpush3.bf16.msra.mxu1 %v3800_v13  ;;  %3475 = vmatprep.subr.bf16.mxu0 %v3801_v14  ;;  %v3081_v13 = vcombine.low %v439_v62, %v447_v63  ;;  %v3096_v14 = vcombine.high %v454_v8, %v462_v9  ;;  %v3098_v15 = vcombine.high %v455_v10, %v463_v11 }
  0x72   : > { %3533 = vmatprep.subr.bf16.mxu1 %v3803_v19  ;;  %v369_v19 = vld [vmem:[%s3961_s23 + $0x68] sm:$0xff] }
  0x73   : > { %2271 = vmatmul.mubr.bf16.gmra.mrb[32].mxu0 %v3015_v20  ;;  %v3095_v20 = vcombine.low %v454_v8, %v462_v9  ;;  %v3005_v29 = vcombine.low %v361_v18, %v369_v19  ;;  %v433_v8 = vld [vmem:[%s3961_s23 + $0x268] sm:$0xff] }
  0x74   : > { %2360 = vmatmul.mubr.bf16.gmra.mrb[32].mxu1 %v3017_v21  ;;  %2278 = vmatprep.mubr.bf16.mxu0 %v3032_v22  ;;  %v3097_v21 = vcombine.low %v455_v10, %v463_v11  ;;  %v3004_v22 = vcombine.high %v360_v16, %v368_v17  ;;  %v3848_v9 = vld [vmem:[%s3925_s19 + $0x3a8] sm:$0xff]   ;;  %v3849_v10 = vld [vmem:[%s3925_s19 + $0x370] sm:$0xff]  }
  0x75   : > { %2367 = vmatprep.mubr.bf16.mxu1 %v3034_v23  ;;  %3476 = vmatpush3.bf16.msra.mxu0 %v3802_v24  ;;  %v3006_v23 = vcombine.high %v361_v18, %v369_v19  ;;  %v376_v24 = vld [vmem:[%s3961_s23 + $0xa0] sm:$0xff]  ;;  %v3853_v18 = vld [vmem:[%s3925_s19 + $0x378] sm:$0xff]  }
  0x76   : > { %3534 = vmatpush3.bf16.msra.mxu1 %v3804_v25  ;;  %3477 = vmatprep.subr.bf16.mxu0 %v3805_v26  ;;  %v384_v25 = vld [vmem:[%s3961_s23 + $0xe0] sm:$0xff]  ;;  %v377_v26 = vld [vmem:[%s3961_s23 + $0xa8] sm:$0xff]  ;;  %v3855_v19 = vld [vmem:[%s3925_s19 + $0x3f8] sm:$0xff]  }
  0x77   : > { %3535 = vmatprep.subr.bf16.mxu1 %v3807_v30  ;;  %v3826_v30 = vld [vmem:[%s3925_s19 + $0x300] sm:$0xff]   ;;  %v3020_v32 = vcombine.high %v376_v24, %v384_v25  ;;  %v3021_v45 = vcombine.low %v377_v26, %v385_v28 }
  0x79   : > { %3478 = vmatpush3.bf16.msra.mxu0 %v3806_v27  ;;  %v3003_v27 = vcombine.low %v360_v16, %v368_v17  ;;  %v3850_v16 = vld [vmem:[%s3925_s19 + $0x330] sm:$0xff]  }
  0x7a   : > { %3536 = vmatpush3.bf16.msra.mxu1 %v3808_v33  ;;  %3479 = vmatprep.subr.bf16.mxu0 %v3809_v34  ;;  %v3829_v33 = vld [vmem:[%s3925_s19 + $0x348] sm:$0xff]   ;;  %v3022_v34 = vcombine.high %v377_v26, %v385_v28  ;;  %v3852_v17 = vld [vmem:[%s3925_s19 + $0x3b0] sm:$0xff]  }
  0x7b   : > { %2279 = vmatmul.mubr.bf16.gmra.mrb[36].mxu0 %v3031_v35  ;;  %3537 = vmatprep.subr.bf16.mxu1 %v3811_v36  ;;  %v3830_v35 = vld [vmem:[%s3925_s19 + $0x308] sm:$0xff]  }
  0x7c   : > { %2368 = vmatmul.mubr.bf16.gmra.mrb[36].mxu1 %v3033_v37  ;;  %2286 = vmatprep.mubr.bf16.mxu0 %v3048_v38  ;;  %v3831_v36 = vld [vmem:[%s3925_s19 + $0x3c8] sm:$0xff]   ;;  %v3833_v38 = vld [vmem:[%s3925_s19 + $0x350] sm:$0xff]  }
  0x7d   : > { %2375 = vmatprep.mubr.bf16.mxu1 %v3050_v40  ;;  %3480 = vmatpush3.bf16.msra.mxu0 %v3810_v39  ;;  %v3832_v37 = vld [vmem:[%s3925_s19 + $0x388] sm:$0xff]   ;;  %v392_v39 = vld [vmem:[%s3961_s23 + $0x120] sm:$0xff] }
  0x7e   : > { %3538 = vmatpush3.bf16.msra.mxu1 %v3812_v41  ;;  %3481 = vmatprep.subr.bf16.mxu0 %v3813_v42  ;;  %v400_v40 = vld [vmem:[%s3961_s23 + $0x160] sm:$0xff]  ;;  %v393_v41 = vld [vmem:[%s3961_s23 + $0x128] sm:$0xff] }
  0x7f   : > { %3539 = vmatprep.subr.bf16.mxu1 %v3815_v44  ;;  %v401_v42 = vld [vmem:[%s3961_s23 + $0x168] sm:$0xff]  ;;  %v3019_v44 = vcombine.low %v376_v24, %v384_v25  ;;  %v3036_v46 = vcombine.high %v392_v39, %v400_v40  ;;  %v3035_v59 = vcombine.low %v392_v39, %v400_v40  ;;  %v3856_v25 = vld [vmem:[%s3925_s19 + $0x3b8] sm:$0xff]   ;;  %v370_v39 = vld [vmem:[%s3961_s23 + $0x70] sm:$0xff] }
  0x80   : > { %v449_v24 = vld [vmem:[%s3961_s23 + $0x2e8] sm:$0xff]  ;;  %v363_v40 = vld [vmem:[%s3961_s23 + $0x38] sm:$0xff] }
  0x81   : > { %3482 = vmatpush3.bf16.msra.mxu0 %v3814_v48  ;;  %v3038_v48 = vcombine.high %v393_v41, %v401_v42 }
  0x82   : > { %3540 = vmatpush3.bf16.msra.mxu1 %v3816_v49  ;;  %3483 = vmatprep.subr.bf16.mxu0 %v3817_v50  ;;  %v3836_v49 = vld [vmem:[%s3925_s19 + $0x390] sm:$0xff]   ;;  %v3837_v50 = vld [vmem:[%s3925_s19 + $0x358] sm:$0xff]  }
  0x83   : > { %2287 = vmatmul.mubr.bf16.gmra.mrb[40].mxu0 %v3047_v51  ;;  %3541 = vmatprep.subr.bf16.mxu1 %v3819_v52  ;;  %v3839_v51 = vld [vmem:[%s3925_s19 + $0x3d8] sm:$0xff]  }
  0x84   : > { %2376 = vmatmul.mubr.bf16.gmra.mrb[40].mxu1 %v3049_v53  ;;  %2294 = vmatprep.mubr.bf16.mxu0 %v3064_v54  ;;  %v3838_v52 = vld [vmem:[%s3925_s19 + $0x318] sm:$0xff]   ;;  %v408_v53 = vld [vmem:[%s3961_s23 + $0x1a0] sm:$0xff] }
  0x85   : > { %2383 = vmatprep.mubr.bf16.mxu1 %v3066_v55  ;;  %3484 = vmatpush3.bf16.msra.mxu0 %v3818_v56  ;;  %v416_v54 = vld [vmem:[%s3961_s23 + $0x1e0] sm:$0xff]  ;;  %v409_v55 = vld [vmem:[%s3961_s23 + $0x1a8] sm:$0xff] }
  0x86   : > { %3542 = vmatpush3.bf16.msra.mxu1 %v3820_v57  ;;  %3485 = vmatprep.subr.bf16.mxu0 %v3821_v58  ;;  %v417_v56 = vld [vmem:[%s3961_s23 + $0x1e8] sm:$0xff]  ;;  %v3840_v57 = vld [vmem:[%s3925_s19 + $0x398] sm:$0xff]   ;;  %v3841_v58 = vld [vmem:[%s3925_s19 + $0x360] sm:$0xff]   ;;  %v3052_v62 = vcombine.high %v408_v53, %v416_v54  ;;  %v3051_v11 = vcombine.low %v408_v53, %v416_v54 }
  0x87   : > { %3543 = vmatprep.subr.bf16.mxu1 %v3823_v61  ;;  %v3037_v61 = vcombine.low %v393_v41, %v401_v42  ;;  %v3054_v63 = vcombine.high %v409_v55, %v417_v56  ;;  %v371_v41 = vld [vmem:[%s3961_s23 + $0x78] sm:$0xff]  ;;  %v394_v54 = vld [vmem:[%s3961_s23 + $0x130] sm:$0xff] }
  0x89   : > { %3486 = vmatpush3.bf16.msra.mxu0 %v3822_v0  ;;  %v3842_v0 = vld [vmem:[%s3925_s19 + $0x320] sm:$0xff]  }
  0x8a   : > { %3544 = vmatpush3.bf16.msra.mxu1 %v3824_v1  ;;  %3587 = vmatprep.subr.bf16.mxu0 %v3825_v2  ;;  %v3844_v1 = vld [vmem:[%s3925_s19 + $0x3a0] sm:$0xff]   ;;  %v3845_v2 = vld [vmem:[%s3925_s19 + $0x368] sm:$0xff]  }
  0x8b   : > { %2295 = vmatmul.mubr.bf16.gmra.mrb[44].mxu0 %v3063_v3  ;;  %3645 = vmatprep.subr.bf16.mxu1 %v3827_v4  ;;  %v3847_v3 = vld [vmem:[%s3925_s19 + $0x3e8] sm:$0xff]   ;;  %v424_v4 = vld [vmem:[%s3961_s23 + $0x220] sm:$0xff] }
  0x8c   : > { %2384 = vmatmul.mubr.bf16.gmra.mrb[44].mxu1 %v3065_v5  ;;  %2302 = vmatprep.mubr.bf16.mxu0 %v3080_v6  ;;  %v432_v5 = vld [vmem:[%s3961_s23 + $0x260] sm:$0xff]  ;;  %v425_v6 = vld [vmem:[%s3961_s23 + $0x228] sm:$0xff] }
  0x8d   : > { %2391 = vmatprep.mubr.bf16.mxu1 %v3082_v7  ;;  %v3846_v7 = vld [vmem:[%s3925_s19 + $0x328] sm:$0xff]   ;;  %v3067_v26 = vcombine.low %v424_v4, %v432_v5 }
  0x93   : > { %2303 = vmatmul.mubr.bf16.gmra.mrb[48].mxu0 %v3079_v12  ;;  %v3851_v12 = vld [vmem:[%s3925_s19 + $0x3f0] sm:$0xff]  }
  0x94   : > { %2392 = vmatmul.mubr.bf16.gmra.mrb[48].mxu1 %v3081_v13  ;;  %2310 = vmatprep.mubr.bf16.mxu0 %v3096_v14  ;;  %v3053_v13 = vcombine.low %v409_v55, %v417_v56  ;;  %v3068_v14 = vcombine.high %v424_v4, %v432_v5  ;;  %v402_v55 = vld [vmem:[%s3961_s23 + $0x170] sm:$0xff]  ;;  %v395_v56 = vld [vmem:[%s3961_s23 + $0x138] sm:$0xff] }
  0x95   : > { %2399 = vmatprep.mubr.bf16.mxu1 %v3098_v15  ;;  %v3070_v15 = vcombine.high %v425_v6, %v433_v8 }
  0x9b   : > { %2311 = vmatmul.mubr.bf16.gmra.mrb[52].mxu0 %v3095_v20  ;;  %v440_v20 = vld [vmem:[%s3961_s23 + $0x2a0] sm:$0xff] }
  0x9c   : > { %2400 = vmatmul.mubr.bf16.gmra.mrb[52].mxu1 %v3097_v21  ;;  %2440 = vmatprep.mubr.bf16.mxu0 %v3004_v22  ;;  %v448_v21 = vld [vmem:[%s3961_s23 + $0x2e0] sm:$0xff]  ;;  %v3854_v22 = vld [vmem:[%s3925_s19 + $0x338] sm:$0xff]  }
  0x9d   : > { %2529 = vmatprep.mubr.bf16.mxu1 %v3006_v23  ;;  %v441_v23 = vld [vmem:[%s3961_s23 + $0x2a8] sm:$0xff]  ;;  %v3084_v28 = vcombine.high %v440_v20, %v448_v21 }
  0xa3   : > { %2441 = vmatmul.mubr.bf16.vlgmr.msra.gmra.mrb[56].mxu0 %v3003_v27  ;;  %v3069_v27 = vcombine.low %v425_v6, %v433_v8  ;;  %v426_v6 = vld [vmem:[%s3961_s23 + $0x230] sm:$0xff]  ;;  %v427_v8 = vld [vmem:[%s3961_s23 + $0x238] sm:$0xff] }
  0xa4   : > { %2530 = vmatmul.mubr.bf16.vlgmr.msra.gmra.mrb[56].mxu1 %v3005_v29  ;;  %3588 = vmatpush3.bf16.msra.mxu0 %v3826_v30  ;;  %v3086_v29 = vcombine.high %v441_v23, %v449_v24  ;;  %v456_v30 = vld [vmem:[%s3961_s23 + $0x320] sm:$0xff] }
  0xa5   : > { %3646 = vmatpush3.bf16.msra.mxu1 %v3828_v31  ;;  %2448 = vmatprep.mubr.bf16.mxu0 %v3020_v32  ;;  %v464_v31 = vld [vmem:[%s3961_s23 + $0x360] sm:$0xff]  ;;  %v457_v32 = vld [vmem:[%s3961_s23 + $0x328] sm:$0xff] }
  0xa6   : > { %2537 = vmatprep.mubr.bf16.mxu1 %v3022_v34  ;;  %3589 = vmatprep.subr.bf16.mxu0 %v3829_v33  ;;  %v465_v33 = vld [vmem:[%s3961_s23 + $0x368] sm:$0xff]  ;;  %v3083_v34 = vcombine.low %v440_v20, %v448_v21  ;;  %v3099_v42 = vcombine.low %v456_v30, %v464_v31 }
  0xa7   : > { %3647 = vmatprep.subr.bf16.mxu1 %v3831_v36  ;;  %v3100_v36 = vcombine.high %v456_v30, %v464_v31 }
  0xa8   : > { %3590 = vmatpush3.bf16.msra.mxu0 %v3830_v35  ;;  %v3085_v35 = vcombine.low %v441_v23, %v449_v24  ;;  %v466_v23 = vld [vmem:[%s3961_s23 + $0x370] sm:$0xff]  ;;  %v459_v24 = vld [vmem:[%s3961_s23 + $0x338] sm:$0xff] }
  0xa9   : > { %3648 = vmatpush3.bf16.msra.mxu1 %v3832_v37  ;;  %3591 = vmatprep.subr.bf16.mxu0 %v3833_v38  ;;  %v3102_v37 = vcombine.high %v457_v32, %v465_v33  ;;  %v362_v38 = vld [vmem:[%s3961_s23 + $0x30] sm:$0xff] }
  0xaa   : > { %3649 = vmatprep.subr.bf16.mxu1 %v3835_v43  ;;  %v3101_v43 = vcombine.low %v457_v32, %v465_v33 }
  0xab   : > { %2449 = vmatmul.mubr.bf16.gmra.mrb[60].mxu0 %v3019_v44  ;;  %v3008_v44 = vcombine.high %v362_v38, %v370_v39 }
  0xac   : > { %2538 = vmatmul.mubr.bf16.gmra.mrb[60].mxu1 %v3021_v45  ;;  %2456 = vmatprep.mubr.bf16.mxu0 %v3036_v46  ;;  %v3010_v45 = vcombine.high %v363_v40, %v371_v41  ;;  %v378_v46 = vld [vmem:[%s3961_s23 + $0xb0] sm:$0xff] }
  0xad   : > { %2545 = vmatprep.mubr.bf16.mxu1 %v3038_v48  ;;  %3592 = vmatpush3.bf16.msra.mxu0 %v3834_v47  ;;  %v386_v47 = vld [vmem:[%s3961_s23 + $0xf0] sm:$0xff]  ;;  %v379_v48 = vld [vmem:[%s3961_s23 + $0xb8] sm:$0xff] }
  0xae   : > { %3650 = vmatpush3.bf16.msra.mxu1 %v3836_v49  ;;  %3593 = vmatprep.subr.bf16.mxu0 %v3837_v50  ;;  %v387_v49 = vld [vmem:[%s3961_s23 + $0xf8] sm:$0xff]  ;;  %v3007_v50 = vcombine.low %v362_v38, %v370_v39 }
  0xaf   : > { %3651 = vmatprep.subr.bf16.mxu1 %v3839_v51  ;;  %v3009_v51 = vcombine.low %v363_v40, %v371_v41  ;;  %v3026_v53 = vcombine.high %v379_v48, %v387_v49 }
  0xb1   : > { %3594 = vmatpush3.bf16.msra.mxu0 %v3838_v52  ;;  %v3024_v52 = vcombine.high %v378_v46, %v386_v47 }
  0xb2   : > { %3652 = vmatpush3.bf16.msra.mxu1 %v3840_v57  ;;  %3595 = vmatprep.subr.bf16.mxu0 %v3841_v58  ;;  %v403_v57 = vld [vmem:[%s3961_s23 + $0x178] sm:$0xff]  ;;  %v3023_v58 = vcombine.low %v378_v46, %v386_v47 }
  0xb3   : > { %2457 = vmatmul.mubr.bf16.gmra.mrb[64].mxu0 %v3035_v59  ;;  %3653 = vmatprep.subr.bf16.mxu1 %v3843_v60  ;;  %v3025_v59 = vcombine.low %v379_v48, %v387_v49  ;;  %v3040_v60 = vcombine.high %v394_v54, %v402_v55 }
  0xb4   : > { %2546 = vmatmul.mubr.bf16.gmra.mrb[64].mxu1 %v3037_v61  ;;  %2464 = vmatprep.mubr.bf16.mxu0 %v3052_v62  ;;  %v3042_v61 = vcombine.high %v395_v56, %v403_v57  ;;  %v410_v62 = vld [vmem:[%s3961_s23 + $0x1b0] sm:$0xff] }
  0xb5   : > { %2553 = vmatprep.mubr.bf16.mxu1 %v3054_v63  ;;  %3596 = vmatpush3.bf16.msra.mxu0 %v3842_v0  ;;  %v418_v63 = vld [vmem:[%s3961_s23 + $0x1f0] sm:$0xff]  ;;  %v411_v0 = vld [vmem:[%s3961_s23 + $0x1b8] sm:$0xff] }
  0xb6   : > { %3654 = vmatpush3.bf16.msra.mxu1 %v3844_v1  ;;  %3597 = vmatprep.subr.bf16.mxu0 %v3845_v2  ;;  %v419_v1 = vld [vmem:[%s3961_s23 + $0x1f8] sm:$0xff]  ;;  %v3039_v2 = vcombine.low %v394_v54, %v402_v55  ;;  %v3056_v4 = vcombine.high %v410_v62, %v418_v63 }
  0xb7   : > { %3655 = vmatprep.subr.bf16.mxu1 %v3847_v3  ;;  %v3041_v3 = vcombine.low %v395_v56, %v403_v57  ;;  %v3058_v5 = vcombine.high %v411_v0, %v419_v1 }
  0xb9   : > { %3598 = vmatpush3.bf16.msra.mxu0 %v3846_v7  ;;  %v434_v7 = vld [vmem:[%s3961_s23 + $0x270] sm:$0xff] }
  0xba   : > { %3656 = vmatpush3.bf16.msra.mxu1 %v3848_v9  ;;  %3599 = vmatprep.subr.bf16.mxu0 %v3849_v10  ;;  %v435_v9 = vld [vmem:[%s3961_s23 + $0x278] sm:$0xff]  ;;  %v3055_v10 = vcombine.low %v410_v62, %v418_v63 }
  0xbb   : > { %2465 = vmatmul.mubr.bf16.gmra.mrb[68].mxu0 %v3051_v11  ;;  %3657 = vmatprep.subr.bf16.mxu1 %v3851_v12  ;;  %v3057_v11 = vcombine.low %v411_v0, %v419_v1  ;;  %v3072_v12 = vcombine.high %v426_v6, %v434_v7 }
  0xbc   : > { %2554 = vmatmul.mubr.bf16.gmra.mrb[68].mxu1 %v3053_v13  ;;  %2472 = vmatprep.mubr.bf16.mxu0 %v3068_v14  ;;  %v3074_v13 = vcombine.high %v427_v8, %v435_v9  ;;  %v442_v14 = vld [vmem:[%s3961_s23 + $0x2b0] sm:$0xff] }
  0xbd   : > { %2561 = vmatprep.mubr.bf16.mxu1 %v3070_v15  ;;  %3600 = vmatpush3.bf16.msra.mxu0 %v3850_v16  ;;  %v450_v15 = vld [vmem:[%s3961_s23 + $0x2f0] sm:$0xff]  ;;  %v443_v16 = vld [vmem:[%s3961_s23 + $0x2b8] sm:$0xff] }
  0xbe   : > { %3658 = vmatpush3.bf16.msra.mxu1 %v3852_v17  ;;  %3601 = vmatprep.subr.bf16.mxu0 %v3853_v18  ;;  %v451_v17 = vld [vmem:[%s3961_s23 + $0x2f8] sm:$0xff]  ;;  %v3071_v18 = vcombine.low %v426_v6, %v434_v7  ;;  %v3088_v20 = vcombine.high %v442_v14, %v450_v15 }
  0xbf   : > { %3659 = vmatprep.subr.bf16.mxu1 %v3855_v19  ;;  %v3073_v19 = vcombine.low %v427_v8, %v435_v9  ;;  %v3090_v21 = vcombine.high %v443_v16, %v451_v17 }
  0xc1   : > { %3602 = vmatpush3.bf16.msra.mxu0 %v3854_v22  ;;  %v458_v22 = vld [vmem:[%s3961_s23 + $0x330] sm:$0xff] }
  0xc2   : > { %3660 = vmatpush3.bf16.msra.mxu1 %v3856_v25  ;;  %v467_v25 = vld [vmem:[%s3961_s23 + $0x378] sm:$0xff]  ;;  %v3103_v33 = vcombine.low %v458_v22, %v466_v23 }
  0xc3   : > { %2473 = vmatmul.mubr.bf16.gmra.mrb[72].mxu0 %v3067_v26  ;;  %v3087_v26 = vcombine.low %v442_v14, %v450_v15 }
  0xc4   : > { %2562 = vmatmul.mubr.bf16.gmra.mrb[72].mxu1 %v3069_v27  ;;  %2480 = vmatprep.mubr.bf16.mxu0 %v3084_v28  ;;  %v3089_v27 = vcombine.low %v443_v16, %v451_v17  ;;  %v3104_v28 = vcombine.high %v458_v22, %v466_v23 }
  0xc5   : > { %2569 = vmatprep.mubr.bf16.mxu1 %v3086_v29  ;;  %v3106_v29 = vcombine.high %v459_v24, %v467_v25 }
  0xcb   : > { %2481 = vmatmul.mubr.bf16.gmra.mrb[76].mxu0 %v3083_v34 }
  0xcc   : > { %2570 = vmatmul.mubr.bf16.gmra.mrb[76].mxu1 %v3085_v35  ;;  %2488 = vmatprep.mubr.bf16.mxu0 %v3100_v36 }
  0xcd   : > { %2577 = vmatprep.mubr.bf16.mxu1 %v3102_v37  ;;  %v3105_v37 = vcombine.low %v459_v24, %v467_v25 }
  0xd3   : > { %2489 = vmatmul.mubr.bf16.gmra.mrb[80].mxu0 %v3099_v42 }
  0xd4   : > { %2578 = vmatmul.mubr.bf16.gmra.mrb[80].mxu1 %v3101_v43  ;;  %2618 = vmatprep.mubr.bf16.mxu0 %v3008_v44 }
  0xd5   : > { %2707 = vmatprep.mubr.bf16.mxu1 %v3010_v45 }
  0xdb   : > { %2619 = vmatmul.mubr.bf16.vlgmr.msra.gmra.mrb[84].mxu0 %v3007_v50 }
  0xdc   : > { %2708 = vmatmul.mubr.bf16.vlgmr.msra.gmra.mrb[84].mxu1 %v3009_v51  ;;  %2626 = vmatprep.mubr.bf16.mxu0 %v3024_v52 }
  0xdd   : > { %2715 = vmatprep.mubr.bf16.mxu1 %v3026_v53 }
  0xe3   : > { %2627 = vmatmul.mubr.bf16.gmra.mrb[88].mxu0 %v3023_v58 }
  0xe4   : > { %2716 = vmatmul.mubr.bf16.gmra.mrb[88].mxu1 %v3025_v59  ;;  %2634 = vmatprep.mubr.bf16.mxu0 %v3040_v60 }
  0xe5   : > { %2723 = vmatprep.mubr.bf16.mxu1 %v3042_v61 }
  0xeb   : > { %2635 = vmatmul.mubr.bf16.gmra.mrb[92].mxu0 %v3039_v2 }
  0xec   : > { %2724 = vmatmul.mubr.bf16.gmra.mrb[92].mxu1 %v3041_v3  ;;  %2642 = vmatprep.mubr.bf16.mxu0 %v3056_v4 }
  0xed   : > { %2731 = vmatprep.mubr.bf16.mxu1 %v3058_v5 }
  0xf3   : > { %2643 = vmatmul.mubr.bf16.gmra.mrb[96].mxu0 %v3055_v10 }
  0xf4   : > { %2732 = vmatmul.mubr.bf16.gmra.mrb[96].mxu1 %v3057_v11  ;;  %2650 = vmatprep.mubr.bf16.mxu0 %v3072_v12 }
  0xf5   : > { %2739 = vmatprep.mubr.bf16.mxu1 %v3074_v13 }
  0xfb   : > { %2651 = vmatmul.mubr.bf16.gmra.mrb[100].mxu0 %v3071_v18 }
  0xfc   : > { %2740 = vmatmul.mubr.bf16.gmra.mrb[100].mxu1 %v3073_v19  ;;  %2658 = vmatprep.mubr.bf16.mxu0 %v3088_v20 }
  0xfd   : > { %2747 = vmatprep.mubr.bf16.mxu1 %v3090_v21 }
 0x103   : > { %2659 = vmatmul.mubr.bf16.gmra.mrb[104].mxu0 %v3087_v26 }
 0x104   : > { %2748 = vmatmul.mubr.bf16.gmra.mrb[104].mxu1 %v3089_v27  ;;  %2666 = vmatprep.mubr.bf16.mxu0 %v3104_v28 }
 0x105   : > { %2755 = vmatprep.mubr.bf16.mxu1 %v3106_v29 }
 0x106   : > { %v3255_v30 = vpop.f32.mrb[0].mxu0 }
 0x107   : > { %v3313_v31 = vpop.f32.mrb[0].mxu1  ;;  %v3256_v32 = vpop.f32.mrb[1].mxu0 }
 0x108   : > { %v3257_v34 = vadd.f32 %v3256_v32, %v3255_v30  ;;  %v3314_v35 = vpop.f32.mrb[1].mxu1  ;;  %v3258_v36 = vpop.f32.mrb[2].mxu0 }
 0x109   : > { %v3315_v38 = vadd.f32 %v3314_v35, %v3313_v31  ;;  %v3316_v39 = vpop.f32.mrb[2].mxu1  ;;  %v3259_v40 = vpop.f32.mrb[3].mxu0 }
 0x10a   : > { %v3260_v41 = vadd.f32 %v3259_v40, %v3258_v36  ;;  %v3317_v42 = vpop.f32.mrb[3].mxu1 }
 0x10b   : > { %v4173_v43 = vadd.f32 %v3315_v38, %v3257_v34  ;;  %v3318_v44 = vadd.f32 %v3317_v42, %v3316_v39  ;;  %2667 = vmatmul.mubr.bf16.gmra.mrb[108].mxu0 %v3103_v33 }
 0x10c   : > { %2756 = vmatmul.mubr.bf16.gmra.mrb[108].mxu1 %v3105_v37 }
 0x10d   : > { %v4175_v45 = vadd.f32 %v3318_v44, %v3260_v41 }
 0x10e   : > { %v3261_v46 = vpop.f32.mrb[4].mxu0 }
 0x10f   : > { %v3319_v47 = vpop.f32.mrb[4].mxu1  ;;  %v3262_v48 = vpop.f32.mrb[5].mxu0 }
 0x110   : > { %v3263_v49 = vadd.f32 %v3262_v48, %v3261_v46  ;;  %v3320_v50 = vpop.f32.mrb[5].mxu1  ;;  %v3264_v51 = vpop.f32.mrb[6].mxu0 }
 0x111   : > { %v3321_v52 = vadd.f32 %v3320_v50, %v3319_v47  ;;  %v3322_v53 = vpop.f32.mrb[6].mxu1  ;;  %v3265_v54 = vpop.f32.mrb[7].mxu0 }
 0x112   : > { %v3266_v55 = vadd.f32 %v3265_v54, %v3264_v51  ;;  %v3323_v56 = vpop.f32.mrb[7].mxu1 }
 0x113   : > { %v4177_v57 = vadd.f32 %v3321_v52, %v3263_v49  ;;  %v3324_v58 = vadd.f32 %v3323_v56, %v3322_v53 }
 0x115   : > { %v4179_v59 = vadd.f32 %v3324_v58, %v3266_v55 }
 0x116   : > { %v3267_v60 = vpop.f32.mrb[8].mxu0 }
 0x117   : > { %v3325_v61 = vpop.f32.mrb[8].mxu1  ;;  %v3268_v62 = vpop.f32.mrb[9].mxu0 }
 0x118   : > { %v3269_v63 = vadd.f32 %v3268_v62, %v3267_v60  ;;  %v3326_v0 = vpop.f32.mrb[9].mxu1  ;;  %v3270_v1 = vpop.f32.mrb[10].mxu0 }
 0x119   : > { %v3327_v2 = vadd.f32 %v3326_v0, %v3325_v61  ;;  %v3328_v3 = vpop.f32.mrb[10].mxu1  ;;  %v3271_v4 = vpop.f32.mrb[11].mxu0 }
 0x11a   : > { %v3272_v5 = vadd.f32 %v3271_v4, %v3270_v1  ;;  %v3329_v6 = vpop.f32.mrb[11].mxu1 }
 0x11b   : > { %v4181_v7 = vadd.f32 %v3327_v2, %v3269_v63  ;;  %v3330_v8 = vadd.f32 %v3329_v6, %v3328_v3 }
 0x11d   : > { %v4183_v9 = vadd.f32 %v3330_v8, %v3272_v5 }
 0x11e   : > { %v3273_v10 = vpop.f32.mrb[12].mxu0 }
 0x11f   : > { %v3331_v11 = vpop.f32.mrb[12].mxu1  ;;  %v3274_v12 = vpop.f32.mrb[13].mxu0 }
 0x120   : > { %v3275_v13 = vadd.f32 %v3274_v12, %v3273_v10  ;;  %v3332_v14 = vpop.f32.mrb[13].mxu1  ;;  %v3276_v15 = vpop.f32.mrb[14].mxu0 }
 0x121   : > { %v3333_v16 = vadd.f32 %v3332_v14, %v3331_v11  ;;  %v3334_v17 = vpop.f32.mrb[14].mxu1  ;;  %v3277_v18 = vpop.f32.mrb[15].mxu0 }
 0x122   : > { %v3278_v19 = vadd.f32 %v3277_v18, %v3276_v15  ;;  %v3335_v20 = vpop.f32.mrb[15].mxu1 }
 0x123   : > { %v4185_v21 = vadd.f32 %v3333_v16, %v3275_v13  ;;  %v3336_v22 = vadd.f32 %v3335_v20, %v3334_v17 }
 0x125   : > { %v4187_v23 = vadd.f32 %v3336_v22, %v3278_v19 }
 0x126   : > { %v3279_v24 = vpop.f32.mrb[16].mxu0 }
 0x127   : > { %v3337_v25 = vpop.f32.mrb[16].mxu1  ;;  %v3280_v26 = vpop.f32.mrb[17].mxu0 }
 0x128   : > { %v3281_v27 = vadd.f32 %v3280_v26, %v3279_v24  ;;  %v3338_v28 = vpop.f32.mrb[17].mxu1  ;;  %v3282_v29 = vpop.f32.mrb[18].mxu0 }
 0x129   : > { %v3339_v30 = vadd.f32 %v3338_v28, %v3337_v25  ;;  %v3340_v31 = vpop.f32.mrb[18].mxu1  ;;  %v3283_v32 = vpop.f32.mrb[19].mxu0 }
 0x12a   : > { %v3284_v33 = vadd.f32 %v3283_v32, %v3282_v29  ;;  %v3341_v34 = vpop.f32.mrb[19].mxu1 }
 0x12b   : > { %v4189_v35 = vadd.f32 %v3339_v30, %v3281_v27  ;;  %v3342_v36 = vadd.f32 %v3341_v34, %v3340_v31 }
 0x12d   : > { %v4191_v37 = vadd.f32 %v3342_v36, %v3284_v33 }
 0x12e   : > { %v3285_v38 = vpop.f32.mrb[20].mxu0 }
 0x12f   : > { %v3343_v39 = vpop.f32.mrb[20].mxu1  ;;  %v3286_v40 = vpop.f32.mrb[21].mxu0 }
 0x130   : > { %v3287_v41 = vadd.f32 %v3286_v40, %v3285_v38  ;;  %v3344_v42 = vpop.f32.mrb[21].mxu1  ;;  %v3288_v44 = vpop.f32.mrb[22].mxu0 }
 0x131   : > { %v3345_v46 = vadd.f32 %v3344_v42, %v3343_v39  ;;  %v3346_v47 = vpop.f32.mrb[22].mxu1  ;;  %v3289_v48 = vpop.f32.mrb[23].mxu0 }
 0x132   : > { %v3290_v49 = vadd.f32 %v3289_v48, %v3288_v44  ;;  %v3347_v50 = vpop.f32.mrb[23].mxu1 }
 0x133   : > { %v4193_v51 = vadd.f32 %v3345_v46, %v3287_v41  ;;  %v3348_v52 = vadd.f32 %v3347_v50, %v3346_v47 }
 0x135   : > { %v4195_v53 = vadd.f32 %v3348_v52, %v3290_v49 }
 0x136   : > { %v3291_v54 = vpop.f32.mrb[24].mxu0 }
 0x137   : > { %v3349_v55 = vpop.f32.mrb[24].mxu1  ;;  %v3292_v56 = vpop.f32.mrb[25].mxu0 }
 0x138   : > { %v3293_v58 = vadd.f32 %v3292_v56, %v3291_v54  ;;  %v3350_v60 = vpop.f32.mrb[25].mxu1  ;;  %v3294_v61 = vpop.f32.mrb[26].mxu0 }
 0x139   : > { %v3351_v62 = vadd.f32 %v3350_v60, %v3349_v55  ;;  %v3352_v63 = vpop.f32.mrb[26].mxu1  ;;  %v3295_v0 = vpop.f32.mrb[27].mxu0 }
 0x13a   : > { %v3296_v1 = vadd.f32 %v3295_v0, %v3294_v61  ;;  %v3353_v2 = vpop.f32.mrb[27].mxu1 }
 0x13b   : > { %v4197_v3 = vadd.f32 %v3351_v62, %v3293_v58  ;;  %v3354_v4 = vadd.f32 %v3353_v2, %v3352_v63 }
 0x13d   : > { %v4199_v5 = vadd.f32 %v3354_v4, %v3296_v1 }
 0x13e   : > { %v3371_v6 = vpop.f32.mrb[28].mxu0 }
 0x13f   : > { %v3429_v8 = vpop.f32.mrb[28].mxu1  ;;  %v3372_v10 = vpop.f32.mrb[29].mxu0 }
 0x140   : > { %v3373_v11 = vadd.f32 %v3372_v10, %v3371_v6  ;;  %v3430_v12 = vpop.f32.mrb[29].mxu1  ;;  %v3374_v13 = vpop.f32.mrb[30].mxu0 }
 0x141   : > { %v3431_v14 = vadd.f32 %v3430_v12, %v3429_v8  ;;  %v3432_v15 = vpop.f32.mrb[30].mxu1  ;;  %v3375_v16 = vpop.f32.mrb[31].mxu0 }
 0x142   : > { %v2265_v17 = vadd.f32 %v3373_v11, %v4173_v43  ;;  %v3376_v18 = vadd.f32 %v3375_v16, %v3374_v13  ;;  %v3433_v19 = vpop.f32.mrb[31].mxu1 }
 0x143   : > { %v3434_v20 = vadd.f32 %v3433_v19, %v3432_v15 }
 0x144   : > { %v4202_v22 = vadd.f32 %v3431_v14, %v2265_v17  ;;  %v2268_v24 = vadd.f32 %v3376_v18, %v4175_v45 }
 0x146   : > { %v4205_v25 = vadd.f32 %v3434_v20, %v2268_v24  ;;  %v3377_v26 = vpop.f32.mrb[32].mxu0 }
 0x147   : > { %v3435_v27 = vpop.f32.mrb[32].mxu1  ;;  %v3378_v28 = vpop.f32.mrb[33].mxu0 }
 0x148   : > { %v3379_v29 = vadd.f32 %v3378_v28, %v3377_v26  ;;  %v3436_v30 = vpop.f32.mrb[33].mxu1  ;;  %v3380_v31 = vpop.f32.mrb[34].mxu0 }
 0x149   : > { %v3437_v32 = vadd.f32 %v3436_v30, %v3435_v27  ;;  %v3438_v33 = vpop.f32.mrb[34].mxu1  ;;  %v3381_v34 = vpop.f32.mrb[35].mxu0 }
 0x14a   : > { %v2273_v43 = vadd.f32 %v3379_v29, %v4177_v57  ;;  %v3382_v36 = vadd.f32 %v3381_v34, %v3380_v31  ;;  %v3439_v38 = vpop.f32.mrb[35].mxu1 }
 0x14b   : > { %v3440_v39 = vadd.f32 %v3439_v38, %v3438_v33 }
 0x14c   : > { %v4208_v40 = vadd.f32 %v3437_v32, %v2273_v43  ;;  %v2276_v45 = vadd.f32 %v3382_v36, %v4179_v59 }
 0x14e   : > { %v4211_v41 = vadd.f32 %v3440_v39, %v2276_v45  ;;  %v3383_v42 = vpop.f32.mrb[36].mxu0 }
 0x14f   : > { %v3441_v44 = vpop.f32.mrb[36].mxu1  ;;  %v3384_v46 = vpop.f32.mrb[37].mxu0 }
 0x150   : > { %v3385_v47 = vadd.f32 %v3384_v46, %v3383_v42  ;;  %v3442_v48 = vpop.f32.mrb[37].mxu1  ;;  %v3386_v49 = vpop.f32.mrb[38].mxu0 }
 0x151   : > { %v3443_v50 = vadd.f32 %v3442_v48, %v3441_v44  ;;  %v3444_v52 = vpop.f32.mrb[38].mxu1  ;;  %v3387_v54 = vpop.f32.mrb[39].mxu0 }
 0x152   : > { %v2281_v57 = vadd.f32 %v3385_v47, %v4181_v7  ;;  %v3388_v55 = vadd.f32 %v3387_v54, %v3386_v49  ;;  %v3445_v56 = vpop.f32.mrb[39].mxu1 }
 0x153   : > { %v3446_v58 = vadd.f32 %v3445_v56, %v3444_v52 }
 0x154   : > { %v4214_v60 = vadd.f32 %v3443_v50, %v2281_v57  ;;  %v2284_v59 = vadd.f32 %v3388_v55, %v4183_v9 }
 0x156   : > { %v4217_v61 = vadd.f32 %v3446_v58, %v2284_v59  ;;  %v3389_v62 = vpop.f32.mrb[40].mxu0 }
 0x157   : > { %v3447_v63 = vpop.f32.mrb[40].mxu1  ;;  %v3390_v0 = vpop.f32.mrb[41].mxu0 }
 0x158   : > { %v3391_v1 = vadd.f32 %v3390_v0, %v3389_v62  ;;  %v3448_v2 = vpop.f32.mrb[41].mxu1  ;;  %v3392_v4 = vpop.f32.mrb[42].mxu0 }
 0x159   : > { %v3449_v6 = vadd.f32 %v3448_v2, %v3447_v63  ;;  %v3450_v8 = vpop.f32.mrb[42].mxu1  ;;  %v3393_v10 = vpop.f32.mrb[43].mxu0 }
 0x15a   : > { %v2289_v7 = vadd.f32 %v3391_v1, %v4185_v21  ;;  %v3394_v11 = vadd.f32 %v3393_v10, %v3392_v4  ;;  %v3451_v12 = vpop.f32.mrb[43].mxu1 }
 0x15b   : > { %v3452_v13 = vadd.f32 %v3451_v12, %v3450_v8 }
 0x15c   : > { %v4220_v14 = vadd.f32 %v3449_v6, %v2289_v7  ;;  %v2292_v9 = vadd.f32 %v3394_v11, %v4187_v23 }
 0x15e   : > { %v4223_v15 = vadd.f32 %v3452_v13, %v2292_v9  ;;  %v3395_v16 = vpop.f32.mrb[44].mxu0 }
 0x15f   : > { %v3453_v17 = vpop.f32.mrb[44].mxu1  ;;  %v3396_v18 = vpop.f32.mrb[45].mxu0 }
 0x160   : > { %v3397_v19 = vadd.f32 %v3396_v18, %v3395_v16  ;;  %v3454_v20 = vpop.f32.mrb[45].mxu1  ;;  %v3398_v24 = vpop.f32.mrb[46].mxu0 }
 0x161   : > { %v3455_v26 = vadd.f32 %v3454_v20, %v3453_v17  ;;  %v3456_v27 = vpop.f32.mrb[46].mxu1  ;;  %v3399_v28 = vpop.f32.mrb[47].mxu0 }
 0x162   : > { %v2297_v21 = vadd.f32 %v3397_v19, %v4189_v35  ;;  %v3400_v29 = vadd.f32 %v3399_v28, %v3398_v24  ;;  %v3457_v30 = vpop.f32.mrb[47].mxu1 }
 0x163   : > { %v3458_v31 = vadd.f32 %v3457_v30, %v3456_v27 }
 0x164   : > { %v4226_v32 = vadd.f32 %v3455_v26, %v2297_v21  ;;  %v2300_v23 = vadd.f32 %v3400_v29, %v4191_v37 }
 0x166   : > { %v4229_v33 = vadd.f32 %v3458_v31, %v2300_v23  ;;  %v3401_v34 = vpop.f32.mrb[48].mxu0 }
 0x167   : > { %v3459_v43 = vpop.f32.mrb[48].mxu1  ;;  %v3402_v36 = vpop.f32.mrb[49].mxu0 }
 0x168   : > { %v3403_v38 = vadd.f32 %v3402_v36, %v3401_v34  ;;  %v3460_v39 = vpop.f32.mrb[49].mxu1  ;;  %v3404_v45 = vpop.f32.mrb[50].mxu0 }
 0x169   : > { %v3461_v42 = vadd.f32 %v3460_v39, %v3459_v43  ;;  %v3462_v44 = vpop.f32.mrb[50].mxu1  ;;  %v3405_v46 = vpop.f32.mrb[51].mxu0 }
 0x16a   : > { %v2305_v35 = vadd.f32 %v3403_v38, %v4193_v51  ;;  %v3406_v47 = vadd.f32 %v3405_v46, %v3404_v45  ;;  %v3463_v48 = vpop.f32.mrb[51].mxu1 }
 0x16b   : > { %v3464_v49 = vadd.f32 %v3463_v48, %v3462_v44 }
 0x16c   : > { %v4232_v50 = vadd.f32 %v3461_v42, %v2305_v35  ;;  %v2308_v37 = vadd.f32 %v3406_v47, %v4195_v53 }
 0x16e   : > { %v4235_v52 = vadd.f32 %v3464_v49, %v2308_v37  ;;  %v3407_v54 = vpop.f32.mrb[52].mxu0 }
 0x16f   : > { %v3465_v57 = vpop.f32.mrb[52].mxu1  ;;  %v3408_v55 = vpop.f32.mrb[53].mxu0 }
 0x170   : > { %v3409_v56 = vadd.f32 %v3408_v55, %v3407_v54  ;;  %v3466_v58 = vpop.f32.mrb[53].mxu1  ;;  %v3410_v59 = vpop.f32.mrb[54].mxu0 }
 0x171   : > { %v3467_v62 = vadd.f32 %v3466_v58, %v3465_v57  ;;  %v3468_v63 = vpop.f32.mrb[54].mxu1  ;;  %v3411_v0 = vpop.f32.mrb[55].mxu0 }
 0x172   : > { %v2313_v51 = vadd.f32 %v3409_v56, %v4197_v3  ;;  %v3412_v1 = vadd.f32 %v3411_v0, %v3410_v59  ;;  %v3469_v2 = vpop.f32.mrb[55].mxu1 }
 0x173   : > { %v3470_v4 = vadd.f32 %v3469_v2, %v3468_v63 }
 0x174   : > { %v4238_v6 = vadd.f32 %v3467_v62, %v2313_v51  ;;  %v2316_v53 = vadd.f32 %v3412_v1, %v4199_v5 }
 0x176   : > { %v4241_v8 = vadd.f32 %v3470_v4, %v2316_v53  ;;  %v3487_v10 = vpop.f32.mrb[56].mxu0 }
 0x177   : > { %v3545_v7 = vpop.f32.mrb[56].mxu1  ;;  %v3488_v11 = vpop.f32.mrb[57].mxu0 }
 0x178   : > { %v3489_v12 = vadd.f32 %v3488_v11, %v3487_v10  ;;  %v3546_v13 = vpop.f32.mrb[57].mxu1  ;;  %v3490_v9 = vpop.f32.mrb[58].mxu0 }
 0x179   : > { %v3547_v16 = vadd.f32 %v3546_v13, %v3545_v7  ;;  %v3548_v17 = vpop.f32.mrb[58].mxu1  ;;  %v3491_v18 = vpop.f32.mrb[59].mxu0 }
 0x17a   : > { %v2443_v3 = vadd.f32 %v3489_v12, %v4202_v22  ;;  %v3492_v19 = vadd.f32 %v3491_v18, %v3490_v9  ;;  %v3549_v20 = vpop.f32.mrb[59].mxu1 }
 0x17b   : > { %v3550_v24 = vadd.f32 %v3549_v20, %v3548_v17 }
 0x17c   : > { %v4244_v26 = vadd.f32 %v3547_v16, %v2443_v3  ;;  %v2446_v5 = vadd.f32 %v3492_v19, %v4205_v25 }
 0x17e   : > { %v4247_v27 = vadd.f32 %v3550_v24, %v2446_v5  ;;  %v3493_v28 = vpop.f32.mrb[60].mxu0 }
 0x17f   : > { %v3551_v21 = vpop.f32.mrb[60].mxu1  ;;  %v3494_v29 = vpop.f32.mrb[61].mxu0 }
 0x180   : > { %v3495_v30 = vadd.f32 %v3494_v29, %v3493_v28  ;;  %v3552_v31 = vpop.f32.mrb[61].mxu1  ;;  %v3496_v23 = vpop.f32.mrb[62].mxu0 }
 0x181   : > { %v3553_v34 = vadd.f32 %v3552_v31, %v3551_v21  ;;  %v3554_v43 = vpop.f32.mrb[62].mxu1  ;;  %v3497_v36 = vpop.f32.mrb[63].mxu0 }
 0x182   : > { %v2451_v22 = vadd.f32 %v3495_v30, %v4208_v40  ;;  %v3498_v38 = vadd.f32 %v3497_v36, %v3496_v23  ;;  %v3555_v39 = vpop.f32.mrb[63].mxu1 }
 0x183   : > { %v3556_v45 = vadd.f32 %v3555_v39, %v3554_v43 }
 0x184   : > { %v4250_v42 = vadd.f32 %v3553_v34, %v2451_v22  ;;  %v2454_v25 = vadd.f32 %v3498_v38, %v4211_v41 }
 0x186   : > { %v4253_v44 = vadd.f32 %v3556_v45, %v2454_v25  ;;  %v3499_v46 = vpop.f32.mrb[64].mxu0 }
 0x187   : > { %v3557_v35 = vpop.f32.mrb[64].mxu1  ;;  %v3500_v47 = vpop.f32.mrb[65].mxu0 }
 0x188   : > { %v3501_v48 = vadd.f32 %v3500_v47, %v3499_v46  ;;  %v3558_v49 = vpop.f32.mrb[65].mxu1  ;;  %v3502_v37 = vpop.f32.mrb[66].mxu0 }
 0x189   : > { %v3559_v54 = vadd.f32 %v3558_v49, %v3557_v35  ;;  %v3560_v57 = vpop.f32.mrb[66].mxu1  ;;  %v3503_v55 = vpop.f32.mrb[67].mxu0 }
 0x18a   : > { %v2459_v40 = vadd.f32 %v3501_v48, %v4214_v60  ;;  %v3504_v56 = vadd.f32 %v3503_v55, %v3502_v37  ;;  %v3561_v58 = vpop.f32.mrb[67].mxu1 }
 0x18b   : > { %v3562_v59 = vadd.f32 %v3561_v58, %v3560_v57 }
 0x18c   : > { %v4256_v62 = vadd.f32 %v3559_v54, %v2459_v40  ;;  %v2462_v41 = vadd.f32 %v3504_v56, %v4217_v61 }
 0x18e   : > { %v4259_v63 = vadd.f32 %v3562_v59, %v2462_v41  ;;  %v3505_v0 = vpop.f32.mrb[68].mxu0 }
 0x18f   : > { %v3563_v51 = vpop.f32.mrb[68].mxu1  ;;  %v3506_v1 = vpop.f32.mrb[69].mxu0 }
 0x190   : > { %v3507_v2 = vadd.f32 %v3506_v1, %v3505_v0  ;;  %v3564_v4 = vpop.f32.mrb[69].mxu1  ;;  %v3508_v53 = vpop.f32.mrb[70].mxu0 }
 0x191   : > { %v3565_v10 = vadd.f32 %v3564_v4, %v3563_v51  ;;  %v3566_v7 = vpop.f32.mrb[70].mxu1  ;;  %v3509_v11 = vpop.f32.mrb[71].mxu0 }
 0x192   : > { %v2467_v60 = vadd.f32 %v3507_v2, %v4220_v14  ;;  %v3510_v12 = vadd.f32 %v3509_v11, %v3508_v53  ;;  %v3567_v13 = vpop.f32.mrb[71].mxu1 }
 0x193   : > { %v3568_v9 = vadd.f32 %v3567_v13, %v3566_v7 }
 0x194   : > { %v4262_v16 = vadd.f32 %v3565_v10, %v2467_v60  ;;  %v2470_v61 = vadd.f32 %v3510_v12, %v4223_v15 }
 0x196   : > { %v4265_v17 = vadd.f32 %v3568_v9, %v2470_v61  ;;  %v3511_v18 = vpop.f32.mrb[72].mxu0 }
 0x197   : > { %v3569_v3 = vpop.f32.mrb[72].mxu1  ;;  %v3512_v19 = vpop.f32.mrb[73].mxu0 }
 0x198   : > { %v3513_v20 = vadd.f32 %v3512_v19, %v3511_v18  ;;  %v3570_v24 = vpop.f32.mrb[73].mxu1  ;;  %v3514_v5 = vpop.f32.mrb[74].mxu0 }
 0x199   : > { %v3571_v28 = vadd.f32 %v3570_v24, %v3569_v3  ;;  %v3572_v21 = vpop.f32.mrb[74].mxu1  ;;  %v3515_v29 = vpop.f32.mrb[75].mxu0  ;;  %v4291_v24 = vld [vmem:[%s309_s26] ss:$0 sm:$0xff] }
 0x19a   : > { %v2475_v14 = vadd.f32 %v3513_v20, %v4226_v32  ;;  %v3516_v30 = vadd.f32 %v3515_v29, %v3514_v5  ;;  %v3573_v31 = vpop.f32.mrb[75].mxu1 }
 0x19b   : > { %v3574_v23 = vadd.f32 %v3573_v31, %v3572_v21 }
 0x19c   : > { %v4268_v34 = vadd.f32 %v3571_v28, %v2475_v14  ;;  %v2478_v15 = vadd.f32 %v3516_v30, %v4229_v33 }
 0x19e   : > { %v4271_v43 = vadd.f32 %v3574_v23, %v2478_v15  ;;  %v3517_v36 = vpop.f32.mrb[76].mxu0 }
 0x19f   : > { %v3575_v22 = vpop.f32.mrb[76].mxu1  ;;  %v3518_v38 = vpop.f32.mrb[77].mxu0 }
 0x1a0   : > { %v3519_v39 = vadd.f32 %v3518_v38, %v3517_v36  ;;  %v3576_v45 = vpop.f32.mrb[77].mxu1  ;;  %v3520_v25 = vpop.f32.mrb[78].mxu0 }
 0x1a1   : > { %v3577_v46 = vadd.f32 %v3576_v45, %v3575_v22  ;;  %v3578_v35 = vpop.f32.mrb[78].mxu1  ;;  %v3521_v47 = vpop.f32.mrb[79].mxu0 }
 0x1a2   : > { %v2483_v32 = vadd.f32 %v3519_v39, %v4232_v50  ;;  %v3522_v48 = vadd.f32 %v3521_v47, %v3520_v25  ;;  %v3579_v49 = vpop.f32.mrb[79].mxu1 }
 0x1a3   : > { %v3580_v37 = vadd.f32 %v3579_v49, %v3578_v35 }
 0x1a4   : > { %v4274_v54 = vadd.f32 %v3577_v46, %v2483_v32  ;;  %v2486_v33 = vadd.f32 %v3522_v48, %v4235_v52 }
 0x1a6   : > { %v4277_v57 = vadd.f32 %v3580_v37, %v2486_v33  ;;  %v3523_v55 = vpop.f32.mrb[80].mxu0 }
 0x1a7   : > { %v3581_v40 = vpop.f32.mrb[80].mxu1  ;;  %v3524_v56 = vpop.f32.mrb[81].mxu0 }
 0x1a8   : > { %v3525_v58 = vadd.f32 %v3524_v56, %v3523_v55  ;;  %v3582_v59 = vpop.f32.mrb[81].mxu1  ;;  %v3526_v41 = vpop.f32.mrb[82].mxu0 }
 0x1a9   : > { %v3583_v0 = vadd.f32 %v3582_v59, %v3581_v40  ;;  %v3584_v51 = vpop.f32.mrb[82].mxu1  ;;  %v3527_v50 = vpop.f32.mrb[83].mxu0 }
 0x1aa   : > { %v2491_v1 = vadd.f32 %v3525_v58, %v4238_v6  ;;  %v3528_v2 = vadd.f32 %v3527_v50, %v3526_v41  ;;  %v3585_v4 = vpop.f32.mrb[83].mxu1 }
 0x1ab   : > { %v3586_v53 = vadd.f32 %v3585_v4, %v3584_v51 }
 0x1ac   : > { %v4280_v10 = vadd.f32 %v3583_v0, %v2491_v1  ;;  %v2494_v52 = vadd.f32 %v3528_v2, %v4241_v8 }
 0x1ae   : > { %v4283_v7 = vadd.f32 %v3586_v53, %v2494_v52  ;;  %v3603_v11 = vpop.f32.mrb[84].mxu0 }
 0x1af   : > { %v3661_v60 = vpop.f32.mrb[84].mxu1  ;;  %v3604_v12 = vpop.f32.mrb[85].mxu0 }
 0x1b0   : > { %v3605_v13 = vadd.f32 %v3604_v12, %v3603_v11  ;;  %v3662_v9 = vpop.f32.mrb[85].mxu1  ;;  %v3606_v61 = vpop.f32.mrb[86].mxu0 }
 0x1b1   : > { %v3663_v6 = vadd.f32 %v3662_v9, %v3661_v60  ;;  %v3664_v18 = vpop.f32.mrb[86].mxu1  ;;  %v3607_v3 = vpop.f32.mrb[87].mxu0 }
 0x1b2   : > { %v2621_v19 = vadd.f32 %v3605_v13, %v4244_v26  ;;  %v3608_v20 = vadd.f32 %v3607_v3, %v3606_v61  ;;  %v3665_v8 = vpop.f32.mrb[87].mxu1 }
 0x1b3   : > { %v3666_v5 = vadd.f32 %v3665_v8, %v3664_v18 }
 0x1b4   : > { %v2710_v28 = vadd.f32 %v3663_v6, %v2621_v19  ;;  %v2624_v21 = vadd.f32 %v3608_v20, %v4247_v27 }
 0x1b6   : > { %v2816_v29 = vadd.f32 %v4291_v24, %v2710_v28  ;;  %v2713_v14 = vadd.f32 %v3666_v5, %v2624_v21  ;;  %v3609_v30 = vpop.f32.mrb[88].mxu0 }
 0x1b7   : > { %v3667_v26 = vpop.f32.mrb[88].mxu1  ;;  %v3610_v31 = vpop.f32.mrb[89].mxu0 }
 0x1b8   : > { %2830 = vst [vmem:[%s4297_s30] sm:$0xff] %v2816_v29  ;;  %v2817_v23 = vadd.f32 %v4291_v24, %v2713_v14  ;;  %v3611_v15 = vadd.f32 %v3610_v31, %v3609_v30  ;;  %v3668_v36 = vpop.f32.mrb[89].mxu1  ;;  %v3612_v22 = vpop.f32.mrb[90].mxu0 }
 0x1b9   : > { %v3669_v27 = vadd.f32 %v3668_v36, %v3667_v26  ;;  %v3670_v38 = vpop.f32.mrb[90].mxu1  ;;  %v3613_v39 = vpop.f32.mrb[91].mxu0 }
 0x1ba   : > { %2831 = vst [vmem:[%s4297_s30 + $0x8] sm:$0xff] %v2817_v23  ;;  %v2629_v45 = vadd.f32 %v3611_v15, %v4250_v42  ;;  %v3614_v25 = vadd.f32 %v3613_v39, %v3612_v22  ;;  %v3671_v46 = vpop.f32.mrb[91].mxu1 }
 0x1bb   : > { %v3672_v35 = vadd.f32 %v3671_v46, %v3670_v38 }
 0x1bc   : > { %v2718_v47 = vadd.f32 %v3669_v27, %v2629_v45  ;;  %v2632_v32 = vadd.f32 %v3614_v25, %v4253_v44 }
 0x1be   : > { %v2818_v48 = vadd.f32 %v4291_v24, %v2718_v47  ;;  %v2721_v49 = vadd.f32 %v3672_v35, %v2632_v32  ;;  %v3615_v37 = vpop.f32.mrb[92].mxu0 }
 0x1bf   : > { %v3673_v33 = vpop.f32.mrb[92].mxu1  ;;  %v3616_v55 = vpop.f32.mrb[93].mxu0 }
 0x1c0   : > { %2832 = vst [vmem:[%s4297_s30 + $0x10] sm:$0xff] %v2818_v48  ;;  %v2819_v40 = vadd.f32 %v4291_v24, %v2721_v49  ;;  %v3617_v56 = vadd.f32 %v3616_v55, %v3615_v37  ;;  %v3674_v58 = vpop.f32.mrb[93].mxu1  ;;  %v3618_v59 = vpop.f32.mrb[94].mxu0 }
 0x1c1   : > { %v3675_v42 = vadd.f32 %v3674_v58, %v3673_v33  ;;  %v3676_v41 = vpop.f32.mrb[94].mxu1  ;;  %v3619_v0 = vpop.f32.mrb[95].mxu0 }
 0x1c2   : > { %2833 = vst [vmem:[%s4297_s30 + $0x18] sm:$0xff] %v2819_v40  ;;  %v2637_v51 = vadd.f32 %v3617_v56, %v4256_v62  ;;  %v3620_v44 = vadd.f32 %v3619_v0, %v3618_v59  ;;  %v3677_v50 = vpop.f32.mrb[95].mxu1 }
 0x1c3   : > { %v3678_v1 = vadd.f32 %v3677_v50, %v3676_v41 }
 0x1c4   : > { %v2726_v2 = vadd.f32 %v3675_v42, %v2637_v51  ;;  %v2640_v4 = vadd.f32 %v3620_v44, %v4259_v63 }
 0x1c6   : > { %v2820_v53 = vadd.f32 %v4291_v24, %v2726_v2  ;;  %v2729_v52 = vadd.f32 %v3678_v1, %v2640_v4  ;;  %v3621_v11 = vpop.f32.mrb[96].mxu0 }
 0x1c7   : > { %v3679_v60 = vpop.f32.mrb[96].mxu1  ;;  %v3622_v12 = vpop.f32.mrb[97].mxu0 }
 0x1c8   : > { %2834 = vst [vmem:[%s4297_s30 + $0x20] sm:$0xff] %v2820_v53  ;;  %v2821_v13 = vadd.f32 %v4291_v24, %v2729_v52  ;;  %v3623_v9 = vadd.f32 %v3622_v12, %v3621_v11  ;;  %v3680_v61 = vpop.f32.mrb[97].mxu1  ;;  %v3624_v6 = vpop.f32.mrb[98].mxu0 }
 0x1c9   : > { %v3681_v62 = vadd.f32 %v3680_v61, %v3679_v60  ;;  %v3682_v18 = vpop.f32.mrb[98].mxu1  ;;  %v3625_v3 = vpop.f32.mrb[99].mxu0 }
 0x1ca   : > { %2835 = vst [vmem:[%s4297_s30 + $0x28] sm:$0xff] %v2821_v13  ;;  %v2645_v19 = vadd.f32 %v3623_v9, %v4262_v16  ;;  %v3626_v63 = vadd.f32 %v3625_v3, %v3624_v6  ;;  %v3683_v20 = vpop.f32.mrb[99].mxu1 }
 0x1cb   : > { %v3684_v8 = vadd.f32 %v3683_v20, %v3682_v18 }
 0x1cc   : > { %v2734_v5 = vadd.f32 %v3681_v62, %v2645_v19  ;;  %v2648_v28 = vadd.f32 %v3626_v63, %v4265_v17 }
 0x1ce   : > { %v2822_v21 = vadd.f32 %v4291_v24, %v2734_v5  ;;  %v2737_v29 = vadd.f32 %v3684_v8, %v2648_v28  ;;  %v3627_v14 = vpop.f32.mrb[100].mxu0 }
 0x1cf   : > { %v3685_v30 = vpop.f32.mrb[100].mxu1  ;;  %v3628_v26 = vpop.f32.mrb[101].mxu0 }
 0x1d0   : > { %2836 = vst [vmem:[%s4297_s30 + $0x30] sm:$0xff] %v2822_v21  ;;  %v2823_v31 = vadd.f32 %v4291_v24, %v2737_v29  ;;  %v3629_v23 = vadd.f32 %v3628_v26, %v3627_v14  ;;  %v3686_v15 = vpop.f32.mrb[101].mxu1  ;;  %v3630_v36 = vpop.f32.mrb[102].mxu0 }
 0x1d1   : > { %v3687_v16 = vadd.f32 %v3686_v15, %v3685_v30  ;;  %v3688_v22 = vpop.f32.mrb[102].mxu1  ;;  %v3631_v27 = vpop.f32.mrb[103].mxu0 }
 0x1d2   : > { %2837 = vst [vmem:[%s4297_s30 + $0x38] sm:$0xff] %v2823_v31  ;;  %v2653_v38 = vadd.f32 %v3629_v23, %v4268_v34  ;;  %v3632_v17 = vadd.f32 %v3631_v27, %v3630_v36  ;;  %v3689_v39 = vpop.f32.mrb[103].mxu1 }
 0x1d3   : > { %v3690_v45 = vadd.f32 %v3689_v39, %v3688_v22 }
 0x1d4   : > { %v2742_v25 = vadd.f32 %v3687_v16, %v2653_v38  ;;  %v2656_v46 = vadd.f32 %v3632_v17, %v4271_v43 }
 0x1d6   : > { %v2824_v35 = vadd.f32 %v4291_v24, %v2742_v25  ;;  %v2745_v47 = vadd.f32 %v3690_v45, %v2656_v46  ;;  %v3633_v32 = vpop.f32.mrb[104].mxu0 }
 0x1d7   : > { %v3691_v48 = vpop.f32.mrb[104].mxu1  ;;  %v3634_v49 = vpop.f32.mrb[105].mxu0 }
 0x1d8   : > { %2838 = vst [vmem:[%s4297_s30 + $0x40] sm:$0xff] %v2824_v35  ;;  %v2825_v37 = vadd.f32 %v4291_v24, %v2745_v47  ;;  %v3635_v33 = vadd.f32 %v3634_v49, %v3633_v32  ;;  %v3692_v55 = vpop.f32.mrb[105].mxu1  ;;  %v3636_v40 = vpop.f32.mrb[106].mxu0 }
 0x1d9   : > { %v3693_v34 = vadd.f32 %v3692_v55, %v3691_v48  ;;  %v3694_v56 = vpop.f32.mrb[106].mxu1  ;;  %v3637_v58 = vpop.f32.mrb[107].mxu0 }
 0x1da   : > { %2839 = vst [vmem:[%s4297_s30 + $0x48] sm:$0xff] %v2825_v37  ;;  %v2661_v59 = vadd.f32 %v3635_v33, %v4274_v54  ;;  %v3638_v43 = vadd.f32 %v3637_v58, %v3636_v40  ;;  %v3695_v42 = vpop.f32.mrb[107].mxu1 }
 0x1db   : > { %v3696_v41 = vadd.f32 %v3695_v42, %v3694_v56 }
 0x1dc   : > { %v2750_v0 = vadd.f32 %v3693_v34, %v2661_v59  ;;  %v2664_v51 = vadd.f32 %v3638_v43, %v4277_v57 }
 0x1de   : > { %v2826_v44 = vadd.f32 %v4291_v24, %v2750_v0  ;;  %v2753_v50 = vadd.f32 %v3696_v41, %v2664_v51  ;;  %v3639_v1 = vpop.f32.mrb[108].mxu0 }
 0x1df   : > { %v3697_v2 = vpop.f32.mrb[108].mxu1  ;;  %v3640_v4 = vpop.f32.mrb[109].mxu0 }
 0x1e0   : > { %2840 = vst [vmem:[%s4297_s30 + $0x50] sm:$0xff] %v2826_v44  ;;  %v2827_v53 = vadd.f32 %v4291_v24, %v2753_v50  ;;  %v3641_v52 = vadd.f32 %v3640_v4, %v3639_v1  ;;  %v3698_v11 = vpop.f32.mrb[109].mxu1  ;;  %v3642_v54 = vpop.f32.mrb[110].mxu0 }
 0x1e1   : > { %v3699_v60 = vadd.f32 %v3698_v11, %v3697_v2  ;;  %v3700_v12 = vpop.f32.mrb[110].mxu1  ;;  %v3643_v13 = vpop.f32.mrb[111].mxu0 }
 0x1e2   : > { %2841 = vst [vmem:[%s4297_s30 + $0x58] sm:$0xff] %v2827_v53  ;;  %v2669_v57 = vadd.f32 %v3641_v52, %v4280_v10  ;;  %v3644_v9 = vadd.f32 %v3643_v13, %v3642_v54  ;;  %v3701_v61 = vpop.f32.mrb[111].mxu1 }
 0x1e3   : > { %v3702_v6 = vadd.f32 %v3701_v61, %v3700_v12 }
 0x1e4   : > { %v2758_v62 = vadd.f32 %v3699_v60, %v2669_v57  ;;  %v2672_v18 = vadd.f32 %v3644_v9, %v4283_v7 }
 0x1e6   : > { %v2828_v3 = vadd.f32 %v4291_v24, %v2758_v62  ;;  %v2761_v19 = vadd.f32 %v3702_v6, %v2672_v18 }
 0x1e8   : > { %2842 = vst [vmem:[%s4297_s30 + $0x60] sm:$0xff] %v2828_v3  ;;  %v2829_v63 = vadd.f32 %v4291_v24, %v2761_v19 }
 0x1ea   : > { %2843 = vst [vmem:[%s4297_s30 + $0x68] sm:$0xff] %v2829_v63 }
 0x1eb PF: > { %s13_s14 = sadd.s32 1, %s3879_s14   ;;  %s4352_s12 = smov %s3875_s13 }
 0x1ec   : > { %p10_p5 = scmp.ge.s32.totalorder %s13_s14, 4   ;;  %s4353_s13 = smov %s4355_s15 }
 0x1ee   :  { %12 = sbr.rel (!%p10_p5) target bundleno = 2 (0x2), region = 76 }

</bundles_post_ra>
